<compile_context>
chip_gen: v6e
topology: v6e:2x2x1
jax: 0.10.0
libtpu: 0.0.40
codegen_flags: <defaults>
</compile_context>

<pallas_src>
import math

import jax
import jax.numpy as jnp
from jax import lax
from jax.experimental import pallas as pl
from jax.experimental.pallas import tpu as pltpu

_LANE = 128
_SUBLANE = 8
_GATHER_VOCAB_THRESHOLD = 4096   # switch to the HBM row-gather path above this vocab
_GATHER_DMA_BUFFERS = 8          # row DMAs kept in flight in the gather kernel


def _round_up(n, m):
    return -(-n // m) * m


def _vmem_capacity_bytes():
    """Per-core VMEM capacity; falls back to 64 MiB (v7x per-TC) if the query fails."""
    try:
        info = pltpu.get_tpu_info()
        for name in ("vmem_capacity_bytes", "vmem_size_bytes", "vmem_bytes"):
            cap = getattr(info, name, None)
            if cap:
                return int(cap)
    except Exception:
        pass
    return 64 << 20


def prepare_fused_table(emb_table, w_proj, projected_dimensions, *,
                        table_dtype=jnp.bfloat16):
    """Fold projection + sqrt(P) scale into one (V, P_padded) lookup table.

    Do this ONCE (it is parameter preparation), not per forward call: at real
    vocab sizes the (V,D)x(D,P) fold plus an extra HBM round trip of the (V,P)
    table would dominate the kernel itself.  The last dim is zero-padded up to
    a multiple of 128 so the kernel's output stores are lane-dense unmasked
    slabs; the apply wrapper slices the padding back off.
    """
    V, D = emb_table.shape
    P = int(projected_dimensions)
    scale = float(P) ** 0.5
    if w_proj is not None:
        assert w_proj.shape == (P, D), "w_proj must be the (P, D) nn.Linear weight"
        fused = jnp.matmul(emb_table.astype(jnp.float32),
                           w_proj.astype(jnp.float32).T,
                           precision=jax.lax.Precision.HIGHEST) * scale
    else:
        assert P == D, "no projection requires projected_dimensions == dim_embedding"
        fused = emb_table.astype(jnp.float32) * scale
    Pp = _round_up(P, _LANE)
    if Pp != P:
        fused = jnp.pad(fused, ((0, 0), (0, Pp - P)))
    return fused.astype(table_dtype)


def _choose_token_tile(n_tokens, vocab):
    """Adaptive token tile.

    * Big tiles amortize the ~0.35us per-grid-step overhead (at small V the
      one-hot kernel is step-overhead bound), up to 1024 tokens.
    * Cap at 512 once V >= 2048 so the (tile, V) one-hot stays small (v5e has
      a single vstore slot and no bf16 VALU, so one-hot build/writeback must
      not become the binding slot).
    * Among 128-multiples (valid lane/sublane and MXU-M shapes on all chips),
      prefer minimal total padded work, then an EVEN grid length (so the
      "parallel" token axis splits evenly across v7x's two TensorCores), then
      the largest tile.
    """
    if n_tokens <= _LANE:
        return max(_SUBLANE, _round_up(n_tokens, _SUBLANE))
    tile_max = 1024 if vocab < 2048 else 512
    best = None
    for tile in range(_LANE, tile_max + 1, _LANE):
        grid = -(-n_tokens // tile)
        key = (grid * tile, grid % 2 != 0, -tile)   # work, odd-grid penalty, size
        if best is None or key < best[0]:
            best = (key, tile)
    return best[1]


# --------------------------------------------------------------------------
# Path 1: VMEM-resident fused table, one-hot MXU matmul (small vocabularies).
# --------------------------------------------------------------------------
def _embed_onehot_kernel(ids_ref, fused_ref, out_ref):
    # ids_ref:   (TN, 1)  int32   token ids for this tile
    # fused_ref: (V, Pp)  bf16/f32  (emb @ W^T) * sqrt(P); grid-invariant
    # out_ref:   (TN, Pp) out_dtype
    ids = ids_ref[...]                                         # (TN, 1)
    tn = ids.shape[0]
    v = fused_ref.shape[0]
    iota = lax.broadcasted_iota(jnp.int32, (tn, v), 1)
    one_hot = (iota == ids).astype(fused_ref.dtype)            # 0/1 exact in bf16
    out_ref[...] = jnp.dot(one_hot, fused_ref[...],
                           preferred_element_type=jnp.float32).astype(out_ref.dtype)


# --------------------------------------------------------------------------
# Path 2: table in HBM, per-row DMA gather (large vocabularies).
# --------------------------------------------------------------------------
def _make_gather_kernel(tile, nbuf):
    def kernel(ids_ref, table_hbm, out_ref, sems):
        # ids_ref:   (n_pad,) int32 in SMEM (scalar prefetch)
        # table_hbm: (V, Pp) in HBM (memory_space=pl.ANY)
        # out_ref:   (tile, Pp) VMEM output tile; rows written directly by DMA
        base = pl.program_id(0) * tile

        def row_copy(t, slot):
            row = ids_ref[base + t]
            return pltpu.make_async_copy(
                table_hbm.at[pl.ds(row, 1), :],
                out_ref.at[pl.ds(t, 1), :],
                sems.at[slot])

        @pl.loop(0, min(nbuf, tile))
        def _prime(t):
            row_copy(t, t).start()

        @pl.loop(0, tile)
        def _drain(t):
            slot = t % nbuf
            row_copy(t, slot).wait()

            @pl.when(t + nbuf < tile)
            def _():
                row_copy(t + nbuf, slot).start()

    return kernel


# --------------------------------------------------------------------------
# Apply the prepared table.
# --------------------------------------------------------------------------
def embedding_with_projection_fused(x, fused_table, projected_dimensions, *,
                                    out_dtype=jnp.float32, token_tile=None,
                                    path=None,
                                    gather_vocab_threshold=_GATHER_VOCAB_THRESHOLD):
    """x: (B, S) int token ids; fused_table: (V, P_padded) from prepare_fused_table.
    Returns (B, S, P) in out_dtype — same forward semantics as the PyTorch module."""
    B, S = x.shape
    V, Pp = fused_table.shape
    P = int(projected_dimensions)
    assert Pp % _LANE == 0 and P <= Pp, "build fused_table with prepare_fused_table()"

    N = B * S
    tile = int(token_tile) if token_tile is not None else _choose_token_tile(N, V)
    n_pad = _round_up(N, tile)
    ids = x.reshape(N).astype(jnp.int32)
    if n_pad != N:
        ids = jnp.pad(ids, (0, n_pad - N))            # pad id 0; rows sliced off below
    grid = (n_pad // tile,)

    # ---- Generation-aware VMEM budget (v5e/v6e: 128 MiB, v7x: 64 MiB / TC). ----
    vmem_cap = _vmem_capacity_bytes()
    budget = (3 * vmem_cap) // 4
    tdt = fused_table.dtype
    table_bytes = _round_up(V, 32 // tdt.itemsize) * Pp * tdt.itemsize   # single-buffered
    ids_bytes = tile * _LANE * 4                       # (tile,1) i32 pads to 128 lanes
    out_bytes = tile * Pp * jnp.dtype(out_dtype).itemsize
    onehot_bytes = tile * _round_up(V, _LANE) * (tdt.itemsize + 4)       # one-hot + iota live
    needed = table_bytes + 2 * (ids_bytes + out_bytes) + onehot_bytes

    if path is None:
        # Switch to the gather path well before the table stops fitting VMEM:
        # the one-hot path does O(TN*V*P) MXU work for an O(TN*P) gather.
        path = "gather" if (V > gather_vocab_threshold or needed > budget) else "onehot"

    if path == "onehot":
        assert needed <= budget, (
            f"fused table + tiles need ~{needed / 2**20:.1f} MiB of "
            f"{vmem_cap / 2**20:.0f} MiB VMEM; use path='gather' instead")
        # Limit leaves headroom below physical VMEM (also covers a double-buffer fallback).
        vmem_limit = int(min(needed + table_bytes + (16 << 20),
                             max(vmem_cap - (4 << 20), needed + (2 << 20))))
        ids2d = ids.reshape(n_pad, 1)

        def call_onehot(table_buffers):
            if table_buffers == 1:
                # Grid-invariant table: constant index_map, so the second pipeline
                # buffer is never used -> single-buffer it (halves table VMEM).
                table_spec = pl.BlockSpec((V, Pp), lambda i: (0, 0),
                                          pipeline_mode=pl.Buffered(1))
            else:
                table_spec = pl.BlockSpec((V, Pp), lambda i: (0, 0))
            return pl.pallas_call(
                _embed_onehot_kernel,
                out_shape=jax.ShapeDtypeStruct((n_pad, Pp), out_dtype),
                grid_spec=pltpu.PrefetchScalarGridSpec(
                    num_scalar_prefetch=0,
                    grid=grid,
                    in_specs=[
                        pl.BlockSpec((tile, 1), lambda i: (i, 0)),   # token ids
                        table_spec,                                   # fused table
                    ],
                    out_specs=pl.BlockSpec((tile, Pp), lambda i: (i, 0)),
                ),
                compiler_params=pltpu.CompilerParams(
                    dimension_semantics=("parallel",),   # token tiles shard across TCs (v7x)
                    vmem_limit_bytes=vmem_limit,
                ),
            )(ids2d, fused_table)

        try:
            out_flat = call_onehot(1)
        except Exception:
            # Compatibility fallback: jax versions without Buffered(1) support
            # on the main pipeline -> default double-buffered table.
            out_flat = call_onehot(2)

    elif path == "gather":
        kernel = _make_gather_kernel(tile, _GATHER_DMA_BUFFERS)
        out_flat = pl.pallas_call(
            kernel,
            out_shape=jax.ShapeDtypeStruct((n_pad, Pp), fused_table.dtype),
            grid_spec=pltpu.PrefetchScalarGridSpec(
                num_scalar_prefetch=1,                   # ids -> SMEM
                grid=grid,
                in_specs=[pl.BlockSpec(memory_space=pl.ANY)],   # table stays in HBM
                out_specs=pl.BlockSpec((tile, Pp), lambda i, ids: (i, 0)),
                scratch_shapes=[pltpu.SemaphoreType.DMA((_GATHER_DMA_BUFFERS,))],
            ),
            compiler_params=pltpu.CompilerParams(
                dimension_semantics=("parallel",),
            ),
        )(ids, fused_table)
        if out_flat.dtype != jnp.dtype(out_dtype):
            out_flat = out_flat.astype(out_dtype)        # DMA copies raw rows in table dtype
    else:
        raise ValueError(f"unknown path {path!r}")

    out = out_flat[:N] if n_pad != N else out_flat
    if Pp != P:
        out = out[:, :P]
    return out.reshape(B, S, P)


def embedding_with_projection(x, emb_table, w_proj, projected_dimensions, *,
                              table_dtype=jnp.bfloat16, out_dtype=jnp.float32,
                              token_tile=None, path=None):
    """One-shot convenience wrapper (table prep + apply).  For repeated forward
    calls, hoist prepare_fused_table() out of the per-call path (or keep the
    whole thing under a single jit) so the (V,D)x(D,P) fold is not recomputed."""
    V = emb_table.shape[0]
    if path == "gather" or (path is None and V > _GATHER_VOCAB_THRESHOLD):
        table_dtype = out_dtype      # gather DMAs raw rows: keep table in output dtype
    fused = prepare_fused_table(emb_table, w_proj, projected_dimensions,
                                table_dtype=table_dtype)
    return embedding_with_projection_fused(
        x, fused, projected_dimensions, out_dtype=out_dtype,
        token_tile=token_tile, path=path)


if __name__ == "__main__":
    # Module hyperparameters (small but MXU/lane-friendly).
    num_embeddings = 512        # V
    dim_embedding = 64          # D
    projected_dimensions = 256  # P (!= D, so the Linear projection is active)
    B, S = 2, 384               # N = 768 tokens -> adaptive tile 384, even grid of 2

    key = jax.random.PRNGKey(0)
    k_ids, k_emb, k_w = jax.random.split(key, 3)

    # Deterministic parameter init (mirrors nn.Embedding ~ N(0,1),
    # nn.Linear(bias=False) ~ U(-1/sqrt(D), 1/sqrt(D))).
    emb_table = jax.random.normal(k_emb, (num_embeddings, dim_embedding),
                                  dtype=jnp.float32)
    bound = 1.0 / math.sqrt(dim_embedding)
    w_proj = jax.random.uniform(k_w, (projected_dimensions, dim_embedding),
                                minval=-bound, maxval=bound, dtype=jnp.float32)
    x = jax.random.randint(k_ids, (B, S), 0, num_embeddings, dtype=jnp.int32)

    # Pure-JAX reference matching the PyTorch module.
    ref = jnp.matmul(jnp.take(emb_table, x, axis=0), w_proj.T,
                     precision=jax.lax.Precision.HIGHEST) * (projected_dimensions ** 0.5)

    # (1) Default small-vocab path: bf16 fused table, one-hot MXU matmul.
    fused_bf16 = prepare_fused_table(emb_table, w_proj, projected_dimensions)  # hoisted prep
    out = jax.block_until_ready(
        embedding_with_projection_fused(x, fused_bf16, projected_dimensions))
    assert out.shape == (B, S, projected_dimensions) and out.dtype == jnp.float32
    assert jnp.allclose(out, ref, atol=2e-2, rtol=2e-2), "bf16-table one-hot path mismatch"

    # (2) f32 fused table: tight check of the lookup/matmul plumbing.
    fused_f32 = prepare_fused_table(emb_table, w_proj, projected_dimensions,
                                    table_dtype=jnp.float32)
    out_f32 = jax.block_until_ready(
        embedding_with_projection_fused(x, fused_f32, projected_dimensions))
    assert jnp.allclose(out_f32, ref, atol=1e-4, rtol=1e-4), "f32 one-hot path mismatch"

    # (3) HBM row-gather path (what large vocabularies auto-select), forced here
    # on the same small config so both code paths are exercised.
    out_g = jax.block_until_ready(
        embedding_with_projection_fused(x, fused_f32, projected_dimensions,
                                        path="gather"))
    assert jnp.allclose(out_g, ref, atol=1e-4, rtol=1e-4), "gather path mismatch"

    # (4) bf16 output option (halves output HBM traffic / vstore pressure).
    out_bf16 = jax.block_until_ready(
        embedding_with_projection_fused(x, fused_bf16, projected_dimensions,
                                        out_dtype=jnp.bfloat16))
    assert out_bf16.dtype == jnp.bfloat16
    assert jnp.allclose(out_bf16.astype(jnp.float32), ref, atol=1e-2, rtol=3e-2), \
        "bf16-output path mismatch"

    # (5) No-projection branch (P == D = 64): table lane-padded to 128 so the
    # output stores are lane-dense; padding sliced off in the wrapper.
    out_np = jax.block_until_ready(
        embedding_with_projection(x, emb_table, None, dim_embedding,
                                  table_dtype=jnp.float32))
    ref_np = jnp.take(emb_table, x, axis=0) * (dim_embedding ** 0.5)
    assert out_np.shape == (B, S, dim_embedding)
    assert jnp.allclose(out_np, ref_np, atol=1e-4, rtol=1e-4), "no-projection path mismatch"

    print("KERNEL_OK")
</pallas_src>

<mosaic_0001>
module attributes {stable_mosaic.version = 11 : i64} {
  func.func @_embed_onehot_kernel(%arg0: i32, %arg1: memref<384x1xi32, #tpu.memory_space<vmem>>, %arg2: memref<512x256xbf16, #tpu.memory_space<vmem>>, %arg3: memref<384x256xf32, #tpu.memory_space<vmem>>) attributes {dimension_semantics = [#tpu.dimension_semantics<parallel>], iteration_bounds = array<i64: 2>, scalar_prefetch = 0 : i64, scratch_operands = 0 : i64, tpu.core_type = #tpu.core_type<tc>, window_params = [{transform_indices = @transform_0, window_bounds = array<i64: 384, 1>}, {pipeline_mode = #tpu.pipeline_mode<synchronous>, transform_indices = @transform_1, window_bounds = array<i64: 512, 256>}, {transform_indices = @transform_2, window_bounds = array<i64: 384, 256>}]} {
    %c0 = arith.constant 0 : index
    %c0_0 = arith.constant 0 : index
    %0 = vector.load %arg1[%c0, %c0_0] : memref<384x1xi32, #tpu.memory_space<vmem>>, vector<384x1xi32>
    %1 = tpu.iota {dimensions = array<i32: 1>} : vector<384x512xi32>
    %2 = vector.broadcast %0 : vector<384x1xi32> to vector<384x512xi32>
    %3 = arith.cmpi eq, %1, %2 : vector<384x512xi32>
    %4 = arith.extui %3 : vector<384x512xi1> to vector<384x512xi32>
    %5 = arith.sitofp %4 : vector<384x512xi32> to vector<384x512xf32>
    %6 = arith.truncf %5 : vector<384x512xf32> to vector<384x512xbf16>
    %c0_1 = arith.constant 0 : index
    %c0_2 = arith.constant 0 : index
    %7 = vector.load %arg2[%c0_1, %c0_2] : memref<512x256xbf16, #tpu.memory_space<vmem>>, vector<512x256xbf16>
    %cst = arith.constant dense<0.000000e+00> : vector<384x256xf32>
    %8 = tpu.matmul %6, %7, %cst {dimension_numbers = #tpu.dot_dimension_numbers<[1], [0], [0], [1], [0, 0, 1, 1], [], []>} : vector<384x512xbf16>, vector<512x256xbf16>, vector<384x256xf32> -> vector<384x256xf32>
    %c0_3 = arith.constant 0 : index
    %c0_4 = arith.constant 0 : index
    %9 = vector.load %arg3[%c0_3, %c0_4] : memref<384x256xf32, #tpu.memory_space<vmem>>, vector<384x256xf32>
    tpu.vector_store %arg3[%c0_3, %c0_4], %8 {strides = array<i32>} : memref<384x256xf32, #tpu.memory_space<vmem>>, vector<384x256xf32>,
    return
  }
  func.func @transform_0(%arg0: i32) -> (i32, i32) {
    %c0_i32 = arith.constant 0 : i32
    %c0_i32_0 = arith.constant 0 : i32
    return %arg0, %c0_i32 : i32, i32
  }
  func.func @transform_1(%arg0: i32) -> (i32, i32) {
    %c0_i32 = arith.constant 0 : i32
    %c0_i32_0 = arith.constant 0 : i32
    %c0_i32_1 = arith.constant 0 : i32
    return %c0_i32, %c0_i32_0 : i32, i32
  }
  func.func @transform_2(%arg0: i32) -> (i32, i32) {
    %c0_i32 = arith.constant 0 : i32
    %c0_i32_0 = arith.constant 0 : i32
    return %arg0, %c0_i32 : i32, i32
  }
}

module attributes {stable_mosaic.version = 11 : i64} {
  func.func @_embed_onehot_kernel(%arg0: i32, %arg1: memref<384x1xi32, #tpu.memory_space<vmem>>, %arg2: memref<512x256xbf16, #tpu.memory_space<vmem>>, %arg3: memref<384x256xf32, #tpu.memory_space<vmem>>) attributes {dimension_semantics = [#tpu.dimension_semantics<parallel>], iteration_bounds = array<i64: 2>, scalar_prefetch = 0 : i64, scratch_operands = 0 : i64, tpu.core_type = #tpu.core_type<tc>, window_params = [{transform_indices = @transform_0, window_bounds = array<i64: 384, 1>}, {pipeline_mode = #tpu.pipeline_mode<synchronous>, transform_indices = @transform_1, window_bounds = array<i64: 512, 256>}, {transform_indices = @transform_2, window_bounds = array<i64: 384, 256>}]} {
    %c0 = arith.constant 0 : index
    %c0_0 = arith.constant 0 : index
    %0 = vector.load %arg1[%c0, %c0_0] : memref<384x1xi32, #tpu.memory_space<vmem>>, vector<384x1xi32>
    %1 = tpu.iota {dimensions = array<i32: 1>} : vector<384x512xi32>
    %2 = vector.broadcast %0 : vector<384x1xi32> to vector<384x512xi32>
    %3 = arith.cmpi eq, %1, %2 : vector<384x512xi32>
    %4 = arith.extui %3 : vector<384x512xi1> to vector<384x512xi32>
    %5 = arith.sitofp %4 : vector<384x512xi32> to vector<384x512xf32>
    %6 = arith.truncf %5 : vector<384x512xf32> to vector<384x512xbf16>
    %c0_1 = arith.constant 0 : index
    %c0_2 = arith.constant 0 : index
    %7 = vector.load %arg2[%c0_1, %c0_2] : memref<512x256xbf16, #tpu.memory_space<vmem>>, vector<512x256xbf16>
    %cst = arith.constant dense<0.000000e+00> : vector<384x256xf32>
    %8 = tpu.matmul %6, %7, %cst {dimension_numbers = #tpu.dot_dimension_numbers<[1], [0], [0], [1], [0, 0, 1, 1], [], []>} : vector<384x512xbf16>, vector<512x256xbf16>, vector<384x256xf32> -> vector<384x256xf32>
    %c0_3 = arith.constant 0 : index
    %c0_4 = arith.constant 0 : index
    %9 = vector.load %arg3[%c0_3, %c0_4] : memref<384x256xf32, #tpu.memory_space<vmem>>, vector<384x256xf32>
    tpu.vector_store %arg3[%c0_3, %c0_4], %8 {strides = array<i32>} : memref<384x256xf32, #tpu.memory_space<vmem>>, vector<384x256xf32>,
    return
  }
  func.func @transform_0(%arg0: i32) -> (i32, i32) {
    %c0_i32 = arith.constant 0 : i32
    %c0_i32_0 = arith.constant 0 : i32
    return %arg0, %c0_i32 : i32, i32
  }
  func.func @transform_1(%arg0: i32) -> (i32, i32) {
    %c0_i32 = arith.constant 0 : i32
    %c0_i32_0 = arith.constant 0 : i32
    %c0_i32_1 = arith.constant 0 : i32
    return %c0_i32, %c0_i32_0 : i32, i32
  }
  func.func @transform_2(%arg0: i32) -> (i32, i32) {
    %c0_i32 = arith.constant 0 : i32
    %c0_i32_0 = arith.constant 0 : i32
    return %arg0, %c0_i32 : i32, i32
  }
}

</mosaic_0001>

<bundles_post_ra>
// kernel: tpu_custom_call.1
= control target key start
LH: loop header
LB: loop body
LE: loop exit
PB: predicated region body
PF: predicated region fallthrough
CT: control target
= control target key end

     0   :  { %7 = vsyncpa [#allocation3], 0  ;;  %s3546_s0 = inlined_call_operand.vmem [shape: s32[768,1], index: 0, kind: input, shape index: {}]   ;;  %s3547_s1 = inlined_call_operand.vmem [shape: bf16[512,256], index: 1, kind: input, shape index: {}]   ;;  %s3548_s2 = inlined_call_operand.hbm [shape: f32[768,256], index: 2, kind: output, shape index: {}]  }
   0x1   :  { %9 = vsyncpa [#allocation3 + $0x1], 0  ;;  %s2801_s9 = smov 0   ;;  %s2803_s10 = smov 0  }
   0x2   :  { %s2805_s11 = smov 0   ;;  %s2807_s12 = smov 0  }
   0x3 LB: > { %s2822_s13 = sadd.s32 4294967295, %s2779_s12   ;;  %s2117_s14 = sadd.s32 4294967294, %s2779_s12   ;;  %s2779_s12 = sphi %s2807_s12, %s3554_s12   ;;  %s2775_s11 = sphi %s2805_s11, %s3553_s11   ;;  %s2771_s10 = sphi %s2803_s10, %s3552_s10   ;;  %s2767_s9 = sphi %s2801_s9, %s3551_s9  }
   0x4   : > { %s2826_s15 = sadd.s32 1, %s2779_s12   ;;  %s69_s16 = sadd.s32 1, %s2775_s11 }
   0x5   : > { %s66_s17 = ssub.s32 %s2779_s12, %s2826_s15  ;;  %p79_p0 = scmp.ne.s32.totalorder %s2775_s11, %s2771_s10 }
   0x6   : > { %p67_p1 = scmp.eq.s32.totalorder %s66_s17, 0  ;;  %p80_p2 = scmp.eq.s32.totalorder %s2822_s13, 1 }
   0x7   : > { %p85_p3 = scmp.ne.s32.totalorder %s2771_s10, %s2767_s9  ;;  %p86_p4 = scmp.eq.s32.totalorder %s2117_s14, 1 }
   0x8   : > { %s2837_s18 = scalar_select %p67_p1, %s2775_s11, %s69_s16  }
   0x9   : > { %p2839_p5 = por %p80_p2, %p79_p0  ;;  %p2843_p6 = por %p86_p4, %p85_p3 }
   0xa   : > { %p2120_p7 = scmp.ge.s32.totalorder %s2779_s12, 1  ;;  %p116_p8 = scmp.lt.s32.totalorder %s2779_s12, 3 }
   0xc   : > { %p117_p9 = pnand %p2120_p7, %p116_p8 }
   0xd   : > { %s138_s21 = smul.u32 (!%p117_p9), 48, %s2822_s13  ;;  %s2783_s7 = smov (!%p117_p9), [#allocation2]  }
   0xe   : > { %120 = sbr.rel (%p117_p9) target bundleno = 556 (0x22c), region = 28  ;;  %s2723_s8 = sshll.u32 (!%p117_p9), %s2783_s7, 4  ;;  %s2724_s8 = int_to_ptr.vmem [resolvable:$false] %s2723_s8 }
   0xf   : > { %p139_p10 = scmp.lt.s32.totalorder (!%p117_p9), %s138_s21, 95  ;;  %s2576_s29 = smul.u32 (!%p117_p9), 12288, %s2822_s13 }
  0x10   : > { %s2725_s14 = scalar_lea.vmem (!%p117_p9), %s2724_s8, 24576 }
  0x11   : > { %s3498_s5 = scalar_lea.hbm (!%p117_p9), %s3548_s2, %s2576_s29 }
  0x13   : > { %v2623_v0 = vld [vmem:[%s3547_s1 + $0x74] ss:$8 sps:$4 sm:$0xff]   ;;  %v2781_v1 = vmov 0   ;;  %v2627_v3 = vld [vmem:[%s3547_s1 + $0x70] ss:$8 sps:$4 sm:$0xff]   ;;  %s3556_s21 = smov (!%p139_p10, %s138_s21), 95 }
  0x14   : > { %2622 = vset.pattern.permute.xlu1 %v2781_v1  ;;  %2621 = vset.pattern.permute.xlu0 %v2781_v1  ;;  %v2625_v2 = vld [vmem:[%s3547_s1 + $0x174] ss:$8 sps:$4 sm:$0xff]   ;;  %v2628_v4 = vld [vmem:[%s3547_s1 + $0x170] ss:$8 sps:$4 sm:$0xff]   ;;  %v2629_v5 = vld [vmem:[%s3547_s1 + $0x64] ss:$8 sps:$4 sm:$0xff]  }
  0x15   : > { %1398 = vmatprep.subr.bf16.mxu0 %v2623_v0  ;;  %1671 = vmatprep.subr.bf16.mxu1 %v2625_v2  ;;  %v2631_v6 = vld [vmem:[%s3547_s1 + $0x164] ss:$8 sps:$4 sm:$0xff]   ;;  %v2633_v7 = vld [vmem:[%s3547_s1 + $0x60] ss:$8 sps:$4 sm:$0xff]   ;;  %s2121_s16 = sshll.u32 %s3556_s21, 3 }
  0x16   : > { %1399 = vmatpush1.bf16.msra.mxu0 %v2627_v3  ;;  %1672 = vmatpush1.bf16.msra.mxu1 %v2628_v4  ;;  %v2634_v8 = vld [vmem:[%s3547_s1 + $0x160] ss:$8 sps:$4 sm:$0xff]   ;;  %v2635_v9 = vld [vmem:[%s3547_s1 + $0x54] ss:$8 sps:$4 sm:$0xff]   ;;  %s2880_s25 = scalar_lea.vmem %s3546_s0, %s2121_s16  ;;  %v2639_v11 = vld [vmem:[%s3547_s1 + $0x50] ss:$8 sps:$4 sm:$0xff]  }
  0x17   : > { %1400 = vmatprep.subr.bf16.mxu0 %v2629_v5  ;;  %1673 = vmatprep.subr.bf16.mxu1 %v2631_v6  ;;  %v2637_v10 = vld [vmem:[%s3547_s1 + $0x154] ss:$8 sps:$4 sm:$0xff]   ;;  %v145_v13 = vld [vmem:[%s2880_s25] sm:$0xff]  ;;  %v2640_v14 = vld [vmem:[%s3547_s1 + $0x150] ss:$8 sps:$4 sm:$0xff]  }
  0x18   : > { %v147_v12 = vld [vmem:[%s2880_s25 + $0x10] sm:$0xff]  ;;  %199 = vperm.xlu0 %2621, %v145_v13   ;;  %v148_v15 = vld [vmem:[%s2880_s25 + $0x18] sm:$0xff]  ;;  %v146_v16 = vld [vmem:[%s2880_s25 + $0x8] sm:$0xff] }
  0x19   : > { %205 = vperm.xlu1 %2622, %v147_v12   ;;  %v150_v17 = vld [vmem:[%s2880_s25 + $0x28] sm:$0xff]  ;;  %v149_v18 = vld [vmem:[%s2880_s25 + $0x20] sm:$0xff]  ;;  %v152_v19 = vld [vmem:[%s2880_s25 + $0x38] sm:$0xff] }
  0x1a   : > { %1401 = vmatpush1.bf16.msra.mxu0 %v2633_v7  ;;  %1674 = vmatpush1.bf16.msra.mxu1 %v2634_v8  ;;  %v151_v20 = vld [vmem:[%s2880_s25 + $0x30] sm:$0xff]  ;;  %v154_v21 = vld [vmem:[%s2880_s25 + $0x48] sm:$0xff]  ;;  %v153_v22 = vld [vmem:[%s2880_s25 + $0x40] sm:$0xff] }
  0x1b   : > { %1402 = vmatprep.subr.bf16.mxu0 %v2635_v9  ;;  %1675 = vmatprep.subr.bf16.mxu1 %v2637_v10  ;;  %v2641_v23 = vld [vmem:[%s3547_s1 + $0x44] ss:$8 sps:$4 sm:$0xff]   ;;  %v2645_v25 = vld [vmem:[%s3547_s1 + $0x40] ss:$8 sps:$4 sm:$0xff]   ;;  %v156_v27 = vld [vmem:[%s2880_s25 + $0x58] sm:$0xff] }
  0x1c   : > { %202 = vperm.xlu0 %2621, %v146_v16   ;;  %v2643_v24 = vld [vmem:[%s3547_s1 + $0x144] ss:$8 sps:$4 sm:$0xff]   ;;  %v2646_v26 = vld [vmem:[%s3547_s1 + $0x140] ss:$8 sps:$4 sm:$0xff]   ;;  %v155_v28 = vld [vmem:[%s2880_s25 + $0x50] sm:$0xff] }
  0x1d   : > { %208 = vperm.xlu1 %2622, %v148_v15   ;;  %v2647_v29 = vld [vmem:[%s3547_s1 + $0x34] ss:$8 sps:$4 sm:$0xff]   ;;  %v2651_v31 = vld [vmem:[%s3547_s1 + $0x30] ss:$8 sps:$4 sm:$0xff]   ;;  %v2653_v33 = vld [vmem:[%s3547_s1 + $0x24] ss:$8 sps:$4 sm:$0xff]  }
  0x1e   : > { %1403 = vmatpush1.bf16.msra.mxu0 %v2639_v11  ;;  %1676 = vmatpush1.bf16.msra.mxu1 %v2640_v14  ;;  %v2649_v30 = vld [vmem:[%s3547_s1 + $0x134] ss:$8 sps:$4 sm:$0xff]   ;;  %v2652_v32 = vld [vmem:[%s3547_s1 + $0x130] ss:$8 sps:$4 sm:$0xff]   ;;  %v2655_v34 = vld [vmem:[%s3547_s1 + $0x124] ss:$8 sps:$4 sm:$0xff]  }
  0x1f   : > { %1404 = vmatprep.subr.bf16.mxu0 %v2641_v23  ;;  %1677 = vmatprep.subr.bf16.mxu1 %v2643_v24  ;;  %v158_v35 = vld [vmem:[%s2880_s25 + $0x68] sm:$0xff]  ;;  %v157_v36 = vld [vmem:[%s2880_s25 + $0x60] sm:$0xff]  ;;  %v2659_v39 = vld [vmem:[%s3547_s1 + $0x14] ss:$8 sps:$4 sm:$0xff]  }
  0x20   : > { %211 = vperm.xlu0 %2621, %v149_v18   ;;  %v2657_v37 = vld [vmem:[%s3547_s1 + $0x20] ss:$8 sps:$4 sm:$0xff]   ;;  %v160_v40 = vld [vmem:[%s2880_s25 + $0x78] sm:$0xff]  ;;  %v159_v41 = vld [vmem:[%s2880_s25 + $0x70] sm:$0xff] }
  0x21   : > { %214 = vperm.xlu1 %2622, %v150_v17   ;;  %v2658_v38 = vld [vmem:[%s3547_s1 + $0x120] ss:$8 sps:$4 sm:$0xff]   ;;  %v2661_v42 = vld [vmem:[%s3547_s1 + $0x114] ss:$8 sps:$4 sm:$0xff]   ;;  %v2663_v43 = vld [vmem:[%s3547_s1 + $0x10] ss:$8 sps:$4 sm:$0xff]  }
  0x22   : > { %1405 = vmatpush1.bf16.msra.mxu0 %v2645_v25  ;;  %1678 = vmatpush1.bf16.msra.mxu1 %v2646_v26  ;;  %v2664_v44 = vld [vmem:[%s3547_s1 + $0x110] ss:$8 sps:$4 sm:$0xff]   ;;  %v2665_v45 = vld [vmem:[%s3547_s1 + $0x4] ss:$8 sps:$4 sm:$0xff]   ;;  %v2669_v49 = vld [vmem:[%s3547_s1] ss:$8 sps:$4 sm:$0xff]  }
  0x23   : > { %1406 = vmatprep.subr.bf16.mxu0 %v2647_v29  ;;  %1679 = vmatprep.subr.bf16.mxu1 %v2649_v30  ;;  %v162_v46 = vld [vmem:[%s2880_s25 + $0x88] sm:$0xff]  ;;  %v161_v48 = vld [vmem:[%s2880_s25 + $0x80] sm:$0xff]  ;;  %v2671_v51 = vld [vmem:[%s3547_s1 + $0xf4] ss:$8 sps:$4 sm:$0xff]  }
  0x24   : > { %217 = vperm.xlu0 %2621, %v151_v20   ;;  %v2667_v47 = vld [vmem:[%s3547_s1 + $0x104] ss:$8 sps:$4 sm:$0xff]   ;;  %v2670_v50 = vld [vmem:[%s3547_s1 + $0x100] ss:$8 sps:$4 sm:$0xff]   ;;  %v164_v52 = vld [vmem:[%s2880_s25 + $0x98] sm:$0xff] }
  0x25   : > { %220 = vperm.xlu1 %2622, %v152_v19   ;;  %v2673_v53 = vld [vmem:[%s3547_s1 + $0x1f4] ss:$8 sps:$4 sm:$0xff]   ;;  %v2675_v55 = vld [vmem:[%s3547_s1 + $0xf0] ss:$8 sps:$4 sm:$0xff]   ;;  %v2677_v57 = vld [vmem:[%s3547_s1 + $0xe4] ss:$8 sps:$4 sm:$0xff]  }
  0x26   : > { %1407 = vmatpush1.bf16.msra.mxu0 %v2651_v31  ;;  %1680 = vmatpush1.bf16.msra.mxu1 %v2652_v32  ;;  %v163_v54 = vld [vmem:[%s2880_s25 + $0x90] sm:$0xff]  ;;  %v166_v58 = vld [vmem:[%s2880_s25 + $0xa8] sm:$0xff]  ;;  %v165_v60 = vld [vmem:[%s2880_s25 + $0xa0] sm:$0xff] }
  0x27   : > { %1408 = vmatprep.subr.bf16.mxu0 %v2653_v33  ;;  %1681 = vmatprep.subr.bf16.mxu1 %v2655_v34  ;;  %v2676_v56 = vld [vmem:[%s3547_s1 + $0x1f0] ss:$8 sps:$4 sm:$0xff]   ;;  %v2679_v59 = vld [vmem:[%s3547_s1 + $0x1e4] ss:$8 sps:$4 sm:$0xff]   ;;  %v2681_v61 = vld [vmem:[%s3547_s1 + $0xe0] ss:$8 sps:$4 sm:$0xff]  }
  0x28   : > { %223 = vperm.xlu0 %2621, %v153_v22   ;;  %v2682_v62 = vld [vmem:[%s3547_s1 + $0x1e0] ss:$8 sps:$4 sm:$0xff]   ;;  %v2683_v63 = vld [vmem:[%s3547_s1 + $0xd4] ss:$8 sps:$4 sm:$0xff]   ;;  %v2687_v3 = vld [vmem:[%s3547_s1 + $0xd0] ss:$8 sps:$4 sm:$0xff]  }
  0x29   : > { %226 = vperm.xlu1 %2622, %v154_v21   ;;  %v168_v0 = vld [vmem:[%s2880_s25 + $0xb8] sm:$0xff]  ;;  %v167_v2 = vld [vmem:[%s2880_s25 + $0xb0] sm:$0xff]  ;;  %v2689_v5 = vld [vmem:[%s3547_s1 + $0xc4] ss:$8 sps:$4 sm:$0xff]  }
  0x2a   : > { %1409 = vmatpush1.bf16.msra.mxu0 %v2657_v37  ;;  %1682 = vmatpush1.bf16.msra.mxu1 %v2658_v38  ;;  %v2685_v1 = vld [vmem:[%s3547_s1 + $0x1d4] ss:$8 sps:$4 sm:$0xff]   ;;  %v2688_v4 = vld [vmem:[%s3547_s1 + $0x1d0] ss:$8 sps:$4 sm:$0xff]   ;;  %v170_v6 = vld [vmem:[%s2880_s25 + $0xc8] sm:$0xff] }
  0x2b   : > { %1410 = vmatprep.subr.bf16.mxu0 %v2659_v39  ;;  %1683 = vmatprep.subr.bf16.mxu1 %v2661_v42  ;;  %v2691_v7 = vld [vmem:[%s3547_s1 + $0x1c4] ss:$8 sps:$4 sm:$0xff]   ;;  %v2693_v9 = vld [vmem:[%s3547_s1 + $0xc0] ss:$8 sps:$4 sm:$0xff]   ;;  %v2695_v11 = vld [vmem:[%s3547_s1 + $0xb4] ss:$8 sps:$4 sm:$0xff]  }
  0x2c   : > { %229 = vperm.xlu0 %2621, %v155_v28   ;;  %v169_v8 = vld [vmem:[%s2880_s25 + $0xc0] sm:$0xff]  ;;  %v2697_v12 = vld [vmem:[%s3547_s1 + $0x1b4] ss:$8 sps:$4 sm:$0xff]   ;;  %v2699_v15 = vld [vmem:[%s3547_s1 + $0xb0] ss:$8 sps:$4 sm:$0xff]  }
  0x2d   : > { %232 = vperm.xlu1 %2622, %v156_v27   ;;  %v2694_v10 = vld [vmem:[%s3547_s1 + $0x1c0] ss:$8 sps:$4 sm:$0xff]   ;;  %v172_v13 = vld [vmem:[%s2880_s25 + $0xd8] sm:$0xff]  ;;  %v171_v14 = vld [vmem:[%s2880_s25 + $0xd0] sm:$0xff] }
  0x2e   : > { %1411 = vmatpush1.bf16.msra.mxu0 %v2663_v43  ;;  %1684 = vmatpush1.bf16.msra.mxu1 %v2664_v44  ;;  %v2700_v16 = vld [vmem:[%s3547_s1 + $0x1b0] ss:$8 sps:$4 sm:$0xff]   ;;  %v2701_v17 = vld [vmem:[%s3547_s1 + $0xa4] ss:$8 sps:$4 sm:$0xff]   ;;  %v2705_v21 = vld [vmem:[%s3547_s1 + $0xa0] ss:$8 sps:$4 sm:$0xff]  }
  0x2f   : > { %1412 = vmatprep.subr.bf16.mxu0 %v2665_v45  ;;  %1685 = vmatprep.subr.bf16.mxu1 %v2667_v47  ;;  %v2703_v18 = vld [vmem:[%s3547_s1 + $0x1a4] ss:$8 sps:$4 sm:$0xff]   ;;  %v2706_v22 = vld [vmem:[%s3547_s1 + $0x1a0] ss:$8 sps:$4 sm:$0xff]   ;;  %v2707_v23 = vld [vmem:[%s3547_s1 + $0x94] ss:$8 sps:$4 sm:$0xff]  }
  0x30   : > { %235 = vperm.xlu0 %2621, %v157_v36   ;;  %v174_v19 = vld [vmem:[%s2880_s25 + $0xe8] sm:$0xff]  ;;  %v173_v20 = vld [vmem:[%s2880_s25 + $0xe0] sm:$0xff]  ;;  %v2709_v24 = vld [vmem:[%s3547_s1 + $0x194] ss:$8 sps:$4 sm:$0xff]  }
  0x31   : > { %238 = vperm.xlu1 %2622, %v158_v35   ;;  %v176_v25 = vld [vmem:[%s2880_s25 + $0xf8] sm:$0xff]  ;;  %v175_v26 = vld [vmem:[%s2880_s25 + $0xf0] sm:$0xff]  ;;  %v2713_v29 = vld [vmem:[%s3547_s1 + $0x84] ss:$8 sps:$4 sm:$0xff]  }
  0x32   : > { %1413 = vmatpush1.bf16.msra.mxu0 %v2669_v49  ;;  %1686 = vmatpush1.bf16.msra.mxu1 %v2670_v50  ;;  %v2711_v27 = vld [vmem:[%s3547_s1 + $0x90] ss:$8 sps:$4 sm:$0xff]   ;;  %v2715_v30 = vld [vmem:[%s3547_s1 + $0x184] ss:$8 sps:$4 sm:$0xff]   ;;  %v2717_v33 = vld [vmem:[%s3547_s1 + $0x80] ss:$8 sps:$4 sm:$0xff]   ;;  %v193_v49 = vlaneseq }
  0x33   : > { %1414 = vmatprep.subr.bf16.mxu0 %v2671_v51  ;;  %1687 = vmatprep.subr.bf16.mxu1 %v2673_v53  ;;  %v2712_v28 = vld [vmem:[%s3547_s1 + $0x190] ss:$8 sps:$4 sm:$0xff]   ;;  %v178_v31 = vld [vmem:[%s2880_s25 + $0x108] sm:$0xff]  ;;  %v177_v32 = vld [vmem:[%s2880_s25 + $0x100] sm:$0xff] }
  0x34   : > { %241 = vperm.xlu0 %2621, %v159_v41   ;;  %v2718_v34 = vld [vmem:[%s3547_s1 + $0x180] ss:$8 sps:$4 sm:$0xff]   ;;  %v180_v35 = vld [vmem:[%s2880_s25 + $0x118] sm:$0xff]  ;;  %v179_v36 = vld [vmem:[%s2880_s25 + $0x110] sm:$0xff]  ;;  %v3095_v50 = vand.u32 127, %v193_v49 }
  0x35   : > { %244 = vperm.xlu1 %2622, %v160_v40   ;;  %v182_v37 = vld [vmem:[%s2880_s25 + $0x128] sm:$0xff]  ;;  %v181_v38 = vld [vmem:[%s2880_s25 + $0x120] sm:$0xff]  ;;  %v184_v39 = vld [vmem:[%s2880_s25 + $0x138] sm:$0xff] }
  0x36   : > { %1415 = vmatpush2.bf16.msra.mxu0 %v2675_v55  ;;  %1688 = vmatpush2.bf16.msra.mxu1 %v2676_v56  ;;  %v183_v40 = vld [vmem:[%s2880_s25 + $0x130] sm:$0xff]  ;;  %v186_v41 = vld [vmem:[%s2880_s25 + $0x148] sm:$0xff]  ;;  %v185_v42 = vld [vmem:[%s2880_s25 + $0x140] sm:$0xff]  ;;  %v3098_v53 = vadd.s32 128, %v3095_v50  ;;  %v3104_v56 = vadd.s32 256, %v3095_v50 }
  0x37   : > { %1416 = vmatprep.subr.bf16.mxu0 %v2677_v57  ;;  %1689 = vmatprep.subr.bf16.mxu1 %v2679_v59  ;;  %v188_v43 = vld [vmem:[%s2880_s25 + $0x158] sm:$0xff]  ;;  %v187_v44 = vld [vmem:[%s2880_s25 + $0x150] sm:$0xff]  ;;  %v190_v45 = vld [vmem:[%s2880_s25 + $0x168] sm:$0xff] }
  0x38   : > { %247 = vperm.xlu0 %2621, %v161_v48   ;;  %v192_v47 = vld [vmem:[%s2880_s25 + $0x178] sm:$0xff]  ;;  %v191_v48 = vld [vmem:[%s2880_s25 + $0x170] sm:$0xff] }
  0x39   : > { %250 = vperm.xlu1 %2622, %v162_v46   ;;  %v189_v46 = vld [vmem:[%s2880_s25 + $0x160] sm:$0xff]  ;;  %s135_s25 = sand.u32 1, %s2771_s10  }
  0x3a   : > { %1417 = vmatpush2.bf16.msra.mxu0 %v2681_v61  ;;  %1690 = vmatpush2.bf16.msra.mxu1 %v2682_v62  ;;  %s2577_s28 = smul.u32 768, %s135_s25  ;;  %s3506_s13 = scalar_lea.sflag [#allocation3], %s135_s25 }
  0x3b   : > { %1418 = vmatprep.subr.bf16.mxu0 %v2683_v63  ;;  %1691 = vmatprep.subr.bf16.mxu1 %v2685_v1 }
  0x3c   : > { %253 = vperm.xlu0 %2621, %v163_v54   ;;  %v3101_v54 = vadd.s32 384, %v3095_v50  ;;  %s3397_s21 = scalar_lea.vmem [#allocation2], %s2577_s28 }
  0x3d   : > { %256 = vperm.xlu1 %2622, %v164_v52   ;;  %s2055_s30 = sshll.u32 %s3397_s21, 4  ;;  %s3501_s30 = int_to_ptr.vmem [resolvable:$true] %s2055_s30 }
  0x3e   : > { %1419 = vmatpush2.bf16.msra.mxu0 %v2687_v3  ;;  %1692 = vmatpush2.bf16.msra.mxu1 %v2688_v4  ;;  %s2719_s6 = scalar_lea.vmem %s3501_s30, 12288  ;;  %p2726_p0 = scmp.lt.s32.totalorder %s3501_s30, %s2724_s8 }
  0x3f   : > { %1420 = vmatprep.subr.bf16.mxu0 %v2689_v5  ;;  %1693 = vmatprep.subr.bf16.mxu1 %v2691_v7  ;;  %p2720_p11 = scmp.ne.s32.totalorder %s3501_s30, %s2719_s6  ;;  %p2727_p1 = scmp.lt.s32.totalorder %s2725_s14, %s2719_s6 }
  0x40   : > { %259 = vperm.xlu0 %2621, %v165_v60  }
  0x41   : > { %262 = vperm.xlu1 %2622, %v166_v58   ;;  %v2782_v58 = vmov 1.0|1.0   ;;  %p2721_p12 = pnand %p2720_p11, %p2839_p5  ;;  %p2728_p2 = por %p2727_p1, %p2726_p0 }
  0x42   : > { %1421 = vmatpush2.bf16.msra.mxu0 %v2693_v9  ;;  %1694 = vmatpush2.bf16.msra.mxu1 %v2694_v10 }
  0x43   : > { %1422 = vmatprep.subr.bf16.mxu0 %v2695_v11  ;;  %1695 = vmatprep.subr.bf16.mxu1 %v2697_v12  ;;  %p2722_p13 = pneg %p2721_p12 }
  0x44   : > { %265 = vperm.xlu0 %2621, %v167_v2  }
  0x45   : > { %268 = vperm.xlu1 %2622, %v168_v0   ;;  %p2729_p3 = pnand %p2728_p2, %p2722_p13 }
  0x46   : > { %1423 = vmatpush2.bf16.msra.mxu0 %v2699_v15  ;;  %1696 = vmatpush2.bf16.msra.mxu1 %v2700_v16 }
  0x47   : > { %1424 = vmatprep.subr.bf16.mxu0 %v2701_v17  ;;  %1697 = vmatprep.subr.bf16.mxu1 %v2703_v18 }
  0x48   : > { %271 = vperm.xlu0 %2621, %v169_v8  }
  0x49   : > { %274 = vperm.xlu1 %2622, %v170_v6  }
  0x4a   : > { %1425 = vmatpush2.bf16.msra.mxu0 %v2705_v21  ;;  %1698 = vmatpush2.bf16.msra.mxu1 %v2706_v22 }
  0x4b   : > { %1426 = vmatprep.subr.bf16.mxu0 %v2707_v23  ;;  %1699 = vmatprep.subr.bf16.mxu1 %v2709_v24 }
  0x4c   : > { %277 = vperm.xlu0 %2621, %v171_v14  }
  0x4d   : > { %280 = vperm.xlu1 %2622, %v172_v13  }
  0x4e   : > { %1427 = vmatpush2.bf16.msra.mxu0 %v2711_v27  ;;  %1700 = vmatpush2.bf16.msra.mxu1 %v2712_v28 }
  0x4f   : > { %1428 = vmatprep.subr.bf16.mxu0 %v2713_v29  ;;  %1701 = vmatprep.subr.bf16.mxu1 %v2715_v30 }
  0x50   : > { %283 = vperm.xlu0 %2621, %v173_v20  }
  0x51   : > { %286 = vperm.xlu1 %2622, %v174_v19  }
  0x52   : > { %1429 = vmatpush2.bf16.msra.mxu0 %v2717_v33  ;;  %1702 = vmatpush2.bf16.msra.mxu1 %v2718_v34 }
  0x54   : > { %289 = vperm.xlu0 %2621, %v175_v26  }
  0x55   : > { %292 = vperm.xlu1 %2622, %v176_v25  }
  0x58   : > { %295 = vperm.xlu0 %2621, %v177_v32  }
  0x59   : > { %298 = vperm.xlu1 %2622, %v178_v31  }
  0x5c   : > { %301 = vperm.xlu0 %2621, %v179_v36  }
  0x5d   : > { %304 = vperm.xlu1 %2622, %v180_v35  }
  0x60   : > { %307 = vperm.xlu0 %2621, %v181_v38  }
  0x61   : > { %310 = vperm.xlu1 %2622, %v182_v37  }
  0x64   : > { %313 = vperm.xlu0 %2621, %v183_v40  }
  0x65   : > { %316 = vperm.xlu1 %2622, %v184_v39  }
  0x68   : > { %319 = vperm.xlu0 %2621, %v185_v42  }
  0x69   : > { %322 = vperm.xlu1 %2622, %v186_v41  }
  0x6c   : > { %325 = vperm.xlu0 %2621, %v187_v44  }
  0x6d   : > { %328 = vperm.xlu1 %2622, %v188_v43  }
  0x70   : > { %331 = vperm.xlu0 %2621, %v189_v46  }
  0x71   : > { %334 = vperm.xlu1 %2622, %v190_v45  }
  0x74   : > { %337 = vperm.xlu0 %2621, %v191_v48  }
  0x75   : > { %340 = vperm.xlu1 %2622, %v192_v47  }
  0x93   : > { %v200_v52 = vpop.permute.xlu0 %199 }
  0x94   : > { %v206_v51 = vpop.permute.xlu1 %205  ;;  %vm343_vm0 = vcmp.eq.s32.totalorder %v3098_v53, %v200_v52  ;;  %vm345_vm5 = vcmp.eq.s32.totalorder %v3101_v54, %v200_v52  ;;  %vm342_vm8 = vcmp.eq.s32.totalorder %v3095_v50, %v200_v52  ;;  %vm344_vm12 = vcmp.eq.s32.totalorder %v3104_v56, %v200_v52 }
  0x95   : > { %vm351_vm9 = vcmp.eq.s32.totalorder %v3098_v53, %v206_v51  ;;  %vm353_vm13 = vcmp.eq.s32.totalorder %v3101_v54, %v206_v51 }
  0x97   : > { %v203_v55 = vpop.permute.xlu0 %202 }
  0x98   : > { %v209_v57 = vpop.permute.xlu1 %208  ;;  %vm347_vm1 = vcmp.eq.s32.totalorder %v3098_v53, %v203_v55  ;;  %vm349_vm2 = vcmp.eq.s32.totalorder %v3101_v54, %v203_v55  ;;  %vm346_vm3 = vcmp.eq.s32.totalorder %v3095_v50, %v203_v55  ;;  %vm348_vm6 = vcmp.eq.s32.totalorder %v3104_v56, %v203_v55 }
  0x99   : > { %vm2378_vm4 = vmpackc.low %vm347_vm1, %vm343_vm0  ;;  %vm355_vm10 = vcmp.eq.s32.totalorder %v3098_v53, %v209_v57  ;;  %vm357_vm14 = vcmp.eq.s32.totalorder %v3101_v54, %v209_v57 }
  0x9a   : > { %2379 = vmatprep.mubr.msk.bf16.mxu0 %vm2378_vm4, %v2782_v58  ;;  %vm2474_vm7 = vmpackc.low %vm349_vm2, %vm345_vm5  ;;  %vm350_vm2 = vcmp.eq.s32.totalorder %v3095_v50, %v206_v51  ;;  %vm352_vm4 = vcmp.eq.s32.totalorder %v3104_v56, %v206_v51  ;;  %vm356_vm5 = vcmp.eq.s32.totalorder %v3104_v56, %v209_v57 }
  0x9b   : > { %2475 = vmatprep.mubr.msk.bf16.mxu1 %vm2474_vm7, %v2782_v58  ;;  %vm2380_vm11 = vmpackc.low %vm346_vm3, %vm342_vm8  ;;  %v212_v60 = vpop.permute.xlu0 %211  ;;  %vm354_vm3 = vcmp.eq.s32.totalorder %v3095_v50, %v209_v57 }
  0x9c   : > { %2381 = vmatmul.mubr.msk.bf16.vlgmr.msra.gmra.mxu0 %vm2380_vm11, %v2782_v58  ;;  %vm2476_vm15 = vmpackc.low %vm348_vm6, %vm344_vm12  ;;  %v215_v59 = vpop.permute.xlu1 %214  ;;  %vm359_vm6 = vcmp.eq.s32.totalorder %v3098_v53, %v212_v60 }
  0x9d   : > { %2477 = vmatmul.mubr.msk.bf16.vlgmr.msra.gmra.mxu1 %vm2476_vm15, %v2782_v58  ;;  %vm2382_vm0 = vmpackc.low %vm355_vm10, %vm351_vm9  ;;  %vm363_vm7 = vcmp.eq.s32.totalorder %v3098_v53, %v215_v59  ;;  %vm361_vm9 = vcmp.eq.s32.totalorder %v3101_v54, %v212_v60  ;;  %vm365_vm10 = vcmp.eq.s32.totalorder %v3101_v54, %v215_v59  ;;  %vm362_vm15 = vcmp.eq.s32.totalorder %v3095_v50, %v215_v59 }
  0x9e   : > { %2383 = vmatprep.mubr.msk.bf16.mxu0 %vm2382_vm0, %v2782_v58  ;;  %vm2478_vm1 = vmpackc.low %vm357_vm14, %vm353_vm13  ;;  %vm358_vm14 = vcmp.eq.s32.totalorder %v3095_v50, %v212_v60  ;;  %vm360_vm0 = vcmp.eq.s32.totalorder %v3104_v56, %v212_v60 }
  0x9f   : > { %2479 = vmatprep.mubr.msk.bf16.mxu1 %vm2478_vm1, %v2782_v58  ;;  %vm2384_vm8 = vmpackc.low %vm354_vm3, %vm350_vm2  ;;  %v218_v62 = vpop.permute.xlu0 %217  ;;  %vm364_vm1 = vcmp.eq.s32.totalorder %v3104_v56, %v215_v59 }
  0xa0   : > { %vm2480_vm11 = vmpackc.low %vm356_vm5, %vm352_vm4  ;;  %v221_v61 = vpop.permute.xlu1 %220  ;;  %vm367_vm2 = vcmp.eq.s32.totalorder %v3098_v53, %v218_v62  ;;  %vm369_vm5 = vcmp.eq.s32.totalorder %v3101_v54, %v218_v62 }
  0xa1   : > { %vm2386_vm12 = vmpackc.low %vm363_vm7, %vm359_vm6  ;;  %vm371_vm3 = vcmp.eq.s32.totalorder %v3098_v53, %v221_v61  ;;  %vm373_vm6 = vcmp.eq.s32.totalorder %v3101_v54, %v221_v61 }
  0xa2   : > { %vm2482_vm13 = vmpackc.low %vm365_vm10, %vm361_vm9  ;;  %vm366_vm10 = vcmp.eq.s32.totalorder %v3095_v50, %v218_v62 }
  0xa3   : > { %vm2388_vm4 = vmpackc.low %vm362_vm15, %vm358_vm14  ;;  %v224_v0 = vpop.permute.xlu0 %223 }
  0xa4   : > { %2385 = vmatmul.mubr.msk.bf16.gmra.mxu0 %vm2384_vm8, %v2782_v58  ;;  %vm2484_vm7 = vmpackc.low %vm364_vm1, %vm360_vm0  ;;  %v227_v63 = vpop.permute.xlu1 %226  ;;  %vm375_vm14 = vcmp.eq.s32.totalorder %v3098_v53, %v224_v0  ;;  %vm377_vm1 = vcmp.eq.s32.totalorder %v3101_v54, %v224_v0 }
  0xa5   : > { %2481 = vmatmul.mubr.msk.bf16.gmra.mxu1 %vm2480_vm11, %v2782_v58  ;;  %2387 = vmatprep.mubr.msk.bf16.mxu0 %vm2386_vm12, %v2782_v58  ;;  %vm2390_vm8 = vmpackc.low %vm371_vm3, %vm367_vm2  ;;  %vm370_vm11 = vcmp.eq.s32.totalorder %v3095_v50, %v221_v61  ;;  %vm368_vm12 = vcmp.eq.s32.totalorder %v3104_v56, %v218_v62  ;;  %vm379_vm15 = vcmp.eq.s32.totalorder %v3098_v53, %v227_v63 }
  0xa6   : > { %2483 = vmatprep.mubr.msk.bf16.mxu1 %vm2482_vm13, %v2782_v58  ;;  %vm2486_vm9 = vmpackc.low %vm373_vm6, %vm369_vm5  ;;  %vm372_vm13 = vcmp.eq.s32.totalorder %v3104_v56, %v221_v61  ;;  %vm381_vm2 = vcmp.eq.s32.totalorder %v3101_v54, %v227_v63  ;;  %vm374_vm6 = vcmp.eq.s32.totalorder %v3095_v50, %v224_v0 }
  0xa7   : > { %vm2392_vm0 = vmpackc.low %vm370_vm11, %vm366_vm10  ;;  %v230_v2 = vpop.permute.xlu0 %229 }
  0xa8   : > { %vm2488_vm3 = vmpackc.low %vm372_vm13, %vm368_vm12  ;;  %v233_v1 = vpop.permute.xlu1 %232  ;;  %vm383_vm10 = vcmp.eq.s32.totalorder %v3098_v53, %v230_v2  ;;  %vm385_vm13 = vcmp.eq.s32.totalorder %v3101_v54, %v230_v2 }
  0xa9   : > { %vm2490_vm5 = vmpackc.low %vm381_vm2, %vm377_vm1  ;;  %vm387_vm11 = vcmp.eq.s32.totalorder %v3098_v53, %v233_v1  ;;  %vm382_vm2 = vcmp.eq.s32.totalorder %v3095_v50, %v230_v2 }
  0xab   : > { %v236_v4 = vpop.permute.xlu0 %235 }
  0xac   : > { %2389 = vmatmul.mubr.msk.bf16.gmra.mxu0 %vm2388_vm4, %v2782_v58  ;;  %vm2394_vm4 = vmpackc.low %vm379_vm15, %vm375_vm14  ;;  %vm389_vm14 = vcmp.eq.s32.totalorder %v3101_v54, %v233_v1  ;;  %v239_v3 = vpop.permute.xlu1 %238 }
  0xad   : > { %2485 = vmatmul.mubr.msk.bf16.gmra.mxu1 %vm2484_vm7, %v2782_v58  ;;  %2391 = vmatprep.mubr.msk.bf16.mxu0 %vm2390_vm8, %v2782_v58  ;;  %vm378_vm7 = vcmp.eq.s32.totalorder %v3095_v50, %v227_v63  ;;  %vm376_vm8 = vcmp.eq.s32.totalorder %v3104_v56, %v224_v0  ;;  %vm2494_vm1 = vmpackc.low %vm389_vm14, %vm385_vm13  ;;  %vm390_vm14 = vcmp.eq.s32.totalorder %v3095_v50, %v236_v4 }
  0xae   : > { %2487 = vmatprep.mubr.msk.bf16.mxu1 %vm2486_vm9, %v2782_v58  ;;  %vm380_vm9 = vcmp.eq.s32.totalorder %v3104_v56, %v227_v63  ;;  %vm2396_vm12 = vmpackc.low %vm378_vm7, %vm374_vm6  ;;  %vm391_vm6 = vcmp.eq.s32.totalorder %v3098_v53, %v236_v4  ;;  %vm395_vm7 = vcmp.eq.s32.totalorder %v3098_v53, %v239_v3 }
  0xaf   : > { %vm2492_vm15 = vmpackc.low %vm380_vm9, %vm376_vm8  ;;  %vm393_vm9 = vcmp.eq.s32.totalorder %v3101_v54, %v236_v4  ;;  %v242_v6 = vpop.permute.xlu0 %241 }
  0xb0   : > { %v245_v5 = vpop.permute.xlu1 %244 }
  0xb3   : > { %v248_v8 = vpop.permute.xlu0 %247 }
  0xb4   : > { %2393 = vmatmul.mubr.msk.bf16.gmra.mxu0 %vm2392_vm0, %v2782_v58  ;;  %vm2398_vm0 = vmpackc.low %vm387_vm11, %vm383_vm10  ;;  %vm397_vm10 = vcmp.eq.s32.totalorder %v3101_v54, %v239_v3  ;;  %v251_v7 = vpop.permute.xlu1 %250 }
  0xb5   : > { %2489 = vmatmul.mubr.msk.bf16.gmra.mxu1 %vm2488_vm3, %v2782_v58  ;;  %2395 = vmatprep.mubr.msk.bf16.mxu0 %vm2394_vm4, %v2782_v58  ;;  %vm386_vm3 = vcmp.eq.s32.totalorder %v3095_v50, %v233_v1  ;;  %vm384_vm4 = vcmp.eq.s32.totalorder %v3104_v56, %v230_v2  ;;  %vm2498_vm13 = vmpackc.low %vm397_vm10, %vm393_vm9  ;;  %vm398_vm10 = vcmp.eq.s32.totalorder %v3095_v50, %v242_v6 }
  0xb6   : > { %2491 = vmatprep.mubr.msk.bf16.mxu1 %vm2490_vm5, %v2782_v58  ;;  %vm388_vm5 = vcmp.eq.s32.totalorder %v3104_v56, %v233_v1  ;;  %vm2400_vm8 = vmpackc.low %vm386_vm3, %vm382_vm2  ;;  %vm399_vm2 = vcmp.eq.s32.totalorder %v3098_v53, %v242_v6  ;;  %vm403_vm3 = vcmp.eq.s32.totalorder %v3098_v53, %v245_v5 }
  0xb7   : > { %vm2496_vm11 = vmpackc.low %vm388_vm5, %vm384_vm4  ;;  %vm401_vm5 = vcmp.eq.s32.totalorder %v3101_v54, %v242_v6  ;;  %v254_v10 = vpop.permute.xlu0 %253 }
  0xb8   : > { %v257_v9 = vpop.permute.xlu1 %256 }
  0xbb   : > { %v260_v12 = vpop.permute.xlu0 %259 }
  0xbc   : > { %2397 = vmatmul.mubr.msk.bf16.gmra.mxu0 %vm2396_vm12, %v2782_v58  ;;  %vm2402_vm12 = vmpackc.low %vm395_vm7, %vm391_vm6  ;;  %vm405_vm6 = vcmp.eq.s32.totalorder %v3101_v54, %v245_v5  ;;  %v263_v11 = vpop.permute.xlu1 %262 }
  0xbd   : > { %2493 = vmatmul.mubr.msk.bf16.gmra.mxu1 %vm2492_vm15, %v2782_v58  ;;  %2399 = vmatprep.mubr.msk.bf16.mxu0 %vm2398_vm0, %v2782_v58  ;;  %vm394_vm15 = vcmp.eq.s32.totalorder %v3095_v50, %v239_v3  ;;  %vm392_vm0 = vcmp.eq.s32.totalorder %v3104_v56, %v236_v4  ;;  %vm2502_vm9 = vmpackc.low %vm405_vm6, %vm401_vm5  ;;  %vm406_vm6 = vcmp.eq.s32.totalorder %v3095_v50, %v248_v8 }
  0xbe   : > { %2495 = vmatprep.mubr.msk.bf16.mxu1 %vm2494_vm1, %v2782_v58  ;;  %vm396_vm1 = vcmp.eq.s32.totalorder %v3104_v56, %v239_v3  ;;  %vm2404_vm4 = vmpackc.low %vm394_vm15, %vm390_vm14  ;;  %vm407_vm14 = vcmp.eq.s32.totalorder %v3098_v53, %v248_v8  ;;  %vm411_vm15 = vcmp.eq.s32.totalorder %v3098_v53, %v251_v7 }
  0xbf   : > { %vm2500_vm7 = vmpackc.low %vm396_vm1, %vm392_vm0  ;;  %vm409_vm1 = vcmp.eq.s32.totalorder %v3101_v54, %v248_v8  ;;  %v266_v14 = vpop.permute.xlu0 %265 }
  0xc0   : > { %v269_v13 = vpop.permute.xlu1 %268 }
  0xc3   : > { %v272_v16 = vpop.permute.xlu0 %271 }
  0xc4   : > { %2401 = vmatmul.mubr.msk.bf16.gmra.mxu0 %vm2400_vm8, %v2782_v58  ;;  %vm2406_vm8 = vmpackc.low %vm403_vm3, %vm399_vm2  ;;  %vm413_vm2 = vcmp.eq.s32.totalorder %v3101_v54, %v251_v7  ;;  %v275_v15 = vpop.permute.xlu1 %274 }
  0xc5   : > { %2497 = vmatmul.mubr.msk.bf16.gmra.mxu1 %vm2496_vm11, %v2782_v58  ;;  %2403 = vmatprep.mubr.msk.bf16.mxu0 %vm2402_vm12, %v2782_v58  ;;  %vm402_vm11 = vcmp.eq.s32.totalorder %v3095_v50, %v245_v5  ;;  %vm400_vm12 = vcmp.eq.s32.totalorder %v3104_v56, %v242_v6  ;;  %vm2506_vm5 = vmpackc.low %vm413_vm2, %vm409_vm1  ;;  %vm414_vm2 = vcmp.eq.s32.totalorder %v3095_v50, %v254_v10 }
  0xc6   : > { %2499 = vmatprep.mubr.msk.bf16.mxu1 %vm2498_vm13, %v2782_v58  ;;  %vm404_vm13 = vcmp.eq.s32.totalorder %v3104_v56, %v245_v5  ;;  %vm2408_vm0 = vmpackc.low %vm402_vm11, %vm398_vm10  ;;  %vm415_vm10 = vcmp.eq.s32.totalorder %v3098_v53, %v254_v10  ;;  %vm419_vm11 = vcmp.eq.s32.totalorder %v3098_v53, %v257_v9 }
  0xc7   : > { %vm2504_vm3 = vmpackc.low %vm404_vm13, %vm400_vm12  ;;  %vm417_vm13 = vcmp.eq.s32.totalorder %v3101_v54, %v254_v10  ;;  %v278_v18 = vpop.permute.xlu0 %277 }
  0xc8   : > { %v281_v17 = vpop.permute.xlu1 %280 }
  0xcb   : > { %v284_v20 = vpop.permute.xlu0 %283 }
  0xcc   : > { %2405 = vmatmul.mubr.msk.bf16.gmra.mxu0 %vm2404_vm4, %v2782_v58  ;;  %vm2410_vm4 = vmpackc.low %vm411_vm15, %vm407_vm14  ;;  %vm421_vm14 = vcmp.eq.s32.totalorder %v3101_v54, %v257_v9  ;;  %v287_v19 = vpop.permute.xlu1 %286 }
  0xcd   : > { %2501 = vmatmul.mubr.msk.bf16.gmra.mxu1 %vm2500_vm7, %v2782_v58  ;;  %2407 = vmatprep.mubr.msk.bf16.mxu0 %vm2406_vm8, %v2782_v58  ;;  %vm410_vm7 = vcmp.eq.s32.totalorder %v3095_v50, %v251_v7  ;;  %vm408_vm8 = vcmp.eq.s32.totalorder %v3104_v56, %v248_v8  ;;  %vm2510_vm1 = vmpackc.low %vm421_vm14, %vm417_vm13  ;;  %vm422_vm14 = vcmp.eq.s32.totalorder %v3095_v50, %v260_v12 }
  0xce   : > { %2503 = vmatprep.mubr.msk.bf16.mxu1 %vm2502_vm9, %v2782_v58  ;;  %vm412_vm9 = vcmp.eq.s32.totalorder %v3104_v56, %v251_v7  ;;  %vm2412_vm12 = vmpackc.low %vm410_vm7, %vm406_vm6  ;;  %vm423_vm6 = vcmp.eq.s32.totalorder %v3098_v53, %v260_v12  ;;  %vm427_vm7 = vcmp.eq.s32.totalorder %v3098_v53, %v263_v11 }
  0xcf   : > { %vm2508_vm15 = vmpackc.low %vm412_vm9, %vm408_vm8  ;;  %vm425_vm9 = vcmp.eq.s32.totalorder %v3101_v54, %v260_v12  ;;  %v290_v22 = vpop.permute.xlu0 %289 }
  0xd0   : > { %v293_v21 = vpop.permute.xlu1 %292 }
  0xd3   : > { %v296_v24 = vpop.permute.xlu0 %295 }
  0xd4   : > { %2409 = vmatmul.mubr.msk.bf16.gmra.mxu0 %vm2408_vm0, %v2782_v58  ;;  %vm2414_vm0 = vmpackc.low %vm419_vm11, %vm415_vm10  ;;  %vm429_vm10 = vcmp.eq.s32.totalorder %v3101_v54, %v263_v11  ;;  %v299_v23 = vpop.permute.xlu1 %298 }
  0xd5   : > { %2505 = vmatmul.mubr.msk.bf16.gmra.mxu1 %vm2504_vm3, %v2782_v58  ;;  %2411 = vmatprep.mubr.msk.bf16.mxu0 %vm2410_vm4, %v2782_v58  ;;  %vm418_vm3 = vcmp.eq.s32.totalorder %v3095_v50, %v257_v9  ;;  %vm416_vm4 = vcmp.eq.s32.totalorder %v3104_v56, %v254_v10  ;;  %vm2514_vm13 = vmpackc.low %vm429_vm10, %vm425_vm9  ;;  %vm430_vm10 = vcmp.eq.s32.totalorder %v3095_v50, %v266_v14 }
  0xd6   : > { %2507 = vmatprep.mubr.msk.bf16.mxu1 %vm2506_vm5, %v2782_v58  ;;  %vm420_vm5 = vcmp.eq.s32.totalorder %v3104_v56, %v257_v9  ;;  %vm2416_vm8 = vmpackc.low %vm418_vm3, %vm414_vm2  ;;  %vm431_vm2 = vcmp.eq.s32.totalorder %v3098_v53, %v266_v14  ;;  %vm435_vm3 = vcmp.eq.s32.totalorder %v3098_v53, %v269_v13 }
  0xd7   : > { %vm2512_vm11 = vmpackc.low %vm420_vm5, %vm416_vm4  ;;  %vm433_vm5 = vcmp.eq.s32.totalorder %v3101_v54, %v266_v14  ;;  %v302_v26 = vpop.permute.xlu0 %301 }
  0xd8   : > { %v305_v25 = vpop.permute.xlu1 %304 }
  0xdb   : > { %v308_v28 = vpop.permute.xlu0 %307 }
  0xdc   : > { %2413 = vmatmul.mubr.msk.bf16.gmra.mxu0 %vm2412_vm12, %v2782_v58  ;;  %vm2418_vm12 = vmpackc.low %vm427_vm7, %vm423_vm6  ;;  %vm437_vm6 = vcmp.eq.s32.totalorder %v3101_v54, %v269_v13  ;;  %v311_v27 = vpop.permute.xlu1 %310 }
  0xdd   : > { %2509 = vmatmul.mubr.msk.bf16.gmra.mxu1 %vm2508_vm15, %v2782_v58  ;;  %2415 = vmatprep.mubr.msk.bf16.mxu0 %vm2414_vm0, %v2782_v58  ;;  %vm426_vm15 = vcmp.eq.s32.totalorder %v3095_v50, %v263_v11  ;;  %vm424_vm0 = vcmp.eq.s32.totalorder %v3104_v56, %v260_v12  ;;  %vm2518_vm9 = vmpackc.low %vm437_vm6, %vm433_vm5  ;;  %vm438_vm6 = vcmp.eq.s32.totalorder %v3095_v50, %v272_v16 }
  0xde   : > { %2511 = vmatprep.mubr.msk.bf16.mxu1 %vm2510_vm1, %v2782_v58  ;;  %vm428_vm1 = vcmp.eq.s32.totalorder %v3104_v56, %v263_v11  ;;  %vm2420_vm4 = vmpackc.low %vm426_vm15, %vm422_vm14  ;;  %vm439_vm14 = vcmp.eq.s32.totalorder %v3098_v53, %v272_v16  ;;  %vm443_vm15 = vcmp.eq.s32.totalorder %v3098_v53, %v275_v15 }
  0xdf   : > { %vm2516_vm7 = vmpackc.low %vm428_vm1, %vm424_vm0  ;;  %vm441_vm1 = vcmp.eq.s32.totalorder %v3101_v54, %v272_v16  ;;  %v314_v30 = vpop.permute.xlu0 %313 }
  0xe0   : > { %v317_v29 = vpop.permute.xlu1 %316 }
  0xe3   : > { %v320_v32 = vpop.permute.xlu0 %319 }
  0xe4   : > { %2417 = vmatmul.mubr.msk.bf16.gmra.mxu0 %vm2416_vm8, %v2782_v58  ;;  %vm2422_vm8 = vmpackc.low %vm435_vm3, %vm431_vm2  ;;  %vm445_vm2 = vcmp.eq.s32.totalorder %v3101_v54, %v275_v15  ;;  %v323_v31 = vpop.permute.xlu1 %322 }
  0xe5   : > { %2513 = vmatmul.mubr.msk.bf16.gmra.mxu1 %vm2512_vm11, %v2782_v58  ;;  %2419 = vmatprep.mubr.msk.bf16.mxu0 %vm2418_vm12, %v2782_v58  ;;  %vm434_vm11 = vcmp.eq.s32.totalorder %v3095_v50, %v269_v13  ;;  %vm432_vm12 = vcmp.eq.s32.totalorder %v3104_v56, %v266_v14  ;;  %vm2522_vm5 = vmpackc.low %vm445_vm2, %vm441_vm1  ;;  %vm446_vm2 = vcmp.eq.s32.totalorder %v3095_v50, %v278_v18 }
  0xe6   : > { %2515 = vmatprep.mubr.msk.bf16.mxu1 %vm2514_vm13, %v2782_v58  ;;  %vm436_vm13 = vcmp.eq.s32.totalorder %v3104_v56, %v269_v13  ;;  %vm2424_vm0 = vmpackc.low %vm434_vm11, %vm430_vm10  ;;  %vm447_vm10 = vcmp.eq.s32.totalorder %v3098_v53, %v278_v18  ;;  %vm451_vm11 = vcmp.eq.s32.totalorder %v3098_v53, %v281_v17 }
  0xe7   : > { %vm2520_vm3 = vmpackc.low %vm436_vm13, %vm432_vm12  ;;  %vm449_vm13 = vcmp.eq.s32.totalorder %v3101_v54, %v278_v18  ;;  %v326_v34 = vpop.permute.xlu0 %325 }
  0xe8   : > { %v329_v33 = vpop.permute.xlu1 %328 }
  0xeb   : > { %v332_v36 = vpop.permute.xlu0 %331 }
  0xec   : > { %2421 = vmatmul.mubr.msk.bf16.gmra.mxu0 %vm2420_vm4, %v2782_v58  ;;  %vm2426_vm4 = vmpackc.low %vm443_vm15, %vm439_vm14  ;;  %vm453_vm14 = vcmp.eq.s32.totalorder %v3101_v54, %v281_v17  ;;  %v335_v35 = vpop.permute.xlu1 %334 }
  0xed   : > { %2517 = vmatmul.mubr.msk.bf16.gmra.mxu1 %vm2516_vm7, %v2782_v58  ;;  %2423 = vmatprep.mubr.msk.bf16.mxu0 %vm2422_vm8, %v2782_v58  ;;  %vm442_vm7 = vcmp.eq.s32.totalorder %v3095_v50, %v275_v15  ;;  %vm440_vm8 = vcmp.eq.s32.totalorder %v3104_v56, %v272_v16  ;;  %vm2526_vm1 = vmpackc.low %vm453_vm14, %vm449_vm13  ;;  %vm454_vm14 = vcmp.eq.s32.totalorder %v3095_v50, %v284_v20 }
  0xee   : > { %2519 = vmatprep.mubr.msk.bf16.mxu1 %vm2518_vm9, %v2782_v58  ;;  %vm444_vm9 = vcmp.eq.s32.totalorder %v3104_v56, %v275_v15  ;;  %vm2428_vm12 = vmpackc.low %vm442_vm7, %vm438_vm6  ;;  %vm455_vm6 = vcmp.eq.s32.totalorder %v3098_v53, %v284_v20  ;;  %vm459_vm7 = vcmp.eq.s32.totalorder %v3098_v53, %v287_v19 }
  0xef   : > { %vm2524_vm15 = vmpackc.low %vm444_vm9, %vm440_vm8  ;;  %vm457_vm9 = vcmp.eq.s32.totalorder %v3101_v54, %v284_v20  ;;  %v338_v38 = vpop.permute.xlu0 %337 }
  0xf0   : > { %v341_v37 = vpop.permute.xlu1 %340 }
  0xf4   : > { %2425 = vmatmul.mubr.msk.bf16.gmra.mxu0 %vm2424_vm0, %v2782_v58  ;;  %vm2430_vm0 = vmpackc.low %vm451_vm11, %vm447_vm10  ;;  %vm461_vm10 = vcmp.eq.s32.totalorder %v3101_v54, %v287_v19 }
  0xf5   : > { %2521 = vmatmul.mubr.msk.bf16.gmra.mxu1 %vm2520_vm3, %v2782_v58  ;;  %2427 = vmatprep.mubr.msk.bf16.mxu0 %vm2426_vm4, %v2782_v58  ;;  %vm450_vm3 = vcmp.eq.s32.totalorder %v3095_v50, %v281_v17  ;;  %vm448_vm4 = vcmp.eq.s32.totalorder %v3104_v56, %v278_v18  ;;  %vm2530_vm13 = vmpackc.low %vm461_vm10, %vm457_vm9  ;;  %vm462_vm10 = vcmp.eq.s32.totalorder %v3095_v50, %v290_v22 }
  0xf6   : > { %2523 = vmatprep.mubr.msk.bf16.mxu1 %vm2522_vm5, %v2782_v58  ;;  %vm452_vm5 = vcmp.eq.s32.totalorder %v3104_v56, %v281_v17  ;;  %vm2432_vm8 = vmpackc.low %vm450_vm3, %vm446_vm2  ;;  %vm463_vm2 = vcmp.eq.s32.totalorder %v3098_v53, %v290_v22  ;;  %vm467_vm3 = vcmp.eq.s32.totalorder %v3098_v53, %v293_v21 }
  0xf7   : > { %vm2528_vm11 = vmpackc.low %vm452_vm5, %vm448_vm4  ;;  %vm465_vm5 = vcmp.eq.s32.totalorder %v3101_v54, %v290_v22 }
  0xfc   : > { %2429 = vmatmul.mubr.msk.bf16.gmra.mxu0 %vm2428_vm12, %v2782_v58  ;;  %vm2434_vm12 = vmpackc.low %vm459_vm7, %vm455_vm6  ;;  %vm469_vm6 = vcmp.eq.s32.totalorder %v3101_v54, %v293_v21 }
  0xfd   : > { %2525 = vmatmul.mubr.msk.bf16.gmra.mxu1 %vm2524_vm15, %v2782_v58  ;;  %2431 = vmatprep.mubr.msk.bf16.mxu0 %vm2430_vm0, %v2782_v58  ;;  %vm458_vm15 = vcmp.eq.s32.totalorder %v3095_v50, %v287_v19  ;;  %vm456_vm0 = vcmp.eq.s32.totalorder %v3104_v56, %v284_v20  ;;  %vm2534_vm9 = vmpackc.low %vm469_vm6, %vm465_vm5  ;;  %vm470_vm6 = vcmp.eq.s32.totalorder %v3095_v50, %v296_v24 }
  0xfe   : > { %2527 = vmatprep.mubr.msk.bf16.mxu1 %vm2526_vm1, %v2782_v58  ;;  %vm460_vm1 = vcmp.eq.s32.totalorder %v3104_v56, %v287_v19  ;;  %vm2436_vm4 = vmpackc.low %vm458_vm15, %vm454_vm14  ;;  %vm471_vm14 = vcmp.eq.s32.totalorder %v3098_v53, %v296_v24  ;;  %vm475_vm15 = vcmp.eq.s32.totalorder %v3098_v53, %v299_v23 }
  0xff   : > { %vm2532_vm7 = vmpackc.low %vm460_vm1, %vm456_vm0  ;;  %vm473_vm1 = vcmp.eq.s32.totalorder %v3101_v54, %v296_v24 }
 0x104   : > { %2433 = vmatmul.mubr.msk.bf16.gmra.mxu0 %vm2432_vm8, %v2782_v58  ;;  %vm2438_vm8 = vmpackc.low %vm467_vm3, %vm463_vm2  ;;  %vm477_vm2 = vcmp.eq.s32.totalorder %v3101_v54, %v299_v23 }
 0x105   : > { %2529 = vmatmul.mubr.msk.bf16.gmra.mxu1 %vm2528_vm11, %v2782_v58  ;;  %2435 = vmatprep.mubr.msk.bf16.mxu0 %vm2434_vm12, %v2782_v58  ;;  %vm466_vm11 = vcmp.eq.s32.totalorder %v3095_v50, %v293_v21  ;;  %vm464_vm12 = vcmp.eq.s32.totalorder %v3104_v56, %v290_v22  ;;  %vm2538_vm5 = vmpackc.low %vm477_vm2, %vm473_vm1  ;;  %vm478_vm2 = vcmp.eq.s32.totalorder %v3095_v50, %v302_v26 }
 0x106   : > { %2531 = vmatprep.mubr.msk.bf16.mxu1 %vm2530_vm13, %v2782_v58  ;;  %vm468_vm13 = vcmp.eq.s32.totalorder %v3104_v56, %v293_v21  ;;  %vm2440_vm0 = vmpackc.low %vm466_vm11, %vm462_vm10  ;;  %vm479_vm10 = vcmp.eq.s32.totalorder %v3098_v53, %v302_v26  ;;  %vm483_vm11 = vcmp.eq.s32.totalorder %v3098_v53, %v305_v25 }
 0x107   : > { %vm2536_vm3 = vmpackc.low %vm468_vm13, %vm464_vm12  ;;  %vm481_vm13 = vcmp.eq.s32.totalorder %v3101_v54, %v302_v26 }
 0x10c   : > { %2437 = vmatmul.mubr.msk.bf16.gmra.mxu0 %vm2436_vm4, %v2782_v58  ;;  %vm2442_vm4 = vmpackc.low %vm475_vm15, %vm471_vm14  ;;  %vm485_vm14 = vcmp.eq.s32.totalorder %v3101_v54, %v305_v25 }
 0x10d   : > { %2533 = vmatmul.mubr.msk.bf16.gmra.mxu1 %vm2532_vm7, %v2782_v58  ;;  %2439 = vmatprep.mubr.msk.bf16.mxu0 %vm2438_vm8, %v2782_v58  ;;  %vm474_vm7 = vcmp.eq.s32.totalorder %v3095_v50, %v299_v23  ;;  %vm472_vm8 = vcmp.eq.s32.totalorder %v3104_v56, %v296_v24  ;;  %vm2542_vm1 = vmpackc.low %vm485_vm14, %vm481_vm13  ;;  %vm486_vm14 = vcmp.eq.s32.totalorder %v3095_v50, %v308_v28 }
 0x10e   : > { %2535 = vmatprep.mubr.msk.bf16.mxu1 %vm2534_vm9, %v2782_v58  ;;  %vm476_vm9 = vcmp.eq.s32.totalorder %v3104_v56, %v299_v23  ;;  %vm2444_vm12 = vmpackc.low %vm474_vm7, %vm470_vm6  ;;  %vm487_vm6 = vcmp.eq.s32.totalorder %v3098_v53, %v308_v28  ;;  %vm491_vm7 = vcmp.eq.s32.totalorder %v3098_v53, %v311_v27 }
 0x10f   : > { %vm2540_vm15 = vmpackc.low %vm476_vm9, %vm472_vm8  ;;  %vm489_vm9 = vcmp.eq.s32.totalorder %v3101_v54, %v308_v28 }
 0x114   : > { %2441 = vmatmul.mubr.msk.bf16.gmra.mxu0 %vm2440_vm0, %v2782_v58  ;;  %vm2446_vm0 = vmpackc.low %vm483_vm11, %vm479_vm10  ;;  %vm493_vm10 = vcmp.eq.s32.totalorder %v3101_v54, %v311_v27 }
 0x115   : > { %2537 = vmatmul.mubr.msk.bf16.gmra.mxu1 %vm2536_vm3, %v2782_v58  ;;  %2443 = vmatprep.mubr.msk.bf16.mxu0 %vm2442_vm4, %v2782_v58  ;;  %vm482_vm3 = vcmp.eq.s32.totalorder %v3095_v50, %v305_v25  ;;  %vm480_vm4 = vcmp.eq.s32.totalorder %v3104_v56, %v302_v26  ;;  %vm2546_vm13 = vmpackc.low %vm493_vm10, %vm489_vm9  ;;  %vm494_vm10 = vcmp.eq.s32.totalorder %v3095_v50, %v314_v30 }
 0x116   : > { %2539 = vmatprep.mubr.msk.bf16.mxu1 %vm2538_vm5, %v2782_v58  ;;  %vm484_vm5 = vcmp.eq.s32.totalorder %v3104_v56, %v305_v25  ;;  %vm2448_vm8 = vmpackc.low %vm482_vm3, %vm478_vm2  ;;  %vm495_vm2 = vcmp.eq.s32.totalorder %v3098_v53, %v314_v30  ;;  %vm499_vm3 = vcmp.eq.s32.totalorder %v3098_v53, %v317_v29 }
 0x117   : > { %vm2544_vm11 = vmpackc.low %vm484_vm5, %vm480_vm4  ;;  %vm497_vm5 = vcmp.eq.s32.totalorder %v3101_v54, %v314_v30 }
 0x11c   : > { %2445 = vmatmul.mubr.msk.bf16.gmra.mxu0 %vm2444_vm12, %v2782_v58  ;;  %vm2450_vm12 = vmpackc.low %vm491_vm7, %vm487_vm6  ;;  %vm501_vm6 = vcmp.eq.s32.totalorder %v3101_v54, %v317_v29 }
 0x11d   : > { %2541 = vmatmul.mubr.msk.bf16.gmra.mxu1 %vm2540_vm15, %v2782_v58  ;;  %2447 = vmatprep.mubr.msk.bf16.mxu0 %vm2446_vm0, %v2782_v58  ;;  %vm490_vm15 = vcmp.eq.s32.totalorder %v3095_v50, %v311_v27  ;;  %vm488_vm0 = vcmp.eq.s32.totalorder %v3104_v56, %v308_v28  ;;  %vm2550_vm9 = vmpackc.low %vm501_vm6, %vm497_vm5  ;;  %vm502_vm6 = vcmp.eq.s32.totalorder %v3095_v50, %v320_v32 }
 0x11e   : > { %2543 = vmatprep.mubr.msk.bf16.mxu1 %vm2542_vm1, %v2782_v58  ;;  %vm492_vm1 = vcmp.eq.s32.totalorder %v3104_v56, %v311_v27  ;;  %vm2452_vm4 = vmpackc.low %vm490_vm15, %vm486_vm14  ;;  %vm503_vm14 = vcmp.eq.s32.totalorder %v3098_v53, %v320_v32  ;;  %vm507_vm15 = vcmp.eq.s32.totalorder %v3098_v53, %v323_v31 }
 0x11f   : > { %vm2548_vm7 = vmpackc.low %vm492_vm1, %vm488_vm0  ;;  %vm505_vm1 = vcmp.eq.s32.totalorder %v3101_v54, %v320_v32 }
 0x124   : > { %2449 = vmatmul.mubr.msk.bf16.gmra.mxu0 %vm2448_vm8, %v2782_v58  ;;  %vm2454_vm8 = vmpackc.low %vm499_vm3, %vm495_vm2  ;;  %vm509_vm2 = vcmp.eq.s32.totalorder %v3101_v54, %v323_v31 }
 0x125   : > { %2545 = vmatmul.mubr.msk.bf16.gmra.mxu1 %vm2544_vm11, %v2782_v58  ;;  %2451 = vmatprep.mubr.msk.bf16.mxu0 %vm2450_vm12, %v2782_v58  ;;  %vm498_vm11 = vcmp.eq.s32.totalorder %v3095_v50, %v317_v29  ;;  %vm496_vm12 = vcmp.eq.s32.totalorder %v3104_v56, %v314_v30  ;;  %vm2554_vm5 = vmpackc.low %vm509_vm2, %vm505_vm1  ;;  %vm510_vm2 = vcmp.eq.s32.totalorder %v3095_v50, %v326_v34 }
 0x126   : > { %2547 = vmatprep.mubr.msk.bf16.mxu1 %vm2546_vm13, %v2782_v58  ;;  %vm500_vm13 = vcmp.eq.s32.totalorder %v3104_v56, %v317_v29  ;;  %vm2456_vm0 = vmpackc.low %vm498_vm11, %vm494_vm10  ;;  %vm511_vm10 = vcmp.eq.s32.totalorder %v3098_v53, %v326_v34  ;;  %vm515_vm11 = vcmp.eq.s32.totalorder %v3098_v53, %v329_v33 }
 0x127   : > { %vm2552_vm3 = vmpackc.low %vm500_vm13, %vm496_vm12  ;;  %vm513_vm13 = vcmp.eq.s32.totalorder %v3101_v54, %v326_v34 }
 0x12c   : > { %2453 = vmatmul.mubr.msk.bf16.gmra.mxu0 %vm2452_vm4, %v2782_v58  ;;  %vm2458_vm4 = vmpackc.low %vm507_vm15, %vm503_vm14  ;;  %vm517_vm14 = vcmp.eq.s32.totalorder %v3101_v54, %v329_v33 }
 0x12d   : > { %2549 = vmatmul.mubr.msk.bf16.gmra.mxu1 %vm2548_vm7, %v2782_v58  ;;  %2455 = vmatprep.mubr.msk.bf16.mxu0 %vm2454_vm8, %v2782_v58  ;;  %vm506_vm7 = vcmp.eq.s32.totalorder %v3095_v50, %v323_v31  ;;  %vm504_vm8 = vcmp.eq.s32.totalorder %v3104_v56, %v320_v32  ;;  %vm2558_vm1 = vmpackc.low %vm517_vm14, %vm513_vm13  ;;  %vm518_vm14 = vcmp.eq.s32.totalorder %v3095_v50, %v332_v36 }
 0x12e   : > { %2551 = vmatprep.mubr.msk.bf16.mxu1 %vm2550_vm9, %v2782_v58  ;;  %vm508_vm9 = vcmp.eq.s32.totalorder %v3104_v56, %v323_v31  ;;  %vm2460_vm12 = vmpackc.low %vm506_vm7, %vm502_vm6  ;;  %vm519_vm6 = vcmp.eq.s32.totalorder %v3098_v53, %v332_v36  ;;  %vm523_vm7 = vcmp.eq.s32.totalorder %v3098_v53, %v335_v35 }
 0x12f   : > { %vm2556_vm15 = vmpackc.low %vm508_vm9, %vm504_vm8  ;;  %vm521_vm9 = vcmp.eq.s32.totalorder %v3101_v54, %v332_v36 }
 0x134   : > { %2457 = vmatmul.mubr.msk.bf16.gmra.mxu0 %vm2456_vm0, %v2782_v58  ;;  %vm2462_vm0 = vmpackc.low %vm515_vm11, %vm511_vm10  ;;  %vm525_vm10 = vcmp.eq.s32.totalorder %v3101_v54, %v335_v35 }
 0x135   : > { %2553 = vmatmul.mubr.msk.bf16.gmra.mxu1 %vm2552_vm3, %v2782_v58  ;;  %2459 = vmatprep.mubr.msk.bf16.mxu0 %vm2458_vm4, %v2782_v58  ;;  %vm514_vm3 = vcmp.eq.s32.totalorder %v3095_v50, %v329_v33  ;;  %vm512_vm4 = vcmp.eq.s32.totalorder %v3104_v56, %v326_v34  ;;  %vm2562_vm13 = vmpackc.low %vm525_vm10, %vm521_vm9  ;;  %vm530_vm10 = vcmp.eq.s32.totalorder %v3095_v50, %v341_v37 }
 0x136   : > { %2555 = vmatprep.mubr.msk.bf16.mxu1 %vm2554_vm5, %v2782_v58  ;;  %vm516_vm5 = vcmp.eq.s32.totalorder %v3104_v56, %v329_v33  ;;  %vm2464_vm8 = vmpackc.low %vm514_vm3, %vm510_vm2  ;;  %vm531_vm2 = vcmp.eq.s32.totalorder %v3098_v53, %v341_v37  ;;  %vm527_vm3 = vcmp.eq.s32.totalorder %v3098_v53, %v338_v38 }
 0x137   : > { %vm2560_vm11 = vmpackc.low %vm516_vm5, %vm512_vm4  ;;  %vm533_vm4 = vcmp.eq.s32.totalorder %v3101_v54, %v341_v37  ;;  %vm529_vm5 = vcmp.eq.s32.totalorder %v3101_v54, %v338_v38 }
 0x138   : > { %vm2566_vm9 = vmpackc.low %vm533_vm4, %vm529_vm5 }
 0x13c   : > { %2461 = vmatmul.mubr.msk.bf16.gmra.mxu0 %vm2460_vm12, %v2782_v58  ;;  %vm2466_vm12 = vmpackc.low %vm523_vm7, %vm519_vm6 }
 0x13d   : > { %2557 = vmatmul.mubr.msk.bf16.gmra.mxu1 %vm2556_vm15, %v2782_v58  ;;  %2463 = vmatprep.mubr.msk.bf16.mxu0 %vm2462_vm0, %v2782_v58  ;;  %vm522_vm15 = vcmp.eq.s32.totalorder %v3095_v50, %v335_v35  ;;  %vm520_vm0 = vcmp.eq.s32.totalorder %v3104_v56, %v332_v36 }
 0x13e   : > { %2559 = vmatprep.mubr.msk.bf16.mxu1 %vm2558_vm1, %v2782_v58  ;;  %vm524_vm1 = vcmp.eq.s32.totalorder %v3104_v56, %v335_v35  ;;  %vm2468_vm6 = vmpackc.low %vm522_vm15, %vm518_vm14 }
 0x13f   : > { %vm2564_vm7 = vmpackc.low %vm524_vm1, %vm520_vm0 }
 0x144   : > { %2465 = vmatmul.mubr.msk.bf16.gmra.mxu0 %vm2464_vm8, %v2782_v58  ;;  %vm2470_vm8 = vmpackc.low %vm531_vm2, %vm527_vm3 }
 0x145   : > { %2561 = vmatmul.mubr.msk.bf16.gmra.mxu1 %vm2560_vm11, %v2782_v58  ;;  %2467 = vmatprep.mubr.msk.bf16.mxu0 %vm2466_vm12, %v2782_v58  ;;  %vm526_vm11 = vcmp.eq.s32.totalorder %v3095_v50, %v338_v38  ;;  %vm532_vm12 = vcmp.eq.s32.totalorder %v3104_v56, %v341_v37 }
 0x146   : > { %2563 = vmatprep.mubr.msk.bf16.mxu1 %vm2562_vm13, %v2782_v58  ;;  %vm528_vm13 = vcmp.eq.s32.totalorder %v3104_v56, %v338_v38  ;;  %vm2472_vm14 = vmpackc.low %vm530_vm10, %vm526_vm11 }
 0x147   : > { %vm2568_vm15 = vmpackc.low %vm532_vm12, %vm528_vm13 }
 0x14c   : > { %2469 = vmatmul.mubr.msk.bf16.gmra.mxu0 %vm2468_vm6, %v2782_v58 }
 0x14d   : > { %2565 = vmatmul.mubr.msk.bf16.gmra.mxu1 %vm2564_vm7, %v2782_v58  ;;  %2471 = vmatprep.mubr.msk.bf16.mxu0 %vm2470_vm8, %v2782_v58 }
 0x14e   : > { %2567 = vmatprep.mubr.msk.bf16.mxu1 %vm2566_vm9, %v2782_v58 }
 0x154   : > { %2473 = vmatmul.mubr.msk.bf16.gmra.mxu0 %vm2472_vm14, %v2782_v58 }
 0x155   : > { %2569 = vmatmul.mubr.msk.bf16.gmra.mxu1 %vm2568_vm15, %v2782_v58 }
 0x15c   : > { %v1432_v39 = vpop.f32.mrf.mxu0 }
 0x15d   : > { %v1705_v40 = vpop.f32.mrf.mxu1 }
 0x15e   : > { %v1706_v41 = vadd.f32 %v1705_v40, %v1432_v39  ;;  %v1434_v42 = vpop.f32.mrf.mxu0 }
 0x15f   : > { %v1707_v43 = vpop.f32.mrf.mxu1 }
 0x160   : > { %1944 = vst [vmem:[%s3397_s21] sm:$0xff] %v1706_v41  ;;  %v1708_v44 = vadd.f32 %v1707_v43, %v1434_v42  ;;  %v1436_v45 = vpop.f32.mrf.mxu0 }
 0x161   : > { %v1709_v46 = vpop.f32.mrf.mxu1 }
 0x162   : > { %1945 = vst [vmem:[%s3397_s21 + $0x8] sm:$0xff] %v1708_v44  ;;  %v1710_v47 = vadd.f32 %v1709_v46, %v1436_v45  ;;  %v1438_v48 = vpop.f32.mrf.mxu0 }
 0x163   : > { %v1711_v49 = vpop.f32.mrf.mxu1 }
 0x164   : > { %1946 = vst [vmem:[%s3397_s21 + $0x10] sm:$0xff] %v1710_v47  ;;  %v1712_v50 = vadd.f32 %v1711_v49, %v1438_v48  ;;  %v1442_v51 = vpop.f32.mrf.mxu0 }
 0x165   : > { %v1715_v52 = vpop.f32.mrf.mxu1 }
 0x166   : > { %1947 = vst [vmem:[%s3397_s21 + $0x18] sm:$0xff] %v1712_v50  ;;  %v1716_v53 = vadd.f32 %v1715_v52, %v1442_v51  ;;  %v1444_v54 = vpop.f32.mrf.mxu0 }
 0x167   : > { %v1717_v55 = vpop.f32.mrf.mxu1 }
 0x168   : > { %1948 = vst [vmem:[%s3397_s21 + $0x20] sm:$0xff] %v1716_v53  ;;  %v1718_v56 = vadd.f32 %v1717_v55, %v1444_v54  ;;  %v1446_v57 = vpop.f32.mrf.mxu0 }
 0x169   : > { %v1719_v58 = vpop.f32.mrf.mxu1 }
 0x16a   : > { %1949 = vst [vmem:[%s3397_s21 + $0x28] sm:$0xff] %v1718_v56  ;;  %v1720_v59 = vadd.f32 %v1719_v58, %v1446_v57  ;;  %v1448_v60 = vpop.f32.mrf.mxu0 }
 0x16b   : > { %v1721_v61 = vpop.f32.mrf.mxu1 }
 0x16c   : > { %1950 = vst [vmem:[%s3397_s21 + $0x30] sm:$0xff] %v1720_v59  ;;  %v1722_v62 = vadd.f32 %v1721_v61, %v1448_v60  ;;  %v1452_v63 = vpop.f32.mrf.mxu0 }
 0x16d   : > { %v1725_v0 = vpop.f32.mrf.mxu1 }
 0x16e   : > { %1951 = vst [vmem:[%s3397_s21 + $0x38] sm:$0xff] %v1722_v62  ;;  %v1726_v1 = vadd.f32 %v1725_v0, %v1452_v63  ;;  %v1454_v2 = vpop.f32.mrf.mxu0 }
 0x16f   : > { %v1727_v3 = vpop.f32.mrf.mxu1 }
 0x170   : > { %1952 = vst [vmem:[%s3397_s21 + $0x40] sm:$0xff] %v1726_v1  ;;  %v1728_v4 = vadd.f32 %v1727_v3, %v1454_v2  ;;  %v1456_v5 = vpop.f32.mrf.mxu0 }
 0x171   : > { %v1729_v6 = vpop.f32.mrf.mxu1 }
 0x172   : > { %1953 = vst [vmem:[%s3397_s21 + $0x48] sm:$0xff] %v1728_v4  ;;  %v1730_v7 = vadd.f32 %v1729_v6, %v1456_v5  ;;  %v1458_v8 = vpop.f32.mrf.mxu0 }
 0x173   : > { %v1731_v9 = vpop.f32.mrf.mxu1 }
 0x174   : > { %1954 = vst [vmem:[%s3397_s21 + $0x50] sm:$0xff] %v1730_v7  ;;  %v1732_v10 = vadd.f32 %v1731_v9, %v1458_v8  ;;  %v1462_v11 = vpop.f32.mrf.mxu0 }
 0x175   : > { %v1735_v12 = vpop.f32.mrf.mxu1 }
 0x176   : > { %1955 = vst [vmem:[%s3397_s21 + $0x58] sm:$0xff] %v1732_v10  ;;  %v1736_v13 = vadd.f32 %v1735_v12, %v1462_v11  ;;  %v1464_v14 = vpop.f32.mrf.mxu0 }
 0x177   : > { %v1737_v15 = vpop.f32.mrf.mxu1 }
 0x178   : > { %1956 = vst [vmem:[%s3397_s21 + $0x60] sm:$0xff] %v1736_v13  ;;  %v1738_v16 = vadd.f32 %v1737_v15, %v1464_v14  ;;  %v1466_v17 = vpop.f32.mrf.mxu0 }
 0x179   : > { %v1739_v18 = vpop.f32.mrf.mxu1 }
 0x17a   : > { %1957 = vst [vmem:[%s3397_s21 + $0x68] sm:$0xff] %v1738_v16  ;;  %v1740_v19 = vadd.f32 %v1739_v18, %v1466_v17  ;;  %v1468_v20 = vpop.f32.mrf.mxu0 }
 0x17b   : > { %v1741_v21 = vpop.f32.mrf.mxu1 }
 0x17c   : > { %1958 = vst [vmem:[%s3397_s21 + $0x70] sm:$0xff] %v1740_v19  ;;  %v1742_v22 = vadd.f32 %v1741_v21, %v1468_v20  ;;  %v1472_v23 = vpop.f32.mrf.mxu0 }
 0x17d   : > { %v1745_v24 = vpop.f32.mrf.mxu1 }
 0x17e   : > { %1959 = vst [vmem:[%s3397_s21 + $0x78] sm:$0xff] %v1742_v22  ;;  %v1746_v25 = vadd.f32 %v1745_v24, %v1472_v23  ;;  %v1474_v26 = vpop.f32.mrf.mxu0 }
 0x17f   : > { %v1747_v27 = vpop.f32.mrf.mxu1 }
 0x180   : > { %1960 = vst [vmem:[%s3397_s21 + $0x80] sm:$0xff] %v1746_v25  ;;  %v1748_v28 = vadd.f32 %v1747_v27, %v1474_v26  ;;  %v1476_v29 = vpop.f32.mrf.mxu0 }
 0x181   : > { %v1749_v30 = vpop.f32.mrf.mxu1 }
 0x182   : > { %1961 = vst [vmem:[%s3397_s21 + $0x88] sm:$0xff] %v1748_v28  ;;  %v1750_v31 = vadd.f32 %v1749_v30, %v1476_v29  ;;  %v1478_v32 = vpop.f32.mrf.mxu0 }
 0x183   : > { %v1751_v33 = vpop.f32.mrf.mxu1 }
 0x184   : > { %1962 = vst [vmem:[%s3397_s21 + $0x90] sm:$0xff] %v1750_v31  ;;  %v1752_v34 = vadd.f32 %v1751_v33, %v1478_v32  ;;  %v1482_v35 = vpop.f32.mrf.mxu0 }
 0x185   : > { %v1755_v36 = vpop.f32.mrf.mxu1 }
 0x186   : > { %1963 = vst [vmem:[%s3397_s21 + $0x98] sm:$0xff] %v1752_v34  ;;  %v1756_v37 = vadd.f32 %v1755_v36, %v1482_v35  ;;  %v1484_v38 = vpop.f32.mrf.mxu0 }
 0x187   : > { %v1757_v39 = vpop.f32.mrf.mxu1 }
 0x188   : > { %1964 = vst [vmem:[%s3397_s21 + $0xa0] sm:$0xff] %v1756_v37  ;;  %v1758_v40 = vadd.f32 %v1757_v39, %v1484_v38  ;;  %v1486_v41 = vpop.f32.mrf.mxu0 }
 0x189   : > { %v1759_v42 = vpop.f32.mrf.mxu1 }
 0x18a   : > { %1965 = vst [vmem:[%s3397_s21 + $0xa8] sm:$0xff] %v1758_v40  ;;  %v1760_v43 = vadd.f32 %v1759_v42, %v1486_v41  ;;  %v1488_v44 = vpop.f32.mrf.mxu0 }
 0x18b   : > { %v1761_v45 = vpop.f32.mrf.mxu1 }
 0x18c   : > { %1966 = vst [vmem:[%s3397_s21 + $0xb0] sm:$0xff] %v1760_v43  ;;  %v1762_v46 = vadd.f32 %v1761_v45, %v1488_v44  ;;  %v1492_v47 = vpop.f32.mrf.mxu0 }
 0x18d   : > { %v1765_v48 = vpop.f32.mrf.mxu1 }
 0x18e   : > { %1967 = vst [vmem:[%s3397_s21 + $0xb8] sm:$0xff] %v1762_v46  ;;  %v1766_v49 = vadd.f32 %v1765_v48, %v1492_v47  ;;  %v1494_v50 = vpop.f32.mrf.mxu0 }
 0x18f   : > { %v1767_v51 = vpop.f32.mrf.mxu1 }
 0x190   : > { %1968 = vst [vmem:[%s3397_s21 + $0xc0] sm:$0xff] %v1766_v49  ;;  %v1768_v52 = vadd.f32 %v1767_v51, %v1494_v50  ;;  %v1496_v53 = vpop.f32.mrf.mxu0 }
 0x191   : > { %v1769_v54 = vpop.f32.mrf.mxu1 }
 0x192   : > { %1969 = vst [vmem:[%s3397_s21 + $0xc8] sm:$0xff] %v1768_v52  ;;  %v1770_v55 = vadd.f32 %v1769_v54, %v1496_v53  ;;  %v1498_v56 = vpop.f32.mrf.mxu0 }
 0x193   : > { %v1771_v57 = vpop.f32.mrf.mxu1 }
 0x194   : > { %1970 = vst [vmem:[%s3397_s21 + $0xd0] sm:$0xff] %v1770_v55  ;;  %v1772_v58 = vadd.f32 %v1771_v57, %v1498_v56  ;;  %v1502_v59 = vpop.f32.mrf.mxu0 }
 0x195   : > { %v1775_v60 = vpop.f32.mrf.mxu1 }
 0x196   : > { %1971 = vst [vmem:[%s3397_s21 + $0xd8] sm:$0xff] %v1772_v58  ;;  %v1776_v61 = vadd.f32 %v1775_v60, %v1502_v59  ;;  %v1504_v62 = vpop.f32.mrf.mxu0 }
 0x197   : > { %v1777_v63 = vpop.f32.mrf.mxu1 }
 0x198   : > { %1972 = vst [vmem:[%s3397_s21 + $0xe0] sm:$0xff] %v1776_v61  ;;  %v1778_v0 = vadd.f32 %v1777_v63, %v1504_v62  ;;  %v1506_v1 = vpop.f32.mrf.mxu0 }
 0x199   : > { %v1779_v2 = vpop.f32.mrf.mxu1 }
 0x19a   : > { %1973 = vst [vmem:[%s3397_s21 + $0xe8] sm:$0xff] %v1778_v0  ;;  %v1780_v3 = vadd.f32 %v1779_v2, %v1506_v1  ;;  %v1508_v4 = vpop.f32.mrf.mxu0 }
 0x19b   : > { %v1781_v5 = vpop.f32.mrf.mxu1 }
 0x19c   : > { %1974 = vst [vmem:[%s3397_s21 + $0xf0] sm:$0xff] %v1780_v3  ;;  %v1782_v6 = vadd.f32 %v1781_v5, %v1508_v4  ;;  %v1512_v7 = vpop.f32.mrf.mxu0 }
 0x19d   : > { %v1785_v8 = vpop.f32.mrf.mxu1 }
 0x19e   : > { %1975 = vst [vmem:[%s3397_s21 + $0xf8] sm:$0xff] %v1782_v6  ;;  %v1786_v9 = vadd.f32 %v1785_v8, %v1512_v7  ;;  %v1514_v10 = vpop.f32.mrf.mxu0 }
 0x19f   : > { %v1787_v11 = vpop.f32.mrf.mxu1 }
 0x1a0   : > { %1976 = vst [vmem:[%s3397_s21 + $0x100] sm:$0xff] %v1786_v9  ;;  %v1788_v12 = vadd.f32 %v1787_v11, %v1514_v10  ;;  %v1516_v13 = vpop.f32.mrf.mxu0 }
 0x1a1   : > { %v1789_v14 = vpop.f32.mrf.mxu1 }
 0x1a2   : > { %1977 = vst [vmem:[%s3397_s21 + $0x108] sm:$0xff] %v1788_v12  ;;  %v1790_v15 = vadd.f32 %v1789_v14, %v1516_v13  ;;  %v1518_v16 = vpop.f32.mrf.mxu0 }
 0x1a3   : > { %v1791_v17 = vpop.f32.mrf.mxu1 }
 0x1a4   : > { %1978 = vst [vmem:[%s3397_s21 + $0x110] sm:$0xff] %v1790_v15  ;;  %v1792_v18 = vadd.f32 %v1791_v17, %v1518_v16  ;;  %v1522_v19 = vpop.f32.mrf.mxu0 }
 0x1a5   : > { %v1795_v20 = vpop.f32.mrf.mxu1 }
 0x1a6   : > { %1979 = vst [vmem:[%s3397_s21 + $0x118] sm:$0xff] %v1792_v18  ;;  %v1796_v21 = vadd.f32 %v1795_v20, %v1522_v19  ;;  %v1524_v22 = vpop.f32.mrf.mxu0 }
 0x1a7   : > { %v1797_v23 = vpop.f32.mrf.mxu1 }
 0x1a8   : > { %1980 = vst [vmem:[%s3397_s21 + $0x120] sm:$0xff] %v1796_v21  ;;  %v1798_v24 = vadd.f32 %v1797_v23, %v1524_v22  ;;  %v1526_v25 = vpop.f32.mrf.mxu0 }
 0x1a9   : > { %v1799_v26 = vpop.f32.mrf.mxu1 }
 0x1aa   : > { %1981 = vst [vmem:[%s3397_s21 + $0x128] sm:$0xff] %v1798_v24  ;;  %v1800_v27 = vadd.f32 %v1799_v26, %v1526_v25  ;;  %v1528_v28 = vpop.f32.mrf.mxu0 }
 0x1ab   : > { %v1801_v29 = vpop.f32.mrf.mxu1 }
 0x1ac   : > { %1982 = vst [vmem:[%s3397_s21 + $0x130] sm:$0xff] %v1800_v27  ;;  %v1802_v30 = vadd.f32 %v1801_v29, %v1528_v28  ;;  %v1532_v31 = vpop.f32.mrf.mxu0 }
 0x1ad   : > { %v1805_v32 = vpop.f32.mrf.mxu1 }
 0x1ae   : > { %1983 = vst [vmem:[%s3397_s21 + $0x138] sm:$0xff] %v1802_v30  ;;  %v1806_v33 = vadd.f32 %v1805_v32, %v1532_v31  ;;  %v1534_v34 = vpop.f32.mrf.mxu0 }
 0x1af   : > { %v1807_v35 = vpop.f32.mrf.mxu1 }
 0x1b0   : > { %1984 = vst [vmem:[%s3397_s21 + $0x140] sm:$0xff] %v1806_v33  ;;  %v1808_v36 = vadd.f32 %v1807_v35, %v1534_v34  ;;  %v1536_v37 = vpop.f32.mrf.mxu0 }
 0x1b1   : > { %v1809_v38 = vpop.f32.mrf.mxu1 }
 0x1b2   : > { %1985 = vst [vmem:[%s3397_s21 + $0x148] sm:$0xff] %v1808_v36  ;;  %v1810_v39 = vadd.f32 %v1809_v38, %v1536_v37  ;;  %v1538_v40 = vpop.f32.mrf.mxu0 }
 0x1b3   : > { %v1811_v41 = vpop.f32.mrf.mxu1 }
 0x1b4   : > { %1986 = vst [vmem:[%s3397_s21 + $0x150] sm:$0xff] %v1810_v39  ;;  %v1812_v42 = vadd.f32 %v1811_v41, %v1538_v40  ;;  %v1542_v43 = vpop.f32.mrf.mxu0 }
 0x1b5   : > { %v1815_v44 = vpop.f32.mrf.mxu1 }
 0x1b6   : > { %1987 = vst [vmem:[%s3397_s21 + $0x158] sm:$0xff] %v1812_v42  ;;  %v1816_v45 = vadd.f32 %v1815_v44, %v1542_v43  ;;  %v1544_v46 = vpop.f32.mrf.mxu0 }
 0x1b7   : > { %v1817_v47 = vpop.f32.mrf.mxu1 }
 0x1b8   : > { %1988 = vst [vmem:[%s3397_s21 + $0x160] sm:$0xff] %v1816_v45  ;;  %v1818_v48 = vadd.f32 %v1817_v47, %v1544_v46  ;;  %v1546_v49 = vpop.f32.mrf.mxu0 }
 0x1b9   : > { %v1819_v50 = vpop.f32.mrf.mxu1 }
 0x1ba   : > { %1989 = vst [vmem:[%s3397_s21 + $0x168] sm:$0xff] %v1818_v48  ;;  %v1820_v51 = vadd.f32 %v1819_v50, %v1546_v49  ;;  %v1548_v52 = vpop.f32.mrf.mxu0 }
 0x1bb   : > { %v1821_v53 = vpop.f32.mrf.mxu1 }
 0x1bc   : > { %1990 = vst [vmem:[%s3397_s21 + $0x170] sm:$0xff] %v1820_v51  ;;  %v1822_v54 = vadd.f32 %v1821_v53, %v1548_v52  ;;  %v1552_v55 = vpop.f32.mrf.mxu0 }
 0x1bd   : > { %v1825_v56 = vpop.f32.mrf.mxu1 }
 0x1be   : > { %1991 = vst [vmem:[%s3397_s21 + $0x178] sm:$0xff] %v1822_v54  ;;  %v1826_v57 = vadd.f32 %v1825_v56, %v1552_v55  ;;  %v1554_v58 = vpop.f32.mrf.mxu0 }
 0x1bf   : > { %v1827_v59 = vpop.f32.mrf.mxu1 }
 0x1c0   : > { %1992 = vst [vmem:[%s3397_s21 + $0x180] sm:$0xff] %v1826_v57  ;;  %v1828_v60 = vadd.f32 %v1827_v59, %v1554_v58  ;;  %v1556_v61 = vpop.f32.mrf.mxu0 }
 0x1c1   : > { %v1829_v62 = vpop.f32.mrf.mxu1 }
 0x1c2   : > { %1993 = vst [vmem:[%s3397_s21 + $0x188] sm:$0xff] %v1828_v60  ;;  %v1830_v63 = vadd.f32 %v1829_v62, %v1556_v61  ;;  %v1558_v0 = vpop.f32.mrf.mxu0 }
 0x1c3   : > { %v1831_v1 = vpop.f32.mrf.mxu1 }
 0x1c4   : > { %1994 = vst [vmem:[%s3397_s21 + $0x190] sm:$0xff] %v1830_v63  ;;  %v1832_v2 = vadd.f32 %v1831_v1, %v1558_v0  ;;  %v1562_v3 = vpop.f32.mrf.mxu0 }
 0x1c5   : > { %v1835_v4 = vpop.f32.mrf.mxu1 }
 0x1c6   : > { %1995 = vst [vmem:[%s3397_s21 + $0x198] sm:$0xff] %v1832_v2  ;;  %v1836_v5 = vadd.f32 %v1835_v4, %v1562_v3  ;;  %v1564_v6 = vpop.f32.mrf.mxu0 }
 0x1c7   : > { %v1837_v7 = vpop.f32.mrf.mxu1 }
 0x1c8   : > { %1996 = vst [vmem:[%s3397_s21 + $0x1a0] sm:$0xff] %v1836_v5  ;;  %v1838_v8 = vadd.f32 %v1837_v7, %v1564_v6  ;;  %v1566_v9 = vpop.f32.mrf.mxu0 }
 0x1c9   : > { %v1839_v10 = vpop.f32.mrf.mxu1 }
 0x1ca   : > { %1997 = vst [vmem:[%s3397_s21 + $0x1a8] sm:$0xff] %v1838_v8  ;;  %v1840_v11 = vadd.f32 %v1839_v10, %v1566_v9  ;;  %v1568_v12 = vpop.f32.mrf.mxu0 }
 0x1cb   : > { %v1841_v13 = vpop.f32.mrf.mxu1 }
 0x1cc   : > { %1998 = vst [vmem:[%s3397_s21 + $0x1b0] sm:$0xff] %v1840_v11  ;;  %v1842_v14 = vadd.f32 %v1841_v13, %v1568_v12  ;;  %v1572_v15 = vpop.f32.mrf.mxu0 }
 0x1cd   : > { %v1845_v16 = vpop.f32.mrf.mxu1 }
 0x1ce   : > { %1999 = vst [vmem:[%s3397_s21 + $0x1b8] sm:$0xff] %v1842_v14  ;;  %v1846_v17 = vadd.f32 %v1845_v16, %v1572_v15  ;;  %v1574_v18 = vpop.f32.mrf.mxu0 }
 0x1cf   : > { %v1847_v19 = vpop.f32.mrf.mxu1 }
 0x1d0   : > { %2000 = vst [vmem:[%s3397_s21 + $0x1c0] sm:$0xff] %v1846_v17  ;;  %v1848_v20 = vadd.f32 %v1847_v19, %v1574_v18  ;;  %v1576_v21 = vpop.f32.mrf.mxu0 }
 0x1d1   : > { %v1849_v22 = vpop.f32.mrf.mxu1 }
 0x1d2   : > { %2001 = vst [vmem:[%s3397_s21 + $0x1c8] sm:$0xff] %v1848_v20  ;;  %v1850_v23 = vadd.f32 %v1849_v22, %v1576_v21  ;;  %v1578_v24 = vpop.f32.mrf.mxu0 }
 0x1d3   : > { %v1851_v25 = vpop.f32.mrf.mxu1 }
 0x1d4   : > { %2002 = vst [vmem:[%s3397_s21 + $0x1d0] sm:$0xff] %v1850_v23  ;;  %v1852_v26 = vadd.f32 %v1851_v25, %v1578_v24  ;;  %v1582_v27 = vpop.f32.mrf.mxu0 }
 0x1d5   : > { %v1855_v28 = vpop.f32.mrf.mxu1 }
 0x1d6   : > { %2003 = vst [vmem:[%s3397_s21 + $0x1d8] sm:$0xff] %v1852_v26  ;;  %v1856_v29 = vadd.f32 %v1855_v28, %v1582_v27  ;;  %v1584_v30 = vpop.f32.mrf.mxu0 }
 0x1d7   : > { %v1857_v31 = vpop.f32.mrf.mxu1 }
 0x1d8   : > { %2004 = vst [vmem:[%s3397_s21 + $0x1e0] sm:$0xff] %v1856_v29  ;;  %v1858_v32 = vadd.f32 %v1857_v31, %v1584_v30  ;;  %v1586_v33 = vpop.f32.mrf.mxu0 }
 0x1d9   : > { %v1859_v34 = vpop.f32.mrf.mxu1 }
 0x1da   : > { %2005 = vst [vmem:[%s3397_s21 + $0x1e8] sm:$0xff] %v1858_v32  ;;  %v1860_v35 = vadd.f32 %v1859_v34, %v1586_v33  ;;  %v1588_v36 = vpop.f32.mrf.mxu0 }
 0x1db   : > { %v1861_v37 = vpop.f32.mrf.mxu1 }
 0x1dc   : > { %2006 = vst [vmem:[%s3397_s21 + $0x1f0] sm:$0xff] %v1860_v35  ;;  %v1862_v38 = vadd.f32 %v1861_v37, %v1588_v36  ;;  %v1592_v39 = vpop.f32.mrf.mxu0 }
 0x1dd   : > { %v1865_v40 = vpop.f32.mrf.mxu1 }
 0x1de   : > { %2007 = vst [vmem:[%s3397_s21 + $0x1f8] sm:$0xff] %v1862_v38  ;;  %v1866_v41 = vadd.f32 %v1865_v40, %v1592_v39  ;;  %v1594_v42 = vpop.f32.mrf.mxu0 }
 0x1df   : > { %v1867_v43 = vpop.f32.mrf.mxu1 }
 0x1e0   : > { %2008 = vst [vmem:[%s3397_s21 + $0x200] sm:$0xff] %v1866_v41  ;;  %v1868_v44 = vadd.f32 %v1867_v43, %v1594_v42  ;;  %v1596_v45 = vpop.f32.mrf.mxu0 }
 0x1e1   : > { %v1869_v46 = vpop.f32.mrf.mxu1 }
 0x1e2   : > { %2009 = vst [vmem:[%s3397_s21 + $0x208] sm:$0xff] %v1868_v44  ;;  %v1870_v47 = vadd.f32 %v1869_v46, %v1596_v45  ;;  %v1598_v48 = vpop.f32.mrf.mxu0 }
 0x1e3   : > { %v1871_v49 = vpop.f32.mrf.mxu1 }
 0x1e4   : > { %2010 = vst [vmem:[%s3397_s21 + $0x210] sm:$0xff] %v1870_v47  ;;  %v1872_v50 = vadd.f32 %v1871_v49, %v1598_v48  ;;  %v1602_v51 = vpop.f32.mrf.mxu0 }
 0x1e5   : > { %v1875_v52 = vpop.f32.mrf.mxu1 }
 0x1e6   : > { %2011 = vst [vmem:[%s3397_s21 + $0x218] sm:$0xff] %v1872_v50  ;;  %v1876_v53 = vadd.f32 %v1875_v52, %v1602_v51  ;;  %v1604_v54 = vpop.f32.mrf.mxu0 }
 0x1e7   : > { %v1877_v55 = vpop.f32.mrf.mxu1 }
 0x1e8   : > { %2012 = vst [vmem:[%s3397_s21 + $0x220] sm:$0xff] %v1876_v53  ;;  %v1878_v56 = vadd.f32 %v1877_v55, %v1604_v54  ;;  %v1606_v57 = vpop.f32.mrf.mxu0 }
 0x1e9   : > { %v1879_v58 = vpop.f32.mrf.mxu1 }
 0x1ea   : > { %2013 = vst [vmem:[%s3397_s21 + $0x228] sm:$0xff] %v1878_v56  ;;  %v1880_v59 = vadd.f32 %v1879_v58, %v1606_v57  ;;  %v1608_v60 = vpop.f32.mrf.mxu0 }
 0x1eb   : > { %v1881_v61 = vpop.f32.mrf.mxu1 }
 0x1ec   : > { %2014 = vst [vmem:[%s3397_s21 + $0x230] sm:$0xff] %v1880_v59  ;;  %v1882_v62 = vadd.f32 %v1881_v61, %v1608_v60  ;;  %v1612_v63 = vpop.f32.mrf.mxu0 }
 0x1ed   : > { %v1885_v0 = vpop.f32.mrf.mxu1 }
 0x1ee   : > { %2015 = vst [vmem:[%s3397_s21 + $0x238] sm:$0xff] %v1882_v62  ;;  %v1886_v1 = vadd.f32 %v1885_v0, %v1612_v63  ;;  %v1614_v2 = vpop.f32.mrf.mxu0 }
 0x1ef   : > { %v1887_v3 = vpop.f32.mrf.mxu1 }
 0x1f0   : > { %2016 = vst [vmem:[%s3397_s21 + $0x240] sm:$0xff] %v1886_v1  ;;  %v1888_v4 = vadd.f32 %v1887_v3, %v1614_v2  ;;  %v1616_v5 = vpop.f32.mrf.mxu0 }
 0x1f1   : > { %v1889_v6 = vpop.f32.mrf.mxu1 }
 0x1f2   : > { %2017 = vst [vmem:[%s3397_s21 + $0x248] sm:$0xff] %v1888_v4  ;;  %v1890_v7 = vadd.f32 %v1889_v6, %v1616_v5  ;;  %v1618_v8 = vpop.f32.mrf.mxu0 }
 0x1f3   : > { %v1891_v9 = vpop.f32.mrf.mxu1 }
 0x1f4   : > { %2018 = vst [vmem:[%s3397_s21 + $0x250] sm:$0xff] %v1890_v7  ;;  %v1892_v10 = vadd.f32 %v1891_v9, %v1618_v8  ;;  %v1622_v11 = vpop.f32.mrf.mxu0 }
 0x1f5   : > { %v1895_v12 = vpop.f32.mrf.mxu1 }
 0x1f6   : > { %2019 = vst [vmem:[%s3397_s21 + $0x258] sm:$0xff] %v1892_v10  ;;  %v1896_v13 = vadd.f32 %v1895_v12, %v1622_v11  ;;  %v1624_v14 = vpop.f32.mrf.mxu0 }
 0x1f7   : > { %v1897_v15 = vpop.f32.mrf.mxu1 }
 0x1f8   : > { %2020 = vst [vmem:[%s3397_s21 + $0x260] sm:$0xff] %v1896_v13  ;;  %v1898_v16 = vadd.f32 %v1897_v15, %v1624_v14  ;;  %v1626_v17 = vpop.f32.mrf.mxu0 }
 0x1f9   : > { %v1899_v18 = vpop.f32.mrf.mxu1 }
 0x1fa   : > { %2021 = vst [vmem:[%s3397_s21 + $0x268] sm:$0xff] %v1898_v16  ;;  %v1900_v19 = vadd.f32 %v1899_v18, %v1626_v17  ;;  %v1628_v20 = vpop.f32.mrf.mxu0 }
 0x1fb   : > { %v1901_v21 = vpop.f32.mrf.mxu1 }
 0x1fc   : > { %2022 = vst [vmem:[%s3397_s21 + $0x270] sm:$0xff] %v1900_v19  ;;  %v1902_v22 = vadd.f32 %v1901_v21, %v1628_v20  ;;  %v1632_v23 = vpop.f32.mrf.mxu0 }
 0x1fd   : > { %v1905_v24 = vpop.f32.mrf.mxu1 }
 0x1fe   : > { %2023 = vst [vmem:[%s3397_s21 + $0x278] sm:$0xff] %v1902_v22  ;;  %v1906_v25 = vadd.f32 %v1905_v24, %v1632_v23  ;;  %v1634_v26 = vpop.f32.mrf.mxu0 }
 0x1ff   : > { %v1907_v27 = vpop.f32.mrf.mxu1 }
 0x200   : > { %2024 = vst [vmem:[%s3397_s21 + $0x280] sm:$0xff] %v1906_v25  ;;  %v1908_v28 = vadd.f32 %v1907_v27, %v1634_v26  ;;  %v1636_v29 = vpop.f32.mrf.mxu0 }
 0x201   : > { %v1909_v30 = vpop.f32.mrf.mxu1 }
 0x202   : > { %2025 = vst [vmem:[%s3397_s21 + $0x288] sm:$0xff] %v1908_v28  ;;  %v1910_v31 = vadd.f32 %v1909_v30, %v1636_v29  ;;  %v1638_v32 = vpop.f32.mrf.mxu0 }
 0x203   : > { %v1911_v33 = vpop.f32.mrf.mxu1 }
 0x204   : > { %2026 = vst [vmem:[%s3397_s21 + $0x290] sm:$0xff] %v1910_v31  ;;  %v1912_v34 = vadd.f32 %v1911_v33, %v1638_v32  ;;  %v1642_v35 = vpop.f32.mrf.mxu0 }
 0x205   : > { %v1915_v36 = vpop.f32.mrf.mxu1 }
 0x206   : > { %2027 = vst [vmem:[%s3397_s21 + $0x298] sm:$0xff] %v1912_v34  ;;  %v1916_v37 = vadd.f32 %v1915_v36, %v1642_v35  ;;  %v1644_v38 = vpop.f32.mrf.mxu0 }
 0x207   : > { %v1917_v39 = vpop.f32.mrf.mxu1 }
 0x208   : > { %2028 = vst [vmem:[%s3397_s21 + $0x2a0] sm:$0xff] %v1916_v37  ;;  %v1918_v40 = vadd.f32 %v1917_v39, %v1644_v38  ;;  %v1646_v41 = vpop.f32.mrf.mxu0 }
 0x209   : > { %v1919_v42 = vpop.f32.mrf.mxu1 }
 0x20a   : > { %2029 = vst [vmem:[%s3397_s21 + $0x2a8] sm:$0xff] %v1918_v40  ;;  %v1920_v43 = vadd.f32 %v1919_v42, %v1646_v41  ;;  %v1648_v44 = vpop.f32.mrf.mxu0 }
 0x20b   : > { %v1921_v45 = vpop.f32.mrf.mxu1 }
 0x20c   : > { %2030 = vst [vmem:[%s3397_s21 + $0x2b0] sm:$0xff] %v1920_v43  ;;  %v1922_v46 = vadd.f32 %v1921_v45, %v1648_v44  ;;  %v1652_v47 = vpop.f32.mrf.mxu0 }
 0x20d   : > { %v1925_v48 = vpop.f32.mrf.mxu1 }
 0x20e   : > { %2031 = vst [vmem:[%s3397_s21 + $0x2b8] sm:$0xff] %v1922_v46  ;;  %v1926_v49 = vadd.f32 %v1925_v48, %v1652_v47  ;;  %v1654_v50 = vpop.f32.mrf.mxu0 }
 0x20f   : > { %v1927_v51 = vpop.f32.mrf.mxu1 }
 0x210   : > { %2032 = vst [vmem:[%s3397_s21 + $0x2c0] sm:$0xff] %v1926_v49  ;;  %v1928_v52 = vadd.f32 %v1927_v51, %v1654_v50  ;;  %v1656_v53 = vpop.f32.mrf.mxu0 }
 0x211   : > { %v1929_v54 = vpop.f32.mrf.mxu1 }
 0x212   : > { %2033 = vst [vmem:[%s3397_s21 + $0x2c8] sm:$0xff] %v1928_v52  ;;  %v1930_v55 = vadd.f32 %v1929_v54, %v1656_v53  ;;  %v1658_v56 = vpop.f32.mrf.mxu0 }
 0x213   : > { %v1931_v57 = vpop.f32.mrf.mxu1 }
 0x214   : > { %2034 = vst [vmem:[%s3397_s21 + $0x2d0] sm:$0xff] %v1930_v55  ;;  %v1932_v58 = vadd.f32 %v1931_v57, %v1658_v56  ;;  %v1662_v59 = vpop.f32.mrf.mxu0 }
 0x215   : > { %v1935_v60 = vpop.f32.mrf.mxu1 }
 0x216   : > { %2035 = vst [vmem:[%s3397_s21 + $0x2d8] sm:$0xff] %v1932_v58  ;;  %v1936_v61 = vadd.f32 %v1935_v60, %v1662_v59  ;;  %v1664_v62 = vpop.f32.mrf.mxu0 }
 0x217   : > { %v1937_v63 = vpop.f32.mrf.mxu1 }
 0x218   : > { %2036 = vst [vmem:[%s3397_s21 + $0x2e0] sm:$0xff] %v1936_v61  ;;  %v1938_v0 = vadd.f32 %v1937_v63, %v1664_v62  ;;  %v1666_v1 = vpop.f32.mrf.mxu0 }
 0x219   : > { %v1939_v2 = vpop.f32.mrf.mxu1 }
 0x21a   : > { %2037 = vst [vmem:[%s3397_s21 + $0x2e8] sm:$0xff] %v1938_v0  ;;  %v1940_v3 = vadd.f32 %v1939_v2, %v1666_v1  ;;  %v1668_v4 = vpop.f32.mrf.mxu0 }
 0x21b   : > { %v1941_v5 = vpop.f32.mrf.mxu1 }
 0x21c   : > { %2038 = vst [vmem:[%s3397_s21 + $0x2f0] sm:$0xff] %v1940_v3  ;;  %v1942_v6 = vadd.f32 %v1941_v5, %v1668_v4 }
 0x21e   : > { %2039 = vst [vmem:[%s3397_s21 + $0x2f8] sm:$0xff] %v1942_v6 }
 0x21f   : > { %2732 = shalt.err (!%p2729_p3)
}
 0x220   : > { %s2733_s16 = scalar_lea.hbm %s3498_s5, 12288  ;;  %s2737_s23 = scalar_lea.hbm %s3548_s2, 24576 }
 0x221   : > { %p2734_p4 = scmp.ne.s32.totalorder %s3498_s5, %s2733_s16  ;;  %p2738_p9 = scmp.lt.s32.totalorder %s3498_s5, %s3548_s2 }
 0x222   : > { %p2739_p10 = scmp.lt.s32.totalorder %s2737_s23, %s2733_s16 }
 0x223   : > { %p2735_p7 = pnand %p2734_p4, %p2839_p5 }
 0x224   : > { %p2740_p11 = por %p2739_p10, %p2738_p9 }
 0x225   : > { %p2736_p8 = pneg %p2735_p7 }
 0x227   : > { %p2741_p12 = pnand %p2740_p11, %p2736_p8 }
 0x229   : > { %2744 = shalt.err (!%p2741_p12)
}
 0x22a   : > { %s2784_s27 = smov 256   ;;  %s2785_s25 = smov 16  }
 0x22b   : > { %2578 = dma.vmem_to_hbm [thread:$0]  (%p2839_p5), %s3501_s30, 12288, %s3498_s5, %s3506_s13, %s2784_s27, %s2784_s27, %s2785_s25  }
 0x22c PF: > { %p2584_p13 = scmp.ge.s32.totalorder %s2779_s12, 2  ;;  %s2070_s28 = sand.u32 1, %s2767_s9  }
 0x22d   : > { %s2071_s21 = scalar_lea.sflag [#allocation3], %s2070_s28 }
 0x22e   : > { %p2581_p0 = pnand %p2584_p13, %p2843_p6 }
 0x230   : > { %p2582_p1 = pneg %p2581_p0 }
 0x232   : > { %2762 = dma.done.wait (%p2582_p1), %s2071_s21, 12288  }
 0x233   : > { %2764 = vsyncadd (%p2582_p1), %s2071_s21, 4294955008  ;;  %p12_p2 = scmp.ge.s32.totalorder %s2826_s15, 4   ;;  %s3551_s9 = smov %s2771_s10 }
 0x234   : > { %s3552_s10 = smov %s2775_s11  ;;  %s3553_s11 = smov %s2837_s18 }
 0x235   : > { %s3554_s12 = smov %s2826_s15  ;;  %14 = sbr.rel (!%p12_p2) target bundleno = 3 (0x3), region = 63 }
 0x23a   :  { %2076 = vsyncpa [#allocation3], 1 }
 0x23b   :  { %2078 = vsyncpa [#allocation3 + $0x1], 1 }

// kernel: tpu_custom_call.1
= control target key start
LH: loop header
LB: loop body
LE: loop exit
PB: predicated region body
PF: predicated region fallthrough
CT: control target
= control target key end

     0   :  { %7 = vsyncpa [#allocation3], 0  ;;  %s3546_s0 = inlined_call_operand.vmem [shape: s32[768,1], index: 0, kind: input, shape index: {}]   ;;  %s3547_s1 = inlined_call_operand.vmem [shape: bf16[512,256], index: 1, kind: input, shape index: {}]   ;;  %s3548_s2 = inlined_call_operand.hbm [shape: f32[768,256], index: 2, kind: output, shape index: {}]  }
   0x1   :  { %9 = vsyncpa [#allocation3 + $0x1], 0  ;;  %s2801_s9 = smov 0   ;;  %s2803_s10 = smov 0  }
   0x2   :  { %s2805_s11 = smov 0   ;;  %s2807_s12 = smov 0  }
   0x3 LB: > { %s2822_s13 = sadd.s32 4294967295, %s2779_s12   ;;  %s2117_s14 = sadd.s32 4294967294, %s2779_s12   ;;  %s2779_s12 = sphi %s2807_s12, %s3554_s12   ;;  %s2775_s11 = sphi %s2805_s11, %s3553_s11   ;;  %s2771_s10 = sphi %s2803_s10, %s3552_s10   ;;  %s2767_s9 = sphi %s2801_s9, %s3551_s9  }
   0x4   : > { %s2826_s15 = sadd.s32 1, %s2779_s12   ;;  %s69_s16 = sadd.s32 1, %s2775_s11 }
   0x5   : > { %s66_s17 = ssub.s32 %s2779_s12, %s2826_s15  ;;  %p79_p0 = scmp.ne.s32.totalorder %s2775_s11, %s2771_s10 }
   0x6   : > { %p67_p1 = scmp.eq.s32.totalorder %s66_s17, 0  ;;  %p80_p2 = scmp.eq.s32.totalorder %s2822_s13, 1 }
   0x7   : > { %p85_p3 = scmp.ne.s32.totalorder %s2771_s10, %s2767_s9  ;;  %p86_p4 = scmp.eq.s32.totalorder %s2117_s14, 1 }
   0x8   : > { %s2837_s18 = scalar_select %p67_p1, %s2775_s11, %s69_s16  }
   0x9   : > { %p2839_p5 = por %p80_p2, %p79_p0  ;;  %p2843_p6 = por %p86_p4, %p85_p3 }
   0xa   : > { %p2120_p7 = scmp.ge.s32.totalorder %s2779_s12, 1  ;;  %p116_p8 = scmp.lt.s32.totalorder %s2779_s12, 3 }
   0xc   : > { %p117_p9 = pnand %p2120_p7, %p116_p8 }
   0xd   : > { %s138_s21 = smul.u32 (!%p117_p9), 48, %s2822_s13  ;;  %s2783_s7 = smov (!%p117_p9), [#allocation2]  }
   0xe   : > { %120 = sbr.rel (%p117_p9) target bundleno = 556 (0x22c), region = 28  ;;  %s2723_s8 = sshll.u32 (!%p117_p9), %s2783_s7, 4  ;;  %s2724_s8 = int_to_ptr.vmem [resolvable:$false] %s2723_s8 }
   0xf   : > { %p139_p10 = scmp.lt.s32.totalorder (!%p117_p9), %s138_s21, 95  ;;  %s2576_s29 = smul.u32 (!%p117_p9), 12288, %s2822_s13 }
  0x10   : > { %s2725_s14 = scalar_lea.vmem (!%p117_p9), %s2724_s8, 24576 }
  0x11   : > { %s3498_s5 = scalar_lea.hbm (!%p117_p9), %s3548_s2, %s2576_s29 }
  0x13   : > { %v2623_v0 = vld [vmem:[%s3547_s1 + $0x74] ss:$8 sps:$4 sm:$0xff]   ;;  %v2781_v1 = vmov 0   ;;  %v2627_v3 = vld [vmem:[%s3547_s1 + $0x70] ss:$8 sps:$4 sm:$0xff]   ;;  %s3556_s21 = smov (!%p139_p10, %s138_s21), 95 }
  0x14   : > { %2622 = vset.pattern.permute.xlu1 %v2781_v1  ;;  %2621 = vset.pattern.permute.xlu0 %v2781_v1  ;;  %v2625_v2 = vld [vmem:[%s3547_s1 + $0x174] ss:$8 sps:$4 sm:$0xff]   ;;  %v2628_v4 = vld [vmem:[%s3547_s1 + $0x170] ss:$8 sps:$4 sm:$0xff]   ;;  %v2629_v5 = vld [vmem:[%s3547_s1 + $0x64] ss:$8 sps:$4 sm:$0xff]  }
  0x15   : > { %1398 = vmatprep.subr.bf16.mxu0 %v2623_v0  ;;  %1671 = vmatprep.subr.bf16.mxu1 %v2625_v2  ;;  %v2631_v6 = vld [vmem:[%s3547_s1 + $0x164] ss:$8 sps:$4 sm:$0xff]   ;;  %v2633_v7 = vld [vmem:[%s3547_s1 + $0x60] ss:$8 sps:$4 sm:$0xff]   ;;  %s2121_s16 = sshll.u32 %s3556_s21, 3 }
  0x16   : > { %1399 = vmatpush1.bf16.msra.mxu0 %v2627_v3  ;;  %1672 = vmatpush1.bf16.msra.mxu1 %v2628_v4  ;;  %v2634_v8 = vld [vmem:[%s3547_s1 + $0x160] ss:$8 sps:$4 sm:$0xff]   ;;  %v2635_v9 = vld [vmem:[%s3547_s1 + $0x54] ss:$8 sps:$4 sm:$0xff]   ;;  %s2880_s25 = scalar_lea.vmem %s3546_s0, %s2121_s16  ;;  %v2639_v11 = vld [vmem:[%s3547_s1 + $0x50] ss:$8 sps:$4 sm:$0xff]  }
  0x17   : > { %1400 = vmatprep.subr.bf16.mxu0 %v2629_v5  ;;  %1673 = vmatprep.subr.bf16.mxu1 %v2631_v6  ;;  %v2637_v10 = vld [vmem:[%s3547_s1 + $0x154] ss:$8 sps:$4 sm:$0xff]   ;;  %v145_v13 = vld [vmem:[%s2880_s25] sm:$0xff]  ;;  %v2640_v14 = vld [vmem:[%s3547_s1 + $0x150] ss:$8 sps:$4 sm:$0xff]  }
  0x18   : > { %v147_v12 = vld [vmem:[%s2880_s25 + $0x10] sm:$0xff]  ;;  %199 = vperm.xlu0 %2621, %v145_v13   ;;  %v148_v15 = vld [vmem:[%s2880_s25 + $0x18] sm:$0xff]  ;;  %v146_v16 = vld [vmem:[%s2880_s25 + $0x8] sm:$0xff] }
  0x19   : > { %205 = vperm.xlu1 %2622, %v147_v12   ;;  %v150_v17 = vld [vmem:[%s2880_s25 + $0x28] sm:$0xff]  ;;  %v149_v18 = vld [vmem:[%s2880_s25 + $0x20] sm:$0xff]  ;;  %v152_v19 = vld [vmem:[%s2880_s25 + $0x38] sm:$0xff] }
  0x1a   : > { %1401 = vmatpush1.bf16.msra.mxu0 %v2633_v7  ;;  %1674 = vmatpush1.bf16.msra.mxu1 %v2634_v8  ;;  %v151_v20 = vld [vmem:[%s2880_s25 + $0x30] sm:$0xff]  ;;  %v154_v21 = vld [vmem:[%s2880_s25 + $0x48] sm:$0xff]  ;;  %v153_v22 = vld [vmem:[%s2880_s25 + $0x40] sm:$0xff] }
  0x1b   : > { %1402 = vmatprep.subr.bf16.mxu0 %v2635_v9  ;;  %1675 = vmatprep.subr.bf16.mxu1 %v2637_v10  ;;  %v2641_v23 = vld [vmem:[%s3547_s1 + $0x44] ss:$8 sps:$4 sm:$0xff]   ;;  %v2645_v25 = vld [vmem:[%s3547_s1 + $0x40] ss:$8 sps:$4 sm:$0xff]   ;;  %v156_v27 = vld [vmem:[%s2880_s25 + $0x58] sm:$0xff] }
  0x1c   : > { %202 = vperm.xlu0 %2621, %v146_v16   ;;  %v2643_v24 = vld [vmem:[%s3547_s1 + $0x144] ss:$8 sps:$4 sm:$0xff]   ;;  %v2646_v26 = vld [vmem:[%s3547_s1 + $0x140] ss:$8 sps:$4 sm:$0xff]   ;;  %v155_v28 = vld [vmem:[%s2880_s25 + $0x50] sm:$0xff] }
  0x1d   : > { %208 = vperm.xlu1 %2622, %v148_v15   ;;  %v2647_v29 = vld [vmem:[%s3547_s1 + $0x34] ss:$8 sps:$4 sm:$0xff]   ;;  %v2651_v31 = vld [vmem:[%s3547_s1 + $0x30] ss:$8 sps:$4 sm:$0xff]   ;;  %v2653_v33 = vld [vmem:[%s3547_s1 + $0x24] ss:$8 sps:$4 sm:$0xff]  }
  0x1e   : > { %1403 = vmatpush1.bf16.msra.mxu0 %v2639_v11  ;;  %1676 = vmatpush1.bf16.msra.mxu1 %v2640_v14  ;;  %v2649_v30 = vld [vmem:[%s3547_s1 + $0x134] ss:$8 sps:$4 sm:$0xff]   ;;  %v2652_v32 = vld [vmem:[%s3547_s1 + $0x130] ss:$8 sps:$4 sm:$0xff]   ;;  %v2655_v34 = vld [vmem:[%s3547_s1 + $0x124] ss:$8 sps:$4 sm:$0xff]  }
  0x1f   : > { %1404 = vmatprep.subr.bf16.mxu0 %v2641_v23  ;;  %1677 = vmatprep.subr.bf16.mxu1 %v2643_v24  ;;  %v158_v35 = vld [vmem:[%s2880_s25 + $0x68] sm:$0xff]  ;;  %v157_v36 = vld [vmem:[%s2880_s25 + $0x60] sm:$0xff]  ;;  %v2659_v39 = vld [vmem:[%s3547_s1 + $0x14] ss:$8 sps:$4 sm:$0xff]  }
  0x20   : > { %211 = vperm.xlu0 %2621, %v149_v18   ;;  %v2657_v37 = vld [vmem:[%s3547_s1 + $0x20] ss:$8 sps:$4 sm:$0xff]   ;;  %v160_v40 = vld [vmem:[%s2880_s25 + $0x78] sm:$0xff]  ;;  %v159_v41 = vld [vmem:[%s2880_s25 + $0x70] sm:$0xff] }
  0x21   : > { %214 = vperm.xlu1 %2622, %v150_v17   ;;  %v2658_v38 = vld [vmem:[%s3547_s1 + $0x120] ss:$8 sps:$4 sm:$0xff]   ;;  %v2661_v42 = vld [vmem:[%s3547_s1 + $0x114] ss:$8 sps:$4 sm:$0xff]   ;;  %v2663_v43 = vld [vmem:[%s3547_s1 + $0x10] ss:$8 sps:$4 sm:$0xff]  }
  0x22   : > { %1405 = vmatpush1.bf16.msra.mxu0 %v2645_v25  ;;  %1678 = vmatpush1.bf16.msra.mxu1 %v2646_v26  ;;  %v2664_v44 = vld [vmem:[%s3547_s1 + $0x110] ss:$8 sps:$4 sm:$0xff]   ;;  %v2665_v45 = vld [vmem:[%s3547_s1 + $0x4] ss:$8 sps:$4 sm:$0xff]   ;;  %v2669_v49 = vld [vmem:[%s3547_s1] ss:$8 sps:$4 sm:$0xff]  }
  0x23   : > { %1406 = vmatprep.subr.bf16.mxu0 %v2647_v29  ;;  %1679 = vmatprep.subr.bf16.mxu1 %v2649_v30  ;;  %v162_v46 = vld [vmem:[%s2880_s25 + $0x88] sm:$0xff]  ;;  %v161_v48 = vld [vmem:[%s2880_s25 + $0x80] sm:$0xff]  ;;  %v2671_v51 = vld [vmem:[%s3547_s1 + $0xf4] ss:$8 sps:$4 sm:$0xff]  }
  0x24   : > { %217 = vperm.xlu0 %2621, %v151_v20   ;;  %v2667_v47 = vld [vmem:[%s3547_s1 + $0x104] ss:$8 sps:$4 sm:$0xff]   ;;  %v2670_v50 = vld [vmem:[%s3547_s1 + $0x100] ss:$8 sps:$4 sm:$0xff]   ;;  %v164_v52 = vld [vmem:[%s2880_s25 + $0x98] sm:$0xff] }
  0x25   : > { %220 = vperm.xlu1 %2622, %v152_v19   ;;  %v2673_v53 = vld [vmem:[%s3547_s1 + $0x1f4] ss:$8 sps:$4 sm:$0xff]   ;;  %v2675_v55 = vld [vmem:[%s3547_s1 + $0xf0] ss:$8 sps:$4 sm:$0xff]   ;;  %v2677_v57 = vld [vmem:[%s3547_s1 + $0xe4] ss:$8 sps:$4 sm:$0xff]  }
  0x26   : > { %1407 = vmatpush1.bf16.msra.mxu0 %v2651_v31  ;;  %1680 = vmatpush1.bf16.msra.mxu1 %v2652_v32  ;;  %v163_v54 = vld [vmem:[%s2880_s25 + $0x90] sm:$0xff]  ;;  %v166_v58 = vld [vmem:[%s2880_s25 + $0xa8] sm:$0xff]  ;;  %v165_v60 = vld [vmem:[%s2880_s25 + $0xa0] sm:$0xff] }
  0x27   : > { %1408 = vmatprep.subr.bf16.mxu0 %v2653_v33  ;;  %1681 = vmatprep.subr.bf16.mxu1 %v2655_v34  ;;  %v2676_v56 = vld [vmem:[%s3547_s1 + $0x1f0] ss:$8 sps:$4 sm:$0xff]   ;;  %v2679_v59 = vld [vmem:[%s3547_s1 + $0x1e4] ss:$8 sps:$4 sm:$0xff]   ;;  %v2681_v61 = vld [vmem:[%s3547_s1 + $0xe0] ss:$8 sps:$4 sm:$0xff]  }
  0x28   : > { %223 = vperm.xlu0 %2621, %v153_v22   ;;  %v2682_v62 = vld [vmem:[%s3547_s1 + $0x1e0] ss:$8 sps:$4 sm:$0xff]   ;;  %v2683_v63 = vld [vmem:[%s3547_s1 + $0xd4] ss:$8 sps:$4 sm:$0xff]   ;;  %v2687_v3 = vld [vmem:[%s3547_s1 + $0xd0] ss:$8 sps:$4 sm:$0xff]  }
  0x29   : > { %226 = vperm.xlu1 %2622, %v154_v21   ;;  %v168_v0 = vld [vmem:[%s2880_s25 + $0xb8] sm:$0xff]  ;;  %v167_v2 = vld [vmem:[%s2880_s25 + $0xb0] sm:$0xff]  ;;  %v2689_v5 = vld [vmem:[%s3547_s1 + $0xc4] ss:$8 sps:$4 sm:$0xff]  }
  0x2a   : > { %1409 = vmatpush1.bf16.msra.mxu0 %v2657_v37  ;;  %1682 = vmatpush1.bf16.msra.mxu1 %v2658_v38  ;;  %v2685_v1 = vld [vmem:[%s3547_s1 + $0x1d4] ss:$8 sps:$4 sm:$0xff]   ;;  %v2688_v4 = vld [vmem:[%s3547_s1 + $0x1d0] ss:$8 sps:$4 sm:$0xff]   ;;  %v170_v6 = vld [vmem:[%s2880_s25 + $0xc8] sm:$0xff] }
  0x2b   : > { %1410 = vmatprep.subr.bf16.mxu0 %v2659_v39  ;;  %1683 = vmatprep.subr.bf16.mxu1 %v2661_v42  ;;  %v2691_v7 = vld [vmem:[%s3547_s1 + $0x1c4] ss:$8 sps:$4 sm:$0xff]   ;;  %v2693_v9 = vld [vmem:[%s3547_s1 + $0xc0] ss:$8 sps:$4 sm:$0xff]   ;;  %v2695_v11 = vld [vmem:[%s3547_s1 + $0xb4] ss:$8 sps:$4 sm:$0xff]  }
  0x2c   : > { %229 = vperm.xlu0 %2621, %v155_v28   ;;  %v169_v8 = vld [vmem:[%s2880_s25 + $0xc0] sm:$0xff]  ;;  %v2697_v12 = vld [vmem:[%s3547_s1 + $0x1b4] ss:$8 sps:$4 sm:$0xff]   ;;  %v2699_v15 = vld [vmem:[%s3547_s1 + $0xb0] ss:$8 sps:$4 sm:$0xff]  }
  0x2d   : > { %232 = vperm.xlu1 %2622, %v156_v27   ;;  %v2694_v10 = vld [vmem:[%s3547_s1 + $0x1c0] ss:$8 sps:$4 sm:$0xff]   ;;  %v172_v13 = vld [vmem:[%s2880_s25 + $0xd8] sm:$0xff]  ;;  %v171_v14 = vld [vmem:[%s2880_s25 + $0xd0] sm:$0xff] }
  0x2e   : > { %1411 = vmatpush1.bf16.msra.mxu0 %v2663_v43  ;;  %1684 = vmatpush1.bf16.msra.mxu1 %v2664_v44  ;;  %v2700_v16 = vld [vmem:[%s3547_s1 + $0x1b0] ss:$8 sps:$4 sm:$0xff]   ;;  %v2701_v17 = vld [vmem:[%s3547_s1 + $0xa4] ss:$8 sps:$4 sm:$0xff]   ;;  %v2705_v21 = vld [vmem:[%s3547_s1 + $0xa0] ss:$8 sps:$4 sm:$0xff]  }
  0x2f   : > { %1412 = vmatprep.subr.bf16.mxu0 %v2665_v45  ;;  %1685 = vmatprep.subr.bf16.mxu1 %v2667_v47  ;;  %v2703_v18 = vld [vmem:[%s3547_s1 + $0x1a4] ss:$8 sps:$4 sm:$0xff]   ;;  %v2706_v22 = vld [vmem:[%s3547_s1 + $0x1a0] ss:$8 sps:$4 sm:$0xff]   ;;  %v2707_v23 = vld [vmem:[%s3547_s1 + $0x94] ss:$8 sps:$4 sm:$0xff]  }
  0x30   : > { %235 = vperm.xlu0 %2621, %v157_v36   ;;  %v174_v19 = vld [vmem:[%s2880_s25 + $0xe8] sm:$0xff]  ;;  %v173_v20 = vld [vmem:[%s2880_s25 + $0xe0] sm:$0xff]  ;;  %v2709_v24 = vld [vmem:[%s3547_s1 + $0x194] ss:$8 sps:$4 sm:$0xff]  }
  0x31   : > { %238 = vperm.xlu1 %2622, %v158_v35   ;;  %v176_v25 = vld [vmem:[%s2880_s25 + $0xf8] sm:$0xff]  ;;  %v175_v26 = vld [vmem:[%s2880_s25 + $0xf0] sm:$0xff]  ;;  %v2713_v29 = vld [vmem:[%s3547_s1 + $0x84] ss:$8 sps:$4 sm:$0xff]  }
  0x32   : > { %1413 = vmatpush1.bf16.msra.mxu0 %v2669_v49  ;;  %1686 = vmatpush1.bf16.msra.mxu1 %v2670_v50  ;;  %v2711_v27 = vld [vmem:[%s3547_s1 + $0x90] ss:$8 sps:$4 sm:$0xff]   ;;  %v2715_v30 = vld [vmem:[%s3547_s1 + $0x184] ss:$8 sps:$4 sm:$0xff]   ;;  %v2717_v33 = vld [vmem:[%s3547_s1 + $0x80] ss:$8 sps:$4 sm:$0xff]   ;;  %v193_v49 = vlaneseq }
  0x33   : > { %1414 = vmatprep.subr.bf16.mxu0 %v2671_v51  ;;  %1687 = vmatprep.subr.bf16.mxu1 %v2673_v53  ;;  %v2712_v28 = vld [vmem:[%s3547_s1 + $0x190] ss:$8 sps:$4 sm:$0xff]   ;;  %v178_v31 = vld [vmem:[%s2880_s25 + $0x108] sm:$0xff]  ;;  %v177_v32 = vld [vmem:[%s2880_s25 + $0x100] sm:$0xff] }
  0x34   : > { %241 = vperm.xlu0 %2621, %v159_v41   ;;  %v2718_v34 = vld [vmem:[%s3547_s1 + $0x180] ss:$8 sps:$4 sm:$0xff]   ;;  %v180_v35 = vld [vmem:[%s2880_s25 + $0x118] sm:$0xff]  ;;  %v179_v36 = vld [vmem:[%s2880_s25 + $0x110] sm:$0xff]  ;;  %v3095_v50 = vand.u32 127, %v193_v49 }
  0x35   : > { %244 = vperm.xlu1 %2622, %v160_v40   ;;  %v182_v37 = vld [vmem:[%s2880_s25 + $0x128] sm:$0xff]  ;;  %v181_v38 = vld [vmem:[%s2880_s25 + $0x120] sm:$0xff]  ;;  %v184_v39 = vld [vmem:[%s2880_s25 + $0x138] sm:$0xff] }
  0x36   : > { %1415 = vmatpush2.bf16.msra.mxu0 %v2675_v55  ;;  %1688 = vmatpush2.bf16.msra.mxu1 %v2676_v56  ;;  %v183_v40 = vld [vmem:[%s2880_s25 + $0x130] sm:$0xff]  ;;  %v186_v41 = vld [vmem:[%s2880_s25 + $0x148] sm:$0xff]  ;;  %v185_v42 = vld [vmem:[%s2880_s25 + $0x140] sm:$0xff]  ;;  %v3098_v53 = vadd.s32 128, %v3095_v50  ;;  %v3104_v56 = vadd.s32 256, %v3095_v50 }
  0x37   : > { %1416 = vmatprep.subr.bf16.mxu0 %v2677_v57  ;;  %1689 = vmatprep.subr.bf16.mxu1 %v2679_v59  ;;  %v188_v43 = vld [vmem:[%s2880_s25 + $0x158] sm:$0xff]  ;;  %v187_v44 = vld [vmem:[%s2880_s25 + $0x150] sm:$0xff]  ;;  %v190_v45 = vld [vmem:[%s2880_s25 + $0x168] sm:$0xff] }
  0x38   : > { %247 = vperm.xlu0 %2621, %v161_v48   ;;  %v192_v47 = vld [vmem:[%s2880_s25 + $0x178] sm:$0xff]  ;;  %v191_v48 = vld [vmem:[%s2880_s25 + $0x170] sm:$0xff] }
  0x39   : > { %250 = vperm.xlu1 %2622, %v162_v46   ;;  %v189_v46 = vld [vmem:[%s2880_s25 + $0x160] sm:$0xff]  ;;  %s135_s25 = sand.u32 1, %s2771_s10  }
  0x3a   : > { %1417 = vmatpush2.bf16.msra.mxu0 %v2681_v61  ;;  %1690 = vmatpush2.bf16.msra.mxu1 %v2682_v62  ;;  %s2577_s28 = smul.u32 768, %s135_s25  ;;  %s3506_s13 = scalar_lea.sflag [#allocation3], %s135_s25 }
  0x3b   : > { %1418 = vmatprep.subr.bf16.mxu0 %v2683_v63  ;;  %1691 = vmatprep.subr.bf16.mxu1 %v2685_v1 }
  0x3c   : > { %253 = vperm.xlu0 %2621, %v163_v54   ;;  %v3101_v54 = vadd.s32 384, %v3095_v50  ;;  %s3397_s21 = scalar_lea.vmem [#allocation2], %s2577_s28 }
  0x3d   : > { %256 = vperm.xlu1 %2622, %v164_v52   ;;  %s2055_s30 = sshll.u32 %s3397_s21, 4  ;;  %s3501_s30 = int_to_ptr.vmem [resolvable:$true] %s2055_s30 }
  0x3e   : > { %1419 = vmatpush2.bf16.msra.mxu0 %v2687_v3  ;;  %1692 = vmatpush2.bf16.msra.mxu1 %v2688_v4  ;;  %s2719_s6 = scalar_lea.vmem %s3501_s30, 12288  ;;  %p2726_p0 = scmp.lt.s32.totalorder %s3501_s30, %s2724_s8 }
  0x3f   : > { %1420 = vmatprep.subr.bf16.mxu0 %v2689_v5  ;;  %1693 = vmatprep.subr.bf16.mxu1 %v2691_v7  ;;  %p2720_p11 = scmp.ne.s32.totalorder %s3501_s30, %s2719_s6  ;;  %p2727_p1 = scmp.lt.s32.totalorder %s2725_s14, %s2719_s6 }
  0x40   : > { %259 = vperm.xlu0 %2621, %v165_v60  }
  0x41   : > { %262 = vperm.xlu1 %2622, %v166_v58   ;;  %v2782_v58 = vmov 1.0|1.0   ;;  %p2721_p12 = pnand %p2720_p11, %p2839_p5  ;;  %p2728_p2 = por %p2727_p1, %p2726_p0 }
  0x42   : > { %1421 = vmatpush2.bf16.msra.mxu0 %v2693_v9  ;;  %1694 = vmatpush2.bf16.msra.mxu1 %v2694_v10 }
  0x43   : > { %1422 = vmatprep.subr.bf16.mxu0 %v2695_v11  ;;  %1695 = vmatprep.subr.bf16.mxu1 %v2697_v12  ;;  %p2722_p13 = pneg %p2721_p12 }
  0x44   : > { %265 = vperm.xlu0 %2621, %v167_v2  }
  0x45   : > { %268 = vperm.xlu1 %2622, %v168_v0   ;;  %p2729_p3 = pnand %p2728_p2, %p2722_p13 }
  0x46   : > { %1423 = vmatpush2.bf16.msra.mxu0 %v2699_v15  ;;  %1696 = vmatpush2.bf16.msra.mxu1 %v2700_v16 }
  0x47   : > { %1424 = vmatprep.subr.bf16.mxu0 %v2701_v17  ;;  %1697 = vmatprep.subr.bf16.mxu1 %v2703_v18 }
  0x48   : > { %271 = vperm.xlu0 %2621, %v169_v8  }
  0x49   : > { %274 = vperm.xlu1 %2622, %v170_v6  }
  0x4a   : > { %1425 = vmatpush2.bf16.msra.mxu0 %v2705_v21  ;;  %1698 = vmatpush2.bf16.msra.mxu1 %v2706_v22 }
  0x4b   : > { %1426 = vmatprep.subr.bf16.mxu0 %v2707_v23  ;;  %1699 = vmatprep.subr.bf16.mxu1 %v2709_v24 }
  0x4c   : > { %277 = vperm.xlu0 %2621, %v171_v14  }
  0x4d   : > { %280 = vperm.xlu1 %2622, %v172_v13  }
  0x4e   : > { %1427 = vmatpush2.bf16.msra.mxu0 %v2711_v27  ;;  %1700 = vmatpush2.bf16.msra.mxu1 %v2712_v28 }
  0x4f   : > { %1428 = vmatprep.subr.bf16.mxu0 %v2713_v29  ;;  %1701 = vmatprep.subr.bf16.mxu1 %v2715_v30 }
  0x50   : > { %283 = vperm.xlu0 %2621, %v173_v20  }
  0x51   : > { %286 = vperm.xlu1 %2622, %v174_v19  }
  0x52   : > { %1429 = vmatpush2.bf16.msra.mxu0 %v2717_v33  ;;  %1702 = vmatpush2.bf16.msra.mxu1 %v2718_v34 }
  0x54   : > { %289 = vperm.xlu0 %2621, %v175_v26  }
  0x55   : > { %292 = vperm.xlu1 %2622, %v176_v25  }
  0x58   : > { %295 = vperm.xlu0 %2621, %v177_v32  }
  0x59   : > { %298 = vperm.xlu1 %2622, %v178_v31  }
  0x5c   : > { %301 = vperm.xlu0 %2621, %v179_v36  }
  0x5d   : > { %304 = vperm.xlu1 %2622, %v180_v35  }
  0x60   : > { %307 = vperm.xlu0 %2621, %v181_v38  }
  0x61   : > { %310 = vperm.xlu1 %2622, %v182_v37  }
  0x64   : > { %313 = vperm.xlu0 %2621, %v183_v40  }
  0x65   : > { %316 = vperm.xlu1 %2622, %v184_v39  }
  0x68   : > { %319 = vperm.xlu0 %2621, %v185_v42  }
  0x69   : > { %322 = vperm.xlu1 %2622, %v186_v41  }
  0x6c   : > { %325 = vperm.xlu0 %2621, %v187_v44  }
  0x6d   : > { %328 = vperm.xlu1 %2622, %v188_v43  }
  0x70   : > { %331 = vperm.xlu0 %2621, %v189_v46  }
  0x71   : > { %334 = vperm.xlu1 %2622, %v190_v45  }
  0x74   : > { %337 = vperm.xlu0 %2621, %v191_v48  }
  0x75   : > { %340 = vperm.xlu1 %2622, %v192_v47  }
  0x93   : > { %v200_v52 = vpop.permute.xlu0 %199 }
  0x94   : > { %v206_v51 = vpop.permute.xlu1 %205  ;;  %vm343_vm0 = vcmp.eq.s32.totalorder %v3098_v53, %v200_v52  ;;  %vm345_vm5 = vcmp.eq.s32.totalorder %v3101_v54, %v200_v52  ;;  %vm342_vm8 = vcmp.eq.s32.totalorder %v3095_v50, %v200_v52  ;;  %vm344_vm12 = vcmp.eq.s32.totalorder %v3104_v56, %v200_v52 }
  0x95   : > { %vm351_vm9 = vcmp.eq.s32.totalorder %v3098_v53, %v206_v51  ;;  %vm353_vm13 = vcmp.eq.s32.totalorder %v3101_v54, %v206_v51 }
  0x97   : > { %v203_v55 = vpop.permute.xlu0 %202 }
  0x98   : > { %v209_v57 = vpop.permute.xlu1 %208  ;;  %vm347_vm1 = vcmp.eq.s32.totalorder %v3098_v53, %v203_v55  ;;  %vm349_vm2 = vcmp.eq.s32.totalorder %v3101_v54, %v203_v55  ;;  %vm346_vm3 = vcmp.eq.s32.totalorder %v3095_v50, %v203_v55  ;;  %vm348_vm6 = vcmp.eq.s32.totalorder %v3104_v56, %v203_v55 }
  0x99   : > { %vm2378_vm4 = vmpackc.low %vm347_vm1, %vm343_vm0  ;;  %vm355_vm10 = vcmp.eq.s32.totalorder %v3098_v53, %v209_v57  ;;  %vm357_vm14 = vcmp.eq.s32.totalorder %v3101_v54, %v209_v57 }
  0x9a   : > { %2379 = vmatprep.mubr.msk.bf16.mxu0 %vm2378_vm4, %v2782_v58  ;;  %vm2474_vm7 = vmpackc.low %vm349_vm2, %vm345_vm5  ;;  %vm350_vm2 = vcmp.eq.s32.totalorder %v3095_v50, %v206_v51  ;;  %vm352_vm4 = vcmp.eq.s32.totalorder %v3104_v56, %v206_v51  ;;  %vm356_vm5 = vcmp.eq.s32.totalorder %v3104_v56, %v209_v57 }
  0x9b   : > { %2475 = vmatprep.mubr.msk.bf16.mxu1 %vm2474_vm7, %v2782_v58  ;;  %vm2380_vm11 = vmpackc.low %vm346_vm3, %vm342_vm8  ;;  %v212_v60 = vpop.permute.xlu0 %211  ;;  %vm354_vm3 = vcmp.eq.s32.totalorder %v3095_v50, %v209_v57 }
  0x9c   : > { %2381 = vmatmul.mubr.msk.bf16.vlgmr.msra.gmra.mxu0 %vm2380_vm11, %v2782_v58  ;;  %vm2476_vm15 = vmpackc.low %vm348_vm6, %vm344_vm12  ;;  %v215_v59 = vpop.permute.xlu1 %214  ;;  %vm359_vm6 = vcmp.eq.s32.totalorder %v3098_v53, %v212_v60 }
  0x9d   : > { %2477 = vmatmul.mubr.msk.bf16.vlgmr.msra.gmra.mxu1 %vm2476_vm15, %v2782_v58  ;;  %vm2382_vm0 = vmpackc.low %vm355_vm10, %vm351_vm9  ;;  %vm363_vm7 = vcmp.eq.s32.totalorder %v3098_v53, %v215_v59  ;;  %vm361_vm9 = vcmp.eq.s32.totalorder %v3101_v54, %v212_v60  ;;  %vm365_vm10 = vcmp.eq.s32.totalorder %v3101_v54, %v215_v59  ;;  %vm362_vm15 = vcmp.eq.s32.totalorder %v3095_v50, %v215_v59 }
  0x9e   : > { %2383 = vmatprep.mubr.msk.bf16.mxu0 %vm2382_vm0, %v2782_v58  ;;  %vm2478_vm1 = vmpackc.low %vm357_vm14, %vm353_vm13  ;;  %vm358_vm14 = vcmp.eq.s32.totalorder %v3095_v50, %v212_v60  ;;  %vm360_vm0 = vcmp.eq.s32.totalorder %v3104_v56, %v212_v60 }
  0x9f   : > { %2479 = vmatprep.mubr.msk.bf16.mxu1 %vm2478_vm1, %v2782_v58  ;;  %vm2384_vm8 = vmpackc.low %vm354_vm3, %vm350_vm2  ;;  %v218_v62 = vpop.permute.xlu0 %217  ;;  %vm364_vm1 = vcmp.eq.s32.totalorder %v3104_v56, %v215_v59 }
  0xa0   : > { %vm2480_vm11 = vmpackc.low %vm356_vm5, %vm352_vm4  ;;  %v221_v61 = vpop.permute.xlu1 %220  ;;  %vm367_vm2 = vcmp.eq.s32.totalorder %v3098_v53, %v218_v62  ;;  %vm369_vm5 = vcmp.eq.s32.totalorder %v3101_v54, %v218_v62 }
  0xa1   : > { %vm2386_vm12 = vmpackc.low %vm363_vm7, %vm359_vm6  ;;  %vm371_vm3 = vcmp.eq.s32.totalorder %v3098_v53, %v221_v61  ;;  %vm373_vm6 = vcmp.eq.s32.totalorder %v3101_v54, %v221_v61 }
  0xa2   : > { %vm2482_vm13 = vmpackc.low %vm365_vm10, %vm361_vm9  ;;  %vm366_vm10 = vcmp.eq.s32.totalorder %v3095_v50, %v218_v62 }
  0xa3   : > { %vm2388_vm4 = vmpackc.low %vm362_vm15, %vm358_vm14  ;;  %v224_v0 = vpop.permute.xlu0 %223 }
  0xa4   : > { %2385 = vmatmul.mubr.msk.bf16.gmra.mxu0 %vm2384_vm8, %v2782_v58  ;;  %vm2484_vm7 = vmpackc.low %vm364_vm1, %vm360_vm0  ;;  %v227_v63 = vpop.permute.xlu1 %226  ;;  %vm375_vm14 = vcmp.eq.s32.totalorder %v3098_v53, %v224_v0  ;;  %vm377_vm1 = vcmp.eq.s32.totalorder %v3101_v54, %v224_v0 }
  0xa5   : > { %2481 = vmatmul.mubr.msk.bf16.gmra.mxu1 %vm2480_vm11, %v2782_v58  ;;  %2387 = vmatprep.mubr.msk.bf16.mxu0 %vm2386_vm12, %v2782_v58  ;;  %vm2390_vm8 = vmpackc.low %vm371_vm3, %vm367_vm2  ;;  %vm370_vm11 = vcmp.eq.s32.totalorder %v3095_v50, %v221_v61  ;;  %vm368_vm12 = vcmp.eq.s32.totalorder %v3104_v56, %v218_v62  ;;  %vm379_vm15 = vcmp.eq.s32.totalorder %v3098_v53, %v227_v63 }
  0xa6   : > { %2483 = vmatprep.mubr.msk.bf16.mxu1 %vm2482_vm13, %v2782_v58  ;;  %vm2486_vm9 = vmpackc.low %vm373_vm6, %vm369_vm5  ;;  %vm372_vm13 = vcmp.eq.s32.totalorder %v3104_v56, %v221_v61  ;;  %vm381_vm2 = vcmp.eq.s32.totalorder %v3101_v54, %v227_v63  ;;  %vm374_vm6 = vcmp.eq.s32.totalorder %v3095_v50, %v224_v0 }
  0xa7   : > { %vm2392_vm0 = vmpackc.low %vm370_vm11, %vm366_vm10  ;;  %v230_v2 = vpop.permute.xlu0 %229 }
  0xa8   : > { %vm2488_vm3 = vmpackc.low %vm372_vm13, %vm368_vm12  ;;  %v233_v1 = vpop.permute.xlu1 %232  ;;  %vm383_vm10 = vcmp.eq.s32.totalorder %v3098_v53, %v230_v2  ;;  %vm385_vm13 = vcmp.eq.s32.totalorder %v3101_v54, %v230_v2 }
  0xa9   : > { %vm2490_vm5 = vmpackc.low %vm381_vm2, %vm377_vm1  ;;  %vm387_vm11 = vcmp.eq.s32.totalorder %v3098_v53, %v233_v1  ;;  %vm382_vm2 = vcmp.eq.s32.totalorder %v3095_v50, %v230_v2 }
  0xab   : > { %v236_v4 = vpop.permute.xlu0 %235 }
  0xac   : > { %2389 = vmatmul.mubr.msk.bf16.gmra.mxu0 %vm2388_vm4, %v2782_v58  ;;  %vm2394_vm4 = vmpackc.low %vm379_vm15, %vm375_vm14  ;;  %vm389_vm14 = vcmp.eq.s32.totalorder %v3101_v54, %v233_v1  ;;  %v239_v3 = vpop.permute.xlu1 %238 }
  0xad   : > { %2485 = vmatmul.mubr.msk.bf16.gmra.mxu1 %vm2484_vm7, %v2782_v58  ;;  %2391 = vmatprep.mubr.msk.bf16.mxu0 %vm2390_vm8, %v2782_v58  ;;  %vm378_vm7 = vcmp.eq.s32.totalorder %v3095_v50, %v227_v63  ;;  %vm376_vm8 = vcmp.eq.s32.totalorder %v3104_v56, %v224_v0  ;;  %vm2494_vm1 = vmpackc.low %vm389_vm14, %vm385_vm13  ;;  %vm390_vm14 = vcmp.eq.s32.totalorder %v3095_v50, %v236_v4 }
  0xae   : > { %2487 = vmatprep.mubr.msk.bf16.mxu1 %vm2486_vm9, %v2782_v58  ;;  %vm380_vm9 = vcmp.eq.s32.totalorder %v3104_v56, %v227_v63  ;;  %vm2396_vm12 = vmpackc.low %vm378_vm7, %vm374_vm6  ;;  %vm391_vm6 = vcmp.eq.s32.totalorder %v3098_v53, %v236_v4  ;;  %vm395_vm7 = vcmp.eq.s32.totalorder %v3098_v53, %v239_v3 }
  0xaf   : > { %vm2492_vm15 = vmpackc.low %vm380_vm9, %vm376_vm8  ;;  %vm393_vm9 = vcmp.eq.s32.totalorder %v3101_v54, %v236_v4  ;;  %v242_v6 = vpop.permute.xlu0 %241 }
  0xb0   : > { %v245_v5 = vpop.permute.xlu1 %244 }
  0xb3   : > { %v248_v8 = vpop.permute.xlu0 %247 }
  0xb4   : > { %2393 = vmatmul.mubr.msk.bf16.gmra.mxu0 %vm2392_vm0, %v2782_v58  ;;  %vm2398_vm0 = vmpackc.low %vm387_vm11, %vm383_vm10  ;;  %vm397_vm10 = vcmp.eq.s32.totalorder %v3101_v54, %v239_v3  ;;  %v251_v7 = vpop.permute.xlu1 %250 }
  0xb5   : > { %2489 = vmatmul.mubr.msk.bf16.gmra.mxu1 %vm2488_vm3, %v2782_v58  ;;  %2395 = vmatprep.mubr.msk.bf16.mxu0 %vm2394_vm4, %v2782_v58  ;;  %vm386_vm3 = vcmp.eq.s32.totalorder %v3095_v50, %v233_v1  ;;  %vm384_vm4 = vcmp.eq.s32.totalorder %v3104_v56, %v230_v2  ;;  %vm2498_vm13 = vmpackc.low %vm397_vm10, %vm393_vm9  ;;  %vm398_vm10 = vcmp.eq.s32.totalorder %v3095_v50, %v242_v6 }
  0xb6   : > { %2491 = vmatprep.mubr.msk.bf16.mxu1 %vm2490_vm5, %v2782_v58  ;;  %vm388_vm5 = vcmp.eq.s32.totalorder %v3104_v56, %v233_v1  ;;  %vm2400_vm8 = vmpackc.low %vm386_vm3, %vm382_vm2  ;;  %vm399_vm2 = vcmp.eq.s32.totalorder %v3098_v53, %v242_v6  ;;  %vm403_vm3 = vcmp.eq.s32.totalorder %v3098_v53, %v245_v5 }
  0xb7   : > { %vm2496_vm11 = vmpackc.low %vm388_vm5, %vm384_vm4  ;;  %vm401_vm5 = vcmp.eq.s32.totalorder %v3101_v54, %v242_v6  ;;  %v254_v10 = vpop.permute.xlu0 %253 }
  0xb8   : > { %v257_v9 = vpop.permute.xlu1 %256 }
  0xbb   : > { %v260_v12 = vpop.permute.xlu0 %259 }
  0xbc   : > { %2397 = vmatmul.mubr.msk.bf16.gmra.mxu0 %vm2396_vm12, %v2782_v58  ;;  %vm2402_vm12 = vmpackc.low %vm395_vm7, %vm391_vm6  ;;  %vm405_vm6 = vcmp.eq.s32.totalorder %v3101_v54, %v245_v5  ;;  %v263_v11 = vpop.permute.xlu1 %262 }
  0xbd   : > { %2493 = vmatmul.mubr.msk.bf16.gmra.mxu1 %vm2492_vm15, %v2782_v58  ;;  %2399 = vmatprep.mubr.msk.bf16.mxu0 %vm2398_vm0, %v2782_v58  ;;  %vm394_vm15 = vcmp.eq.s32.totalorder %v3095_v50, %v239_v3  ;;  %vm392_vm0 = vcmp.eq.s32.totalorder %v3104_v56, %v236_v4  ;;  %vm2502_vm9 = vmpackc.low %vm405_vm6, %vm401_vm5  ;;  %vm406_vm6 = vcmp.eq.s32.totalorder %v3095_v50, %v248_v8 }
  0xbe   : > { %2495 = vmatprep.mubr.msk.bf16.mxu1 %vm2494_vm1, %v2782_v58  ;;  %vm396_vm1 = vcmp.eq.s32.totalorder %v3104_v56, %v239_v3  ;;  %vm2404_vm4 = vmpackc.low %vm394_vm15, %vm390_vm14  ;;  %vm407_vm14 = vcmp.eq.s32.totalorder %v3098_v53, %v248_v8  ;;  %vm411_vm15 = vcmp.eq.s32.totalorder %v3098_v53, %v251_v7 }
  0xbf   : > { %vm2500_vm7 = vmpackc.low %vm396_vm1, %vm392_vm0  ;;  %vm409_vm1 = vcmp.eq.s32.totalorder %v3101_v54, %v248_v8  ;;  %v266_v14 = vpop.permute.xlu0 %265 }
  0xc0   : > { %v269_v13 = vpop.permute.xlu1 %268 }
  0xc3   : > { %v272_v16 = vpop.permute.xlu0 %271 }
  0xc4   : > { %2401 = vmatmul.mubr.msk.bf16.gmra.mxu0 %vm2400_vm8, %v2782_v58  ;;  %vm2406_vm8 = vmpackc.low %vm403_vm3, %vm399_vm2  ;;  %vm413_vm2 = vcmp.eq.s32.totalorder %v3101_v54, %v251_v7  ;;  %v275_v15 = vpop.permute.xlu1 %274 }
  0xc5   : > { %2497 = vmatmul.mubr.msk.bf16.gmra.mxu1 %vm2496_vm11, %v2782_v58  ;;  %2403 = vmatprep.mubr.msk.bf16.mxu0 %vm2402_vm12, %v2782_v58  ;;  %vm402_vm11 = vcmp.eq.s32.totalorder %v3095_v50, %v245_v5  ;;  %vm400_vm12 = vcmp.eq.s32.totalorder %v3104_v56, %v242_v6  ;;  %vm2506_vm5 = vmpackc.low %vm413_vm2, %vm409_vm1  ;;  %vm414_vm2 = vcmp.eq.s32.totalorder %v3095_v50, %v254_v10 }
  0xc6   : > { %2499 = vmatprep.mubr.msk.bf16.mxu1 %vm2498_vm13, %v2782_v58  ;;  %vm404_vm13 = vcmp.eq.s32.totalorder %v3104_v56, %v245_v5  ;;  %vm2408_vm0 = vmpackc.low %vm402_vm11, %vm398_vm10  ;;  %vm415_vm10 = vcmp.eq.s32.totalorder %v3098_v53, %v254_v10  ;;  %vm419_vm11 = vcmp.eq.s32.totalorder %v3098_v53, %v257_v9 }
  0xc7   : > { %vm2504_vm3 = vmpackc.low %vm404_vm13, %vm400_vm12  ;;  %vm417_vm13 = vcmp.eq.s32.totalorder %v3101_v54, %v254_v10  ;;  %v278_v18 = vpop.permute.xlu0 %277 }
  0xc8   : > { %v281_v17 = vpop.permute.xlu1 %280 }
  0xcb   : > { %v284_v20 = vpop.permute.xlu0 %283 }
  0xcc   : > { %2405 = vmatmul.mubr.msk.bf16.gmra.mxu0 %vm2404_vm4, %v2782_v58  ;;  %vm2410_vm4 = vmpackc.low %vm411_vm15, %vm407_vm14  ;;  %vm421_vm14 = vcmp.eq.s32.totalorder %v3101_v54, %v257_v9  ;;  %v287_v19 = vpop.permute.xlu1 %286 }
  0xcd   : > { %2501 = vmatmul.mubr.msk.bf16.gmra.mxu1 %vm2500_vm7, %v2782_v58  ;;  %2407 = vmatprep.mubr.msk.bf16.mxu0 %vm2406_vm8, %v2782_v58  ;;  %vm410_vm7 = vcmp.eq.s32.totalorder %v3095_v50, %v251_v7  ;;  %vm408_vm8 = vcmp.eq.s32.totalorder %v3104_v56, %v248_v8  ;;  %vm2510_vm1 = vmpackc.low %vm421_vm14, %vm417_vm13  ;;  %vm422_vm14 = vcmp.eq.s32.totalorder %v3095_v50, %v260_v12 }
  0xce   : > { %2503 = vmatprep.mubr.msk.bf16.mxu1 %vm2502_vm9, %v2782_v58  ;;  %vm412_vm9 = vcmp.eq.s32.totalorder %v3104_v56, %v251_v7  ;;  %vm2412_vm12 = vmpackc.low %vm410_vm7, %vm406_vm6  ;;  %vm423_vm6 = vcmp.eq.s32.totalorder %v3098_v53, %v260_v12  ;;  %vm427_vm7 = vcmp.eq.s32.totalorder %v3098_v53, %v263_v11 }
  0xcf   : > { %vm2508_vm15 = vmpackc.low %vm412_vm9, %vm408_vm8  ;;  %vm425_vm9 = vcmp.eq.s32.totalorder %v3101_v54, %v260_v12  ;;  %v290_v22 = vpop.permute.xlu0 %289 }
  0xd0   : > { %v293_v21 = vpop.permute.xlu1 %292 }
  0xd3   : > { %v296_v24 = vpop.permute.xlu0 %295 }
  0xd4   : > { %2409 = vmatmul.mubr.msk.bf16.gmra.mxu0 %vm2408_vm0, %v2782_v58  ;;  %vm2414_vm0 = vmpackc.low %vm419_vm11, %vm415_vm10  ;;  %vm429_vm10 = vcmp.eq.s32.totalorder %v3101_v54, %v263_v11  ;;  %v299_v23 = vpop.permute.xlu1 %298 }
  0xd5   : > { %2505 = vmatmul.mubr.msk.bf16.gmra.mxu1 %vm2504_vm3, %v2782_v58  ;;  %2411 = vmatprep.mubr.msk.bf16.mxu0 %vm2410_vm4, %v2782_v58  ;;  %vm418_vm3 = vcmp.eq.s32.totalorder %v3095_v50, %v257_v9  ;;  %vm416_vm4 = vcmp.eq.s32.totalorder %v3104_v56, %v254_v10  ;;  %vm2514_vm13 = vmpackc.low %vm429_vm10, %vm425_vm9  ;;  %vm430_vm10 = vcmp.eq.s32.totalorder %v3095_v50, %v266_v14 }
  0xd6   : > { %2507 = vmatprep.mubr.msk.bf16.mxu1 %vm2506_vm5, %v2782_v58  ;;  %vm420_vm5 = vcmp.eq.s32.totalorder %v3104_v56, %v257_v9  ;;  %vm2416_vm8 = vmpackc.low %vm418_vm3, %vm414_vm2  ;;  %vm431_vm2 = vcmp.eq.s32.totalorder %v3098_v53, %v266_v14  ;;  %vm435_vm3 = vcmp.eq.s32.totalorder %v3098_v53, %v269_v13 }
  0xd7   : > { %vm2512_vm11 = vmpackc.low %vm420_vm5, %vm416_vm4  ;;  %vm433_vm5 = vcmp.eq.s32.totalorder %v3101_v54, %v266_v14  ;;  %v302_v26 = vpop.permute.xlu0 %301 }
  0xd8   : > { %v305_v25 = vpop.permute.xlu1 %304 }
  0xdb   : > { %v308_v28 = vpop.permute.xlu0 %307 }
  0xdc   : > { %2413 = vmatmul.mubr.msk.bf16.gmra.mxu0 %vm2412_vm12, %v2782_v58  ;;  %vm2418_vm12 = vmpackc.low %vm427_vm7, %vm423_vm6  ;;  %vm437_vm6 = vcmp.eq.s32.totalorder %v3101_v54, %v269_v13  ;;  %v311_v27 = vpop.permute.xlu1 %310 }
  0xdd   : > { %2509 = vmatmul.mubr.msk.bf16.gmra.mxu1 %vm2508_vm15, %v2782_v58  ;;  %2415 = vmatprep.mubr.msk.bf16.mxu0 %vm2414_vm0, %v2782_v58  ;;  %vm426_vm15 = vcmp.eq.s32.totalorder %v3095_v50, %v263_v11  ;;  %vm424_vm0 = vcmp.eq.s32.totalorder %v3104_v56, %v260_v12  ;;  %vm2518_vm9 = vmpackc.low %vm437_vm6, %vm433_vm5  ;;  %vm438_vm6 = vcmp.eq.s32.totalorder %v3095_v50, %v272_v16 }
  0xde   : > { %2511 = vmatprep.mubr.msk.bf16.mxu1 %vm2510_vm1, %v2782_v58  ;;  %vm428_vm1 = vcmp.eq.s32.totalorder %v3104_v56, %v263_v11  ;;  %vm2420_vm4 = vmpackc.low %vm426_vm15, %vm422_vm14  ;;  %vm439_vm14 = vcmp.eq.s32.totalorder %v3098_v53, %v272_v16  ;;  %vm443_vm15 = vcmp.eq.s32.totalorder %v3098_v53, %v275_v15 }
  0xdf   : > { %vm2516_vm7 = vmpackc.low %vm428_vm1, %vm424_vm0  ;;  %vm441_vm1 = vcmp.eq.s32.totalorder %v3101_v54, %v272_v16  ;;  %v314_v30 = vpop.permute.xlu0 %313 }
  0xe0   : > { %v317_v29 = vpop.permute.xlu1 %316 }
  0xe3   : > { %v320_v32 = vpop.permute.xlu0 %319 }
  0xe4   : > { %2417 = vmatmul.mubr.msk.bf16.gmra.mxu0 %vm2416_vm8, %v2782_v58  ;;  %vm2422_vm8 = vmpackc.low %vm435_vm3, %vm431_vm2  ;;  %vm445_vm2 = vcmp.eq.s32.totalorder %v3101_v54, %v275_v15  ;;  %v323_v31 = vpop.permute.xlu1 %322 }
  0xe5   : > { %2513 = vmatmul.mubr.msk.bf16.gmra.mxu1 %vm2512_vm11, %v2782_v58  ;;  %2419 = vmatprep.mubr.msk.bf16.mxu0 %vm2418_vm12, %v2782_v58  ;;  %vm434_vm11 = vcmp.eq.s32.totalorder %v3095_v50, %v269_v13  ;;  %vm432_vm12 = vcmp.eq.s32.totalorder %v3104_v56, %v266_v14  ;;  %vm2522_vm5 = vmpackc.low %vm445_vm2, %vm441_vm1  ;;  %vm446_vm2 = vcmp.eq.s32.totalorder %v3095_v50, %v278_v18 }
  0xe6   : > { %2515 = vmatprep.mubr.msk.bf16.mxu1 %vm2514_vm13, %v2782_v58  ;;  %vm436_vm13 = vcmp.eq.s32.totalorder %v3104_v56, %v269_v13  ;;  %vm2424_vm0 = vmpackc.low %vm434_vm11, %vm430_vm10  ;;  %vm447_vm10 = vcmp.eq.s32.totalorder %v3098_v53, %v278_v18  ;;  %vm451_vm11 = vcmp.eq.s32.totalorder %v3098_v53, %v281_v17 }
  0xe7   : > { %vm2520_vm3 = vmpackc.low %vm436_vm13, %vm432_vm12  ;;  %vm449_vm13 = vcmp.eq.s32.totalorder %v3101_v54, %v278_v18  ;;  %v326_v34 = vpop.permute.xlu0 %325 }
  0xe8   : > { %v329_v33 = vpop.permute.xlu1 %328 }
  0xeb   : > { %v332_v36 = vpop.permute.xlu0 %331 }
  0xec   : > { %2421 = vmatmul.mubr.msk.bf16.gmra.mxu0 %vm2420_vm4, %v2782_v58  ;;  %vm2426_vm4 = vmpackc.low %vm443_vm15, %vm439_vm14  ;;  %vm453_vm14 = vcmp.eq.s32.totalorder %v3101_v54, %v281_v17  ;;  %v335_v35 = vpop.permute.xlu1 %334 }
  0xed   : > { %2517 = vmatmul.mubr.msk.bf16.gmra.mxu1 %vm2516_vm7, %v2782_v58  ;;  %2423 = vmatprep.mubr.msk.bf16.mxu0 %vm2422_vm8, %v2782_v58  ;;  %vm442_vm7 = vcmp.eq.s32.totalorder %v3095_v50, %v275_v15  ;;  %vm440_vm8 = vcmp.eq.s32.totalorder %v3104_v56, %v272_v16  ;;  %vm2526_vm1 = vmpackc.low %vm453_vm14, %vm449_vm13  ;;  %vm454_vm14 = vcmp.eq.s32.totalorder %v3095_v50, %v284_v20 }
  0xee   : > { %2519 = vmatprep.mubr.msk.bf16.mxu1 %vm2518_vm9, %v2782_v58  ;;  %vm444_vm9 = vcmp.eq.s32.totalorder %v3104_v56, %v275_v15  ;;  %vm2428_vm12 = vmpackc.low %vm442_vm7, %vm438_vm6  ;;  %vm455_vm6 = vcmp.eq.s32.totalorder %v3098_v53, %v284_v20  ;;  %vm459_vm7 = vcmp.eq.s32.totalorder %v3098_v53, %v287_v19 }
  0xef   : > { %vm2524_vm15 = vmpackc.low %vm444_vm9, %vm440_vm8  ;;  %vm457_vm9 = vcmp.eq.s32.totalorder %v3101_v54, %v284_v20  ;;  %v338_v38 = vpop.permute.xlu0 %337 }
  0xf0   : > { %v341_v37 = vpop.permute.xlu1 %340 }
  0xf4   : > { %2425 = vmatmul.mubr.msk.bf16.gmra.mxu0 %vm2424_vm0, %v2782_v58  ;;  %vm2430_vm0 = vmpackc.low %vm451_vm11, %vm447_vm10  ;;  %vm461_vm10 = vcmp.eq.s32.totalorder %v3101_v54, %v287_v19 }
  0xf5   : > { %2521 = vmatmul.mubr.msk.bf16.gmra.mxu1 %vm2520_vm3, %v2782_v58  ;;  %2427 = vmatprep.mubr.msk.bf16.mxu0 %vm2426_vm4, %v2782_v58  ;;  %vm450_vm3 = vcmp.eq.s32.totalorder %v3095_v50, %v281_v17  ;;  %vm448_vm4 = vcmp.eq.s32.totalorder %v3104_v56, %v278_v18  ;;  %vm2530_vm13 = vmpackc.low %vm461_vm10, %vm457_vm9  ;;  %vm462_vm10 = vcmp.eq.s32.totalorder %v3095_v50, %v290_v22 }
  0xf6   : > { %2523 = vmatprep.mubr.msk.bf16.mxu1 %vm2522_vm5, %v2782_v58  ;;  %vm452_vm5 = vcmp.eq.s32.totalorder %v3104_v56, %v281_v17  ;;  %vm2432_vm8 = vmpackc.low %vm450_vm3, %vm446_vm2  ;;  %vm463_vm2 = vcmp.eq.s32.totalorder %v3098_v53, %v290_v22  ;;  %vm467_vm3 = vcmp.eq.s32.totalorder %v3098_v53, %v293_v21 }
  0xf7   : > { %vm2528_vm11 = vmpackc.low %vm452_vm5, %vm448_vm4  ;;  %vm465_vm5 = vcmp.eq.s32.totalorder %v3101_v54, %v290_v22 }
  0xfc   : > { %2429 = vmatmul.mubr.msk.bf16.gmra.mxu0 %vm2428_vm12, %v2782_v58  ;;  %vm2434_vm12 = vmpackc.low %vm459_vm7, %vm455_vm6  ;;  %vm469_vm6 = vcmp.eq.s32.totalorder %v3101_v54, %v293_v21 }
  0xfd   : > { %2525 = vmatmul.mubr.msk.bf16.gmra.mxu1 %vm2524_vm15, %v2782_v58  ;;  %2431 = vmatprep.mubr.msk.bf16.mxu0 %vm2430_vm0, %v2782_v58  ;;  %vm458_vm15 = vcmp.eq.s32.totalorder %v3095_v50, %v287_v19  ;;  %vm456_vm0 = vcmp.eq.s32.totalorder %v3104_v56, %v284_v20  ;;  %vm2534_vm9 = vmpackc.low %vm469_vm6, %vm465_vm5  ;;  %vm470_vm6 = vcmp.eq.s32.totalorder %v3095_v50, %v296_v24 }
  0xfe   : > { %2527 = vmatprep.mubr.msk.bf16.mxu1 %vm2526_vm1, %v2782_v58  ;;  %vm460_vm1 = vcmp.eq.s32.totalorder %v3104_v56, %v287_v19  ;;  %vm2436_vm4 = vmpackc.low %vm458_vm15, %vm454_vm14  ;;  %vm471_vm14 = vcmp.eq.s32.totalorder %v3098_v53, %v296_v24  ;;  %vm475_vm15 = vcmp.eq.s32.totalorder %v3098_v53, %v299_v23 }
  0xff   : > { %vm2532_vm7 = vmpackc.low %vm460_vm1, %vm456_vm0  ;;  %vm473_vm1 = vcmp.eq.s32.totalorder %v3101_v54, %v296_v24 }
 0x104   : > { %2433 = vmatmul.mubr.msk.bf16.gmra.mxu0 %vm2432_vm8, %v2782_v58  ;;  %vm2438_vm8 = vmpackc.low %vm467_vm3, %vm463_vm2  ;;  %vm477_vm2 = vcmp.eq.s32.totalorder %v3101_v54, %v299_v23 }
 0x105   : > { %2529 = vmatmul.mubr.msk.bf16.gmra.mxu1 %vm2528_vm11, %v2782_v58  ;;  %2435 = vmatprep.mubr.msk.bf16.mxu0 %vm2434_vm12, %v2782_v58  ;;  %vm466_vm11 = vcmp.eq.s32.totalorder %v3095_v50, %v293_v21  ;;  %vm464_vm12 = vcmp.eq.s32.totalorder %v3104_v56, %v290_v22  ;;  %vm2538_vm5 = vmpackc.low %vm477_vm2, %vm473_vm1  ;;  %vm478_vm2 = vcmp.eq.s32.totalorder %v3095_v50, %v302_v26 }
 0x106   : > { %2531 = vmatprep.mubr.msk.bf16.mxu1 %vm2530_vm13, %v2782_v58  ;;  %vm468_vm13 = vcmp.eq.s32.totalorder %v3104_v56, %v293_v21  ;;  %vm2440_vm0 = vmpackc.low %vm466_vm11, %vm462_vm10  ;;  %vm479_vm10 = vcmp.eq.s32.totalorder %v3098_v53, %v302_v26  ;;  %vm483_vm11 = vcmp.eq.s32.totalorder %v3098_v53, %v305_v25 }
 0x107   : > { %vm2536_vm3 = vmpackc.low %vm468_vm13, %vm464_vm12  ;;  %vm481_vm13 = vcmp.eq.s32.totalorder %v3101_v54, %v302_v26 }
 0x10c   : > { %2437 = vmatmul.mubr.msk.bf16.gmra.mxu0 %vm2436_vm4, %v2782_v58  ;;  %vm2442_vm4 = vmpackc.low %vm475_vm15, %vm471_vm14  ;;  %vm485_vm14 = vcmp.eq.s32.totalorder %v3101_v54, %v305_v25 }
 0x10d   : > { %2533 = vmatmul.mubr.msk.bf16.gmra.mxu1 %vm2532_vm7, %v2782_v58  ;;  %2439 = vmatprep.mubr.msk.bf16.mxu0 %vm2438_vm8, %v2782_v58  ;;  %vm474_vm7 = vcmp.eq.s32.totalorder %v3095_v50, %v299_v23  ;;  %vm472_vm8 = vcmp.eq.s32.totalorder %v3104_v56, %v296_v24  ;;  %vm2542_vm1 = vmpackc.low %vm485_vm14, %vm481_vm13  ;;  %vm486_vm14 = vcmp.eq.s32.totalorder %v3095_v50, %v308_v28 }
 0x10e   : > { %2535 = vmatprep.mubr.msk.bf16.mxu1 %vm2534_vm9, %v2782_v58  ;;  %vm476_vm9 = vcmp.eq.s32.totalorder %v3104_v56, %v299_v23  ;;  %vm2444_vm12 = vmpackc.low %vm474_vm7, %vm470_vm6  ;;  %vm487_vm6 = vcmp.eq.s32.totalorder %v3098_v53, %v308_v28  ;;  %vm491_vm7 = vcmp.eq.s32.totalorder %v3098_v53, %v311_v27 }
 0x10f   : > { %vm2540_vm15 = vmpackc.low %vm476_vm9, %vm472_vm8  ;;  %vm489_vm9 = vcmp.eq.s32.totalorder %v3101_v54, %v308_v28 }
 0x114   : > { %2441 = vmatmul.mubr.msk.bf16.gmra.mxu0 %vm2440_vm0, %v2782_v58  ;;  %vm2446_vm0 = vmpackc.low %vm483_vm11, %vm479_vm10  ;;  %vm493_vm10 = vcmp.eq.s32.totalorder %v3101_v54, %v311_v27 }
 0x115   : > { %2537 = vmatmul.mubr.msk.bf16.gmra.mxu1 %vm2536_vm3, %v2782_v58  ;;  %2443 = vmatprep.mubr.msk.bf16.mxu0 %vm2442_vm4, %v2782_v58  ;;  %vm482_vm3 = vcmp.eq.s32.totalorder %v3095_v50, %v305_v25  ;;  %vm480_vm4 = vcmp.eq.s32.totalorder %v3104_v56, %v302_v26  ;;  %vm2546_vm13 = vmpackc.low %vm493_vm10, %vm489_vm9  ;;  %vm494_vm10 = vcmp.eq.s32.totalorder %v3095_v50, %v314_v30 }
 0x116   : > { %2539 = vmatprep.mubr.msk.bf16.mxu1 %vm2538_vm5, %v2782_v58  ;;  %vm484_vm5 = vcmp.eq.s32.totalorder %v3104_v56, %v305_v25  ;;  %vm2448_vm8 = vmpackc.low %vm482_vm3, %vm478_vm2  ;;  %vm495_vm2 = vcmp.eq.s32.totalorder %v3098_v53, %v314_v30  ;;  %vm499_vm3 = vcmp.eq.s32.totalorder %v3098_v53, %v317_v29 }
 0x117   : > { %vm2544_vm11 = vmpackc.low %vm484_vm5, %vm480_vm4  ;;  %vm497_vm5 = vcmp.eq.s32.totalorder %v3101_v54, %v314_v30 }
 0x11c   : > { %2445 = vmatmul.mubr.msk.bf16.gmra.mxu0 %vm2444_vm12, %v2782_v58  ;;  %vm2450_vm12 = vmpackc.low %vm491_vm7, %vm487_vm6  ;;  %vm501_vm6 = vcmp.eq.s32.totalorder %v3101_v54, %v317_v29 }
 0x11d   : > { %2541 = vmatmul.mubr.msk.bf16.gmra.mxu1 %vm2540_vm15, %v2782_v58  ;;  %2447 = vmatprep.mubr.msk.bf16.mxu0 %vm2446_vm0, %v2782_v58  ;;  %vm490_vm15 = vcmp.eq.s32.totalorder %v3095_v50, %v311_v27  ;;  %vm488_vm0 = vcmp.eq.s32.totalorder %v3104_v56, %v308_v28  ;;  %vm2550_vm9 = vmpackc.low %vm501_vm6, %vm497_vm5  ;;  %vm502_vm6 = vcmp.eq.s32.totalorder %v3095_v50, %v320_v32 }
 0x11e   : > { %2543 = vmatprep.mubr.msk.bf16.mxu1 %vm2542_vm1, %v2782_v58  ;;  %vm492_vm1 = vcmp.eq.s32.totalorder %v3104_v56, %v311_v27  ;;  %vm2452_vm4 = vmpackc.low %vm490_vm15, %vm486_vm14  ;;  %vm503_vm14 = vcmp.eq.s32.totalorder %v3098_v53, %v320_v32  ;;  %vm507_vm15 = vcmp.eq.s32.totalorder %v3098_v53, %v323_v31 }
 0x11f   : > { %vm2548_vm7 = vmpackc.low %vm492_vm1, %vm488_vm0  ;;  %vm505_vm1 = vcmp.eq.s32.totalorder %v3101_v54, %v320_v32 }
 0x124   : > { %2449 = vmatmul.mubr.msk.bf16.gmra.mxu0 %vm2448_vm8, %v2782_v58  ;;  %vm2454_vm8 = vmpackc.low %vm499_vm3, %vm495_vm2  ;;  %vm509_vm2 = vcmp.eq.s32.totalorder %v3101_v54, %v323_v31 }
 0x125   : > { %2545 = vmatmul.mubr.msk.bf16.gmra.mxu1 %vm2544_vm11, %v2782_v58  ;;  %2451 = vmatprep.mubr.msk.bf16.mxu0 %vm2450_vm12, %v2782_v58  ;;  %vm498_vm11 = vcmp.eq.s32.totalorder %v3095_v50, %v317_v29  ;;  %vm496_vm12 = vcmp.eq.s32.totalorder %v3104_v56, %v314_v30  ;;  %vm2554_vm5 = vmpackc.low %vm509_vm2, %vm505_vm1  ;;  %vm510_vm2 = vcmp.eq.s32.totalorder %v3095_v50, %v326_v34 }
 0x126   : > { %2547 = vmatprep.mubr.msk.bf16.mxu1 %vm2546_vm13, %v2782_v58  ;;  %vm500_vm13 = vcmp.eq.s32.totalorder %v3104_v56, %v317_v29  ;;  %vm2456_vm0 = vmpackc.low %vm498_vm11, %vm494_vm10  ;;  %vm511_vm10 = vcmp.eq.s32.totalorder %v3098_v53, %v326_v34  ;;  %vm515_vm11 = vcmp.eq.s32.totalorder %v3098_v53, %v329_v33 }
 0x127   : > { %vm2552_vm3 = vmpackc.low %vm500_vm13, %vm496_vm12  ;;  %vm513_vm13 = vcmp.eq.s32.totalorder %v3101_v54, %v326_v34 }
 0x12c   : > { %2453 = vmatmul.mubr.msk.bf16.gmra.mxu0 %vm2452_vm4, %v2782_v58  ;;  %vm2458_vm4 = vmpackc.low %vm507_vm15, %vm503_vm14  ;;  %vm517_vm14 = vcmp.eq.s32.totalorder %v3101_v54, %v329_v33 }
 0x12d   : > { %2549 = vmatmul.mubr.msk.bf16.gmra.mxu1 %vm2548_vm7, %v2782_v58  ;;  %2455 = vmatprep.mubr.msk.bf16.mxu0 %vm2454_vm8, %v2782_v58  ;;  %vm506_vm7 = vcmp.eq.s32.totalorder %v3095_v50, %v323_v31  ;;  %vm504_vm8 = vcmp.eq.s32.totalorder %v3104_v56, %v320_v32  ;;  %vm2558_vm1 = vmpackc.low %vm517_vm14, %vm513_vm13  ;;  %vm518_vm14 = vcmp.eq.s32.totalorder %v3095_v50, %v332_v36 }
 0x12e   : > { %2551 = vmatprep.mubr.msk.bf16.mxu1 %vm2550_vm9, %v2782_v58  ;;  %vm508_vm9 = vcmp.eq.s32.totalorder %v3104_v56, %v323_v31  ;;  %vm2460_vm12 = vmpackc.low %vm506_vm7, %vm502_vm6  ;;  %vm519_vm6 = vcmp.eq.s32.totalorder %v3098_v53, %v332_v36  ;;  %vm523_vm7 = vcmp.eq.s32.totalorder %v3098_v53, %v335_v35 }
 0x12f   : > { %vm2556_vm15 = vmpackc.low %vm508_vm9, %vm504_vm8  ;;  %vm521_vm9 = vcmp.eq.s32.totalorder %v3101_v54, %v332_v36 }
 0x134   : > { %2457 = vmatmul.mubr.msk.bf16.gmra.mxu0 %vm2456_vm0, %v2782_v58  ;;  %vm2462_vm0 = vmpackc.low %vm515_vm11, %vm511_vm10  ;;  %vm525_vm10 = vcmp.eq.s32.totalorder %v3101_v54, %v335_v35 }
 0x135   : > { %2553 = vmatmul.mubr.msk.bf16.gmra.mxu1 %vm2552_vm3, %v2782_v58  ;;  %2459 = vmatprep.mubr.msk.bf16.mxu0 %vm2458_vm4, %v2782_v58  ;;  %vm514_vm3 = vcmp.eq.s32.totalorder %v3095_v50, %v329_v33  ;;  %vm512_vm4 = vcmp.eq.s32.totalorder %v3104_v56, %v326_v34  ;;  %vm2562_vm13 = vmpackc.low %vm525_vm10, %vm521_vm9  ;;  %vm530_vm10 = vcmp.eq.s32.totalorder %v3095_v50, %v341_v37 }
 0x136   : > { %2555 = vmatprep.mubr.msk.bf16.mxu1 %vm2554_vm5, %v2782_v58  ;;  %vm516_vm5 = vcmp.eq.s32.totalorder %v3104_v56, %v329_v33  ;;  %vm2464_vm8 = vmpackc.low %vm514_vm3, %vm510_vm2  ;;  %vm531_vm2 = vcmp.eq.s32.totalorder %v3098_v53, %v341_v37  ;;  %vm527_vm3 = vcmp.eq.s32.totalorder %v3098_v53, %v338_v38 }
 0x137   : > { %vm2560_vm11 = vmpackc.low %vm516_vm5, %vm512_vm4  ;;  %vm533_vm4 = vcmp.eq.s32.totalorder %v3101_v54, %v341_v37  ;;  %vm529_vm5 = vcmp.eq.s32.totalorder %v3101_v54, %v338_v38 }
 0x138   : > { %vm2566_vm9 = vmpackc.low %vm533_vm4, %vm529_vm5 }
 0x13c   : > { %2461 = vmatmul.mubr.msk.bf16.gmra.mxu0 %vm2460_vm12, %v2782_v58  ;;  %vm2466_vm12 = vmpackc.low %vm523_vm7, %vm519_vm6 }
 0x13d   : > { %2557 = vmatmul.mubr.msk.bf16.gmra.mxu1 %vm2556_vm15, %v2782_v58  ;;  %2463 = vmatprep.mubr.msk.bf16.mxu0 %vm2462_vm0, %v2782_v58  ;;  %vm522_vm15 = vcmp.eq.s32.totalorder %v3095_v50, %v335_v35  ;;  %vm520_vm0 = vcmp.eq.s32.totalorder %v3104_v56, %v332_v36 }
 0x13e   : > { %2559 = vmatprep.mubr.msk.bf16.mxu1 %vm2558_vm1, %v2782_v58  ;;  %vm524_vm1 = vcmp.eq.s32.totalorder %v3104_v56, %v335_v35  ;;  %vm2468_vm6 = vmpackc.low %vm522_vm15, %vm518_vm14 }
 0x13f   : > { %vm2564_vm7 = vmpackc.low %vm524_vm1, %vm520_vm0 }
 0x144   : > { %2465 = vmatmul.mubr.msk.bf16.gmra.mxu0 %vm2464_vm8, %v2782_v58  ;;  %vm2470_vm8 = vmpackc.low %vm531_vm2, %vm527_vm3 }
 0x145   : > { %2561 = vmatmul.mubr.msk.bf16.gmra.mxu1 %vm2560_vm11, %v2782_v58  ;;  %2467 = vmatprep.mubr.msk.bf16.mxu0 %vm2466_vm12, %v2782_v58  ;;  %vm526_vm11 = vcmp.eq.s32.totalorder %v3095_v50, %v338_v38  ;;  %vm532_vm12 = vcmp.eq.s32.totalorder %v3104_v56, %v341_v37 }
 0x146   : > { %2563 = vmatprep.mubr.msk.bf16.mxu1 %vm2562_vm13, %v2782_v58  ;;  %vm528_vm13 = vcmp.eq.s32.totalorder %v3104_v56, %v338_v38  ;;  %vm2472_vm14 = vmpackc.low %vm530_vm10, %vm526_vm11 }
 0x147   : > { %vm2568_vm15 = vmpackc.low %vm532_vm12, %vm528_vm13 }
 0x14c   : > { %2469 = vmatmul.mubr.msk.bf16.gmra.mxu0 %vm2468_vm6, %v2782_v58 }
 0x14d   : > { %2565 = vmatmul.mubr.msk.bf16.gmra.mxu1 %vm2564_vm7, %v2782_v58  ;;  %2471 = vmatprep.mubr.msk.bf16.mxu0 %vm2470_vm8, %v2782_v58 }
 0x14e   : > { %2567 = vmatprep.mubr.msk.bf16.mxu1 %vm2566_vm9, %v2782_v58 }
 0x154   : > { %2473 = vmatmul.mubr.msk.bf16.gmra.mxu0 %vm2472_vm14, %v2782_v58 }
 0x155   : > { %2569 = vmatmul.mubr.msk.bf16.gmra.mxu1 %vm2568_vm15, %v2782_v58 }
 0x15c   : > { %v1432_v39 = vpop.f32.mrf.mxu0 }
 0x15d   : > { %v1705_v40 = vpop.f32.mrf.mxu1 }
 0x15e   : > { %v1706_v41 = vadd.f32 %v1705_v40, %v1432_v39  ;;  %v1434_v42 = vpop.f32.mrf.mxu0 }
 0x15f   : > { %v1707_v43 = vpop.f32.mrf.mxu1 }
 0x160   : > { %1944 = vst [vmem:[%s3397_s21] sm:$0xff] %v1706_v41  ;;  %v1708_v44 = vadd.f32 %v1707_v43, %v1434_v42  ;;  %v1436_v45 = vpop.f32.mrf.mxu0 }
 0x161   : > { %v1709_v46 = vpop.f32.mrf.mxu1 }
 0x162   : > { %1945 = vst [vmem:[%s3397_s21 + $0x8] sm:$0xff] %v1708_v44  ;;  %v1710_v47 = vadd.f32 %v1709_v46, %v1436_v45  ;;  %v1438_v48 = vpop.f32.mrf.mxu0 }
 0x163   : > { %v1711_v49 = vpop.f32.mrf.mxu1 }
 0x164   : > { %1946 = vst [vmem:[%s3397_s21 + $0x10] sm:$0xff] %v1710_v47  ;;  %v1712_v50 = vadd.f32 %v1711_v49, %v1438_v48  ;;  %v1442_v51 = vpop.f32.mrf.mxu0 }
 0x165   : > { %v1715_v52 = vpop.f32.mrf.mxu1 }
 0x166   : > { %1947 = vst [vmem:[%s3397_s21 + $0x18] sm:$0xff] %v1712_v50  ;;  %v1716_v53 = vadd.f32 %v1715_v52, %v1442_v51  ;;  %v1444_v54 = vpop.f32.mrf.mxu0 }
 0x167   : > { %v1717_v55 = vpop.f32.mrf.mxu1 }
 0x168   : > { %1948 = vst [vmem:[%s3397_s21 + $0x20] sm:$0xff] %v1716_v53  ;;  %v1718_v56 = vadd.f32 %v1717_v55, %v1444_v54  ;;  %v1446_v57 = vpop.f32.mrf.mxu0 }
 0x169   : > { %v1719_v58 = vpop.f32.mrf.mxu1 }
 0x16a   : > { %1949 = vst [vmem:[%s3397_s21 + $0x28] sm:$0xff] %v1718_v56  ;;  %v1720_v59 = vadd.f32 %v1719_v58, %v1446_v57  ;;  %v1448_v60 = vpop.f32.mrf.mxu0 }
 0x16b   : > { %v1721_v61 = vpop.f32.mrf.mxu1 }
 0x16c   : > { %1950 = vst [vmem:[%s3397_s21 + $0x30] sm:$0xff] %v1720_v59  ;;  %v1722_v62 = vadd.f32 %v1721_v61, %v1448_v60  ;;  %v1452_v63 = vpop.f32.mrf.mxu0 }
 0x16d   : > { %v1725_v0 = vpop.f32.mrf.mxu1 }
 0x16e   : > { %1951 = vst [vmem:[%s3397_s21 + $0x38] sm:$0xff] %v1722_v62  ;;  %v1726_v1 = vadd.f32 %v1725_v0, %v1452_v63  ;;  %v1454_v2 = vpop.f32.mrf.mxu0 }
 0x16f   : > { %v1727_v3 = vpop.f32.mrf.mxu1 }
 0x170   : > { %1952 = vst [vmem:[%s3397_s21 + $0x40] sm:$0xff] %v1726_v1  ;;  %v1728_v4 = vadd.f32 %v1727_v3, %v1454_v2  ;;  %v1456_v5 = vpop.f32.mrf.mxu0 }
 0x171   : > { %v1729_v6 = vpop.f32.mrf.mxu1 }
 0x172   : > { %1953 = vst [vmem:[%s3397_s21 + $0x48] sm:$0xff] %v1728_v4  ;;  %v1730_v7 = vadd.f32 %v1729_v6, %v1456_v5  ;;  %v1458_v8 = vpop.f32.mrf.mxu0 }
 0x173   : > { %v1731_v9 = vpop.f32.mrf.mxu1 }
 0x174   : > { %1954 = vst [vmem:[%s3397_s21 + $0x50] sm:$0xff] %v1730_v7  ;;  %v1732_v10 = vadd.f32 %v1731_v9, %v1458_v8  ;;  %v1462_v11 = vpop.f32.mrf.mxu0 }
 0x175   : > { %v1735_v12 = vpop.f32.mrf.mxu1 }
 0x176   : > { %1955 = vst [vmem:[%s3397_s21 + $0x58] sm:$0xff] %v1732_v10  ;;  %v1736_v13 = vadd.f32 %v1735_v12, %v1462_v11  ;;  %v1464_v14 = vpop.f32.mrf.mxu0 }
 0x177   : > { %v1737_v15 = vpop.f32.mrf.mxu1 }
 0x178   : > { %1956 = vst [vmem:[%s3397_s21 + $0x60] sm:$0xff] %v1736_v13  ;;  %v1738_v16 = vadd.f32 %v1737_v15, %v1464_v14  ;;  %v1466_v17 = vpop.f32.mrf.mxu0 }
 0x179   : > { %v1739_v18 = vpop.f32.mrf.mxu1 }
 0x17a   : > { %1957 = vst [vmem:[%s3397_s21 + $0x68] sm:$0xff] %v1738_v16  ;;  %v1740_v19 = vadd.f32 %v1739_v18, %v1466_v17  ;;  %v1468_v20 = vpop.f32.mrf.mxu0 }
 0x17b   : > { %v1741_v21 = vpop.f32.mrf.mxu1 }
 0x17c   : > { %1958 = vst [vmem:[%s3397_s21 + $0x70] sm:$0xff] %v1740_v19  ;;  %v1742_v22 = vadd.f32 %v1741_v21, %v1468_v20  ;;  %v1472_v23 = vpop.f32.mrf.mxu0 }
 0x17d   : > { %v1745_v24 = vpop.f32.mrf.mxu1 }
 0x17e   : > { %1959 = vst [vmem:[%s3397_s21 + $0x78] sm:$0xff] %v1742_v22  ;;  %v1746_v25 = vadd.f32 %v1745_v24, %v1472_v23  ;;  %v1474_v26 = vpop.f32.mrf.mxu0 }
 0x17f   : > { %v1747_v27 = vpop.f32.mrf.mxu1 }
 0x180   : > { %1960 = vst [vmem:[%s3397_s21 + $0x80] sm:$0xff] %v1746_v25  ;;  %v1748_v28 = vadd.f32 %v1747_v27, %v1474_v26  ;;  %v1476_v29 = vpop.f32.mrf.mxu0 }
 0x181   : > { %v1749_v30 = vpop.f32.mrf.mxu1 }
 0x182   : > { %1961 = vst [vmem:[%s3397_s21 + $0x88] sm:$0xff] %v1748_v28  ;;  %v1750_v31 = vadd.f32 %v1749_v30, %v1476_v29  ;;  %v1478_v32 = vpop.f32.mrf.mxu0 }
 0x183   : > { %v1751_v33 = vpop.f32.mrf.mxu1 }
 0x184   : > { %1962 = vst [vmem:[%s3397_s21 + $0x90] sm:$0xff] %v1750_v31  ;;  %v1752_v34 = vadd.f32 %v1751_v33, %v1478_v32  ;;  %v1482_v35 = vpop.f32.mrf.mxu0 }
 0x185   : > { %v1755_v36 = vpop.f32.mrf.mxu1 }
 0x186   : > { %1963 = vst [vmem:[%s3397_s21 + $0x98] sm:$0xff] %v1752_v34  ;;  %v1756_v37 = vadd.f32 %v1755_v36, %v1482_v35  ;;  %v1484_v38 = vpop.f32.mrf.mxu0 }
 0x187   : > { %v1757_v39 = vpop.f32.mrf.mxu1 }
 0x188   : > { %1964 = vst [vmem:[%s3397_s21 + $0xa0] sm:$0xff] %v1756_v37  ;;  %v1758_v40 = vadd.f32 %v1757_v39, %v1484_v38  ;;  %v1486_v41 = vpop.f32.mrf.mxu0 }
 0x189   : > { %v1759_v42 = vpop.f32.mrf.mxu1 }
 0x18a   : > { %1965 = vst [vmem:[%s3397_s21 + $0xa8] sm:$0xff] %v1758_v40  ;;  %v1760_v43 = vadd.f32 %v1759_v42, %v1486_v41  ;;  %v1488_v44 = vpop.f32.mrf.mxu0 }
 0x18b   : > { %v1761_v45 = vpop.f32.mrf.mxu1 }
 0x18c   : > { %1966 = vst [vmem:[%s3397_s21 + $0xb0] sm:$0xff] %v1760_v43  ;;  %v1762_v46 = vadd.f32 %v1761_v45, %v1488_v44  ;;  %v1492_v47 = vpop.f32.mrf.mxu0 }
 0x18d   : > { %v1765_v48 = vpop.f32.mrf.mxu1 }
 0x18e   : > { %1967 = vst [vmem:[%s3397_s21 + $0xb8] sm:$0xff] %v1762_v46  ;;  %v1766_v49 = vadd.f32 %v1765_v48, %v1492_v47  ;;  %v1494_v50 = vpop.f32.mrf.mxu0 }
 0x18f   : > { %v1767_v51 = vpop.f32.mrf.mxu1 }
 0x190   : > { %1968 = vst [vmem:[%s3397_s21 + $0xc0] sm:$0xff] %v1766_v49  ;;  %v1768_v52 = vadd.f32 %v1767_v51, %v1494_v50  ;;  %v1496_v53 = vpop.f32.mrf.mxu0 }
 0x191   : > { %v1769_v54 = vpop.f32.mrf.mxu1 }
 0x192   : > { %1969 = vst [vmem:[%s3397_s21 + $0xc8] sm:$0xff] %v1768_v52  ;;  %v1770_v55 = vadd.f32 %v1769_v54, %v1496_v53  ;;  %v1498_v56 = vpop.f32.mrf.mxu0 }
 0x193   : > { %v1771_v57 = vpop.f32.mrf.mxu1 }
 0x194   : > { %1970 = vst [vmem:[%s3397_s21 + $0xd0] sm:$0xff] %v1770_v55  ;;  %v1772_v58 = vadd.f32 %v1771_v57, %v1498_v56  ;;  %v1502_v59 = vpop.f32.mrf.mxu0 }
 0x195   : > { %v1775_v60 = vpop.f32.mrf.mxu1 }
 0x196   : > { %1971 = vst [vmem:[%s3397_s21 + $0xd8] sm:$0xff] %v1772_v58  ;;  %v1776_v61 = vadd.f32 %v1775_v60, %v1502_v59  ;;  %v1504_v62 = vpop.f32.mrf.mxu0 }
 0x197   : > { %v1777_v63 = vpop.f32.mrf.mxu1 }
 0x198   : > { %1972 = vst [vmem:[%s3397_s21 + $0xe0] sm:$0xff] %v1776_v61  ;;  %v1778_v0 = vadd.f32 %v1777_v63, %v1504_v62  ;;  %v1506_v1 = vpop.f32.mrf.mxu0 }
 0x199   : > { %v1779_v2 = vpop.f32.mrf.mxu1 }
 0x19a   : > { %1973 = vst [vmem:[%s3397_s21 + $0xe8] sm:$0xff] %v1778_v0  ;;  %v1780_v3 = vadd.f32 %v1779_v2, %v1506_v1  ;;  %v1508_v4 = vpop.f32.mrf.mxu0 }
 0x19b   : > { %v1781_v5 = vpop.f32.mrf.mxu1 }
 0x19c   : > { %1974 = vst [vmem:[%s3397_s21 + $0xf0] sm:$0xff] %v1780_v3  ;;  %v1782_v6 = vadd.f32 %v1781_v5, %v1508_v4  ;;  %v1512_v7 = vpop.f32.mrf.mxu0 }
 0x19d   : > { %v1785_v8 = vpop.f32.mrf.mxu1 }
 0x19e   : > { %1975 = vst [vmem:[%s3397_s21 + $0xf8] sm:$0xff] %v1782_v6  ;;  %v1786_v9 = vadd.f32 %v1785_v8, %v1512_v7  ;;  %v1514_v10 = vpop.f32.mrf.mxu0 }
 0x19f   : > { %v1787_v11 = vpop.f32.mrf.mxu1 }
 0x1a0   : > { %1976 = vst [vmem:[%s3397_s21 + $0x100] sm:$0xff] %v1786_v9  ;;  %v1788_v12 = vadd.f32 %v1787_v11, %v1514_v10  ;;  %v1516_v13 = vpop.f32.mrf.mxu0 }
 0x1a1   : > { %v1789_v14 = vpop.f32.mrf.mxu1 }
 0x1a2   : > { %1977 = vst [vmem:[%s3397_s21 + $0x108] sm:$0xff] %v1788_v12  ;;  %v1790_v15 = vadd.f32 %v1789_v14, %v1516_v13  ;;  %v1518_v16 = vpop.f32.mrf.mxu0 }
 0x1a3   : > { %v1791_v17 = vpop.f32.mrf.mxu1 }
 0x1a4   : > { %1978 = vst [vmem:[%s3397_s21 + $0x110] sm:$0xff] %v1790_v15  ;;  %v1792_v18 = vadd.f32 %v1791_v17, %v1518_v16  ;;  %v1522_v19 = vpop.f32.mrf.mxu0 }
 0x1a5   : > { %v1795_v20 = vpop.f32.mrf.mxu1 }
 0x1a6   : > { %1979 = vst [vmem:[%s3397_s21 + $0x118] sm:$0xff] %v1792_v18  ;;  %v1796_v21 = vadd.f32 %v1795_v20, %v1522_v19  ;;  %v1524_v22 = vpop.f32.mrf.mxu0 }
 0x1a7   : > { %v1797_v23 = vpop.f32.mrf.mxu1 }
 0x1a8   : > { %1980 = vst [vmem:[%s3397_s21 + $0x120] sm:$0xff] %v1796_v21  ;;  %v1798_v24 = vadd.f32 %v1797_v23, %v1524_v22  ;;  %v1526_v25 = vpop.f32.mrf.mxu0 }
 0x1a9   : > { %v1799_v26 = vpop.f32.mrf.mxu1 }
 0x1aa   : > { %1981 = vst [vmem:[%s3397_s21 + $0x128] sm:$0xff] %v1798_v24  ;;  %v1800_v27 = vadd.f32 %v1799_v26, %v1526_v25  ;;  %v1528_v28 = vpop.f32.mrf.mxu0 }
 0x1ab   : > { %v1801_v29 = vpop.f32.mrf.mxu1 }
 0x1ac   : > { %1982 = vst [vmem:[%s3397_s21 + $0x130] sm:$0xff] %v1800_v27  ;;  %v1802_v30 = vadd.f32 %v1801_v29, %v1528_v28  ;;  %v1532_v31 = vpop.f32.mrf.mxu0 }
 0x1ad   : > { %v1805_v32 = vpop.f32.mrf.mxu1 }
 0x1ae   : > { %1983 = vst [vmem:[%s3397_s21 + $0x138] sm:$0xff] %v1802_v30  ;;  %v1806_v33 = vadd.f32 %v1805_v32, %v1532_v31  ;;  %v1534_v34 = vpop.f32.mrf.mxu0 }
 0x1af   : > { %v1807_v35 = vpop.f32.mrf.mxu1 }
 0x1b0   : > { %1984 = vst [vmem:[%s3397_s21 + $0x140] sm:$0xff] %v1806_v33  ;;  %v1808_v36 = vadd.f32 %v1807_v35, %v1534_v34  ;;  %v1536_v37 = vpop.f32.mrf.mxu0 }
 0x1b1   : > { %v1809_v38 = vpop.f32.mrf.mxu1 }
 0x1b2   : > { %1985 = vst [vmem:[%s3397_s21 + $0x148] sm:$0xff] %v1808_v36  ;;  %v1810_v39 = vadd.f32 %v1809_v38, %v1536_v37  ;;  %v1538_v40 = vpop.f32.mrf.mxu0 }
 0x1b3   : > { %v1811_v41 = vpop.f32.mrf.mxu1 }
 0x1b4   : > { %1986 = vst [vmem:[%s3397_s21 + $0x150] sm:$0xff] %v1810_v39  ;;  %v1812_v42 = vadd.f32 %v1811_v41, %v1538_v40  ;;  %v1542_v43 = vpop.f32.mrf.mxu0 }
 0x1b5   : > { %v1815_v44 = vpop.f32.mrf.mxu1 }
 0x1b6   : > { %1987 = vst [vmem:[%s3397_s21 + $0x158] sm:$0xff] %v1812_v42  ;;  %v1816_v45 = vadd.f32 %v1815_v44, %v1542_v43  ;;  %v1544_v46 = vpop.f32.mrf.mxu0 }
 0x1b7   : > { %v1817_v47 = vpop.f32.mrf.mxu1 }
 0x1b8   : > { %1988 = vst [vmem:[%s3397_s21 + $0x160] sm:$0xff] %v1816_v45  ;;  %v1818_v48 = vadd.f32 %v1817_v47, %v1544_v46  ;;  %v1546_v49 = vpop.f32.mrf.mxu0 }
 0x1b9   : > { %v1819_v50 = vpop.f32.mrf.mxu1 }
 0x1ba   : > { %1989 = vst [vmem:[%s3397_s21 + $0x168] sm:$0xff] %v1818_v48  ;;  %v1820_v51 = vadd.f32 %v1819_v50, %v1546_v49  ;;  %v1548_v52 = vpop.f32.mrf.mxu0 }
 0x1bb   : > { %v1821_v53 = vpop.f32.mrf.mxu1 }
 0x1bc   : > { %1990 = vst [vmem:[%s3397_s21 + $0x170] sm:$0xff] %v1820_v51  ;;  %v1822_v54 = vadd.f32 %v1821_v53, %v1548_v52  ;;  %v1552_v55 = vpop.f32.mrf.mxu0 }
 0x1bd   : > { %v1825_v56 = vpop.f32.mrf.mxu1 }
 0x1be   : > { %1991 = vst [vmem:[%s3397_s21 + $0x178] sm:$0xff] %v1822_v54  ;;  %v1826_v57 = vadd.f32 %v1825_v56, %v1552_v55  ;;  %v1554_v58 = vpop.f32.mrf.mxu0 }
 0x1bf   : > { %v1827_v59 = vpop.f32.mrf.mxu1 }
 0x1c0   : > { %1992 = vst [vmem:[%s3397_s21 + $0x180] sm:$0xff] %v1826_v57  ;;  %v1828_v60 = vadd.f32 %v1827_v59, %v1554_v58  ;;  %v1556_v61 = vpop.f32.mrf.mxu0 }
 0x1c1   : > { %v1829_v62 = vpop.f32.mrf.mxu1 }
 0x1c2   : > { %1993 = vst [vmem:[%s3397_s21 + $0x188] sm:$0xff] %v1828_v60  ;;  %v1830_v63 = vadd.f32 %v1829_v62, %v1556_v61  ;;  %v1558_v0 = vpop.f32.mrf.mxu0 }
 0x1c3   : > { %v1831_v1 = vpop.f32.mrf.mxu1 }
 0x1c4   : > { %1994 = vst [vmem:[%s3397_s21 + $0x190] sm:$0xff] %v1830_v63  ;;  %v1832_v2 = vadd.f32 %v1831_v1, %v1558_v0  ;;  %v1562_v3 = vpop.f32.mrf.mxu0 }
 0x1c5   : > { %v1835_v4 = vpop.f32.mrf.mxu1 }
 0x1c6   : > { %1995 = vst [vmem:[%s3397_s21 + $0x198] sm:$0xff] %v1832_v2  ;;  %v1836_v5 = vadd.f32 %v1835_v4, %v1562_v3  ;;  %v1564_v6 = vpop.f32.mrf.mxu0 }
 0x1c7   : > { %v1837_v7 = vpop.f32.mrf.mxu1 }
 0x1c8   : > { %1996 = vst [vmem:[%s3397_s21 + $0x1a0] sm:$0xff] %v1836_v5  ;;  %v1838_v8 = vadd.f32 %v1837_v7, %v1564_v6  ;;  %v1566_v9 = vpop.f32.mrf.mxu0 }
 0x1c9   : > { %v1839_v10 = vpop.f32.mrf.mxu1 }
 0x1ca   : > { %1997 = vst [vmem:[%s3397_s21 + $0x1a8] sm:$0xff] %v1838_v8  ;;  %v1840_v11 = vadd.f32 %v1839_v10, %v1566_v9  ;;  %v1568_v12 = vpop.f32.mrf.mxu0 }
 0x1cb   : > { %v1841_v13 = vpop.f32.mrf.mxu1 }
 0x1cc   : > { %1998 = vst [vmem:[%s3397_s21 + $0x1b0] sm:$0xff] %v1840_v11  ;;  %v1842_v14 = vadd.f32 %v1841_v13, %v1568_v12  ;;  %v1572_v15 = vpop.f32.mrf.mxu0 }
 0x1cd   : > { %v1845_v16 = vpop.f32.mrf.mxu1 }
 0x1ce   : > { %1999 = vst [vmem:[%s3397_s21 + $0x1b8] sm:$0xff] %v1842_v14  ;;  %v1846_v17 = vadd.f32 %v1845_v16, %v1572_v15  ;;  %v1574_v18 = vpop.f32.mrf.mxu0 }
 0x1cf   : > { %v1847_v19 = vpop.f32.mrf.mxu1 }
 0x1d0   : > { %2000 = vst [vmem:[%s3397_s21 + $0x1c0] sm:$0xff] %v1846_v17  ;;  %v1848_v20 = vadd.f32 %v1847_v19, %v1574_v18  ;;  %v1576_v21 = vpop.f32.mrf.mxu0 }
 0x1d1   : > { %v1849_v22 = vpop.f32.mrf.mxu1 }
 0x1d2   : > { %2001 = vst [vmem:[%s3397_s21 + $0x1c8] sm:$0xff] %v1848_v20  ;;  %v1850_v23 = vadd.f32 %v1849_v22, %v1576_v21  ;;  %v1578_v24 = vpop.f32.mrf.mxu0 }
 0x1d3   : > { %v1851_v25 = vpop.f32.mrf.mxu1 }
 0x1d4   : > { %2002 = vst [vmem:[%s3397_s21 + $0x1d0] sm:$0xff] %v1850_v23  ;;  %v1852_v26 = vadd.f32 %v1851_v25, %v1578_v24  ;;  %v1582_v27 = vpop.f32.mrf.mxu0 }
 0x1d5   : > { %v1855_v28 = vpop.f32.mrf.mxu1 }
 0x1d6   : > { %2003 = vst [vmem:[%s3397_s21 + $0x1d8] sm:$0xff] %v1852_v26  ;;  %v1856_v29 = vadd.f32 %v1855_v28, %v1582_v27  ;;  %v1584_v30 = vpop.f32.mrf.mxu0 }
 0x1d7   : > { %v1857_v31 = vpop.f32.mrf.mxu1 }
 0x1d8   : > { %2004 = vst [vmem:[%s3397_s21 + $0x1e0] sm:$0xff] %v1856_v29  ;;  %v1858_v32 = vadd.f32 %v1857_v31, %v1584_v30  ;;  %v1586_v33 = vpop.f32.mrf.mxu0 }
 0x1d9   : > { %v1859_v34 = vpop.f32.mrf.mxu1 }
 0x1da   : > { %2005 = vst [vmem:[%s3397_s21 + $0x1e8] sm:$0xff] %v1858_v32  ;;  %v1860_v35 = vadd.f32 %v1859_v34, %v1586_v33  ;;  %v1588_v36 = vpop.f32.mrf.mxu0 }
 0x1db   : > { %v1861_v37 = vpop.f32.mrf.mxu1 }
 0x1dc   : > { %2006 = vst [vmem:[%s3397_s21 + $0x1f0] sm:$0xff] %v1860_v35  ;;  %v1862_v38 = vadd.f32 %v1861_v37, %v1588_v36  ;;  %v1592_v39 = vpop.f32.mrf.mxu0 }
 0x1dd   : > { %v1865_v40 = vpop.f32.mrf.mxu1 }
 0x1de   : > { %2007 = vst [vmem:[%s3397_s21 + $0x1f8] sm:$0xff] %v1862_v38  ;;  %v1866_v41 = vadd.f32 %v1865_v40, %v1592_v39  ;;  %v1594_v42 = vpop.f32.mrf.mxu0 }
 0x1df   : > { %v1867_v43 = vpop.f32.mrf.mxu1 }
 0x1e0   : > { %2008 = vst [vmem:[%s3397_s21 + $0x200] sm:$0xff] %v1866_v41  ;;  %v1868_v44 = vadd.f32 %v1867_v43, %v1594_v42  ;;  %v1596_v45 = vpop.f32.mrf.mxu0 }
 0x1e1   : > { %v1869_v46 = vpop.f32.mrf.mxu1 }
 0x1e2   : > { %2009 = vst [vmem:[%s3397_s21 + $0x208] sm:$0xff] %v1868_v44  ;;  %v1870_v47 = vadd.f32 %v1869_v46, %v1596_v45  ;;  %v1598_v48 = vpop.f32.mrf.mxu0 }
 0x1e3   : > { %v1871_v49 = vpop.f32.mrf.mxu1 }
 0x1e4   : > { %2010 = vst [vmem:[%s3397_s21 + $0x210] sm:$0xff] %v1870_v47  ;;  %v1872_v50 = vadd.f32 %v1871_v49, %v1598_v48  ;;  %v1602_v51 = vpop.f32.mrf.mxu0 }
 0x1e5   : > { %v1875_v52 = vpop.f32.mrf.mxu1 }
 0x1e6   : > { %2011 = vst [vmem:[%s3397_s21 + $0x218] sm:$0xff] %v1872_v50  ;;  %v1876_v53 = vadd.f32 %v1875_v52, %v1602_v51  ;;  %v1604_v54 = vpop.f32.mrf.mxu0 }
 0x1e7   : > { %v1877_v55 = vpop.f32.mrf.mxu1 }
 0x1e8   : > { %2012 = vst [vmem:[%s3397_s21 + $0x220] sm:$0xff] %v1876_v53  ;;  %v1878_v56 = vadd.f32 %v1877_v55, %v1604_v54  ;;  %v1606_v57 = vpop.f32.mrf.mxu0 }
 0x1e9   : > { %v1879_v58 = vpop.f32.mrf.mxu1 }
 0x1ea   : > { %2013 = vst [vmem:[%s3397_s21 + $0x228] sm:$0xff] %v1878_v56  ;;  %v1880_v59 = vadd.f32 %v1879_v58, %v1606_v57  ;;  %v1608_v60 = vpop.f32.mrf.mxu0 }
 0x1eb   : > { %v1881_v61 = vpop.f32.mrf.mxu1 }
 0x1ec   : > { %2014 = vst [vmem:[%s3397_s21 + $0x230] sm:$0xff] %v1880_v59  ;;  %v1882_v62 = vadd.f32 %v1881_v61, %v1608_v60  ;;  %v1612_v63 = vpop.f32.mrf.mxu0 }
 0x1ed   : > { %v1885_v0 = vpop.f32.mrf.mxu1 }
 0x1ee   : > { %2015 = vst [vmem:[%s3397_s21 + $0x238] sm:$0xff] %v1882_v62  ;;  %v1886_v1 = vadd.f32 %v1885_v0, %v1612_v63  ;;  %v1614_v2 = vpop.f32.mrf.mxu0 }
 0x1ef   : > { %v1887_v3 = vpop.f32.mrf.mxu1 }
 0x1f0   : > { %2016 = vst [vmem:[%s3397_s21 + $0x240] sm:$0xff] %v1886_v1  ;;  %v1888_v4 = vadd.f32 %v1887_v3, %v1614_v2  ;;  %v1616_v5 = vpop.f32.mrf.mxu0 }
 0x1f1   : > { %v1889_v6 = vpop.f32.mrf.mxu1 }
 0x1f2   : > { %2017 = vst [vmem:[%s3397_s21 + $0x248] sm:$0xff] %v1888_v4  ;;  %v1890_v7 = vadd.f32 %v1889_v6, %v1616_v5  ;;  %v1618_v8 = vpop.f32.mrf.mxu0 }
 0x1f3   : > { %v1891_v9 = vpop.f32.mrf.mxu1 }
 0x1f4   : > { %2018 = vst [vmem:[%s3397_s21 + $0x250] sm:$0xff] %v1890_v7  ;;  %v1892_v10 = vadd.f32 %v1891_v9, %v1618_v8  ;;  %v1622_v11 = vpop.f32.mrf.mxu0 }
 0x1f5   : > { %v1895_v12 = vpop.f32.mrf.mxu1 }
 0x1f6   : > { %2019 = vst [vmem:[%s3397_s21 + $0x258] sm:$0xff] %v1892_v10  ;;  %v1896_v13 = vadd.f32 %v1895_v12, %v1622_v11  ;;  %v1624_v14 = vpop.f32.mrf.mxu0 }
 0x1f7   : > { %v1897_v15 = vpop.f32.mrf.mxu1 }
 0x1f8   : > { %2020 = vst [vmem:[%s3397_s21 + $0x260] sm:$0xff] %v1896_v13  ;;  %v1898_v16 = vadd.f32 %v1897_v15, %v1624_v14  ;;  %v1626_v17 = vpop.f32.mrf.mxu0 }
 0x1f9   : > { %v1899_v18 = vpop.f32.mrf.mxu1 }
 0x1fa   : > { %2021 = vst [vmem:[%s3397_s21 + $0x268] sm:$0xff] %v1898_v16  ;;  %v1900_v19 = vadd.f32 %v1899_v18, %v1626_v17  ;;  %v1628_v20 = vpop.f32.mrf.mxu0 }
 0x1fb   : > { %v1901_v21 = vpop.f32.mrf.mxu1 }
 0x1fc   : > { %2022 = vst [vmem:[%s3397_s21 + $0x270] sm:$0xff] %v1900_v19  ;;  %v1902_v22 = vadd.f32 %v1901_v21, %v1628_v20  ;;  %v1632_v23 = vpop.f32.mrf.mxu0 }
 0x1fd   : > { %v1905_v24 = vpop.f32.mrf.mxu1 }
 0x1fe   : > { %2023 = vst [vmem:[%s3397_s21 + $0x278] sm:$0xff] %v1902_v22  ;;  %v1906_v25 = vadd.f32 %v1905_v24, %v1632_v23  ;;  %v1634_v26 = vpop.f32.mrf.mxu0 }
 0x1ff   : > { %v1907_v27 = vpop.f32.mrf.mxu1 }
 0x200   : > { %2024 = vst [vmem:[%s3397_s21 + $0x280] sm:$0xff] %v1906_v25  ;;  %v1908_v28 = vadd.f32 %v1907_v27, %v1634_v26  ;;  %v1636_v29 = vpop.f32.mrf.mxu0 }
 0x201   : > { %v1909_v30 = vpop.f32.mrf.mxu1 }
 0x202   : > { %2025 = vst [vmem:[%s3397_s21 + $0x288] sm:$0xff] %v1908_v28  ;;  %v1910_v31 = vadd.f32 %v1909_v30, %v1636_v29  ;;  %v1638_v32 = vpop.f32.mrf.mxu0 }
 0x203   : > { %v1911_v33 = vpop.f32.mrf.mxu1 }
 0x204   : > { %2026 = vst [vmem:[%s3397_s21 + $0x290] sm:$0xff] %v1910_v31  ;;  %v1912_v34 = vadd.f32 %v1911_v33, %v1638_v32  ;;  %v1642_v35 = vpop.f32.mrf.mxu0 }
 0x205   : > { %v1915_v36 = vpop.f32.mrf.mxu1 }
 0x206   : > { %2027 = vst [vmem:[%s3397_s21 + $0x298] sm:$0xff] %v1912_v34  ;;  %v1916_v37 = vadd.f32 %v1915_v36, %v1642_v35  ;;  %v1644_v38 = vpop.f32.mrf.mxu0 }
 0x207   : > { %v1917_v39 = vpop.f32.mrf.mxu1 }
 0x208   : > { %2028 = vst [vmem:[%s3397_s21 + $0x2a0] sm:$0xff] %v1916_v37  ;;  %v1918_v40 = vadd.f32 %v1917_v39, %v1644_v38  ;;  %v1646_v41 = vpop.f32.mrf.mxu0 }
 0x209   : > { %v1919_v42 = vpop.f32.mrf.mxu1 }
 0x20a   : > { %2029 = vst [vmem:[%s3397_s21 + $0x2a8] sm:$0xff] %v1918_v40  ;;  %v1920_v43 = vadd.f32 %v1919_v42, %v1646_v41  ;;  %v1648_v44 = vpop.f32.mrf.mxu0 }
 0x20b   : > { %v1921_v45 = vpop.f32.mrf.mxu1 }
 0x20c   : > { %2030 = vst [vmem:[%s3397_s21 + $0x2b0] sm:$0xff] %v1920_v43  ;;  %v1922_v46 = vadd.f32 %v1921_v45, %v1648_v44  ;;  %v1652_v47 = vpop.f32.mrf.mxu0 }
 0x20d   : > { %v1925_v48 = vpop.f32.mrf.mxu1 }
 0x20e   : > { %2031 = vst [vmem:[%s3397_s21 + $0x2b8] sm:$0xff] %v1922_v46  ;;  %v1926_v49 = vadd.f32 %v1925_v48, %v1652_v47  ;;  %v1654_v50 = vpop.f32.mrf.mxu0 }
 0x20f   : > { %v1927_v51 = vpop.f32.mrf.mxu1 }
 0x210   : > { %2032 = vst [vmem:[%s3397_s21 + $0x2c0] sm:$0xff] %v1926_v49  ;;  %v1928_v52 = vadd.f32 %v1927_v51, %v1654_v50  ;;  %v1656_v53 = vpop.f32.mrf.mxu0 }
 0x211   : > { %v1929_v54 = vpop.f32.mrf.mxu1 }
 0x212   : > { %2033 = vst [vmem:[%s3397_s21 + $0x2c8] sm:$0xff] %v1928_v52  ;;  %v1930_v55 = vadd.f32 %v1929_v54, %v1656_v53  ;;  %v1658_v56 = vpop.f32.mrf.mxu0 }
 0x213   : > { %v1931_v57 = vpop.f32.mrf.mxu1 }
 0x214   : > { %2034 = vst [vmem:[%s3397_s21 + $0x2d0] sm:$0xff] %v1930_v55  ;;  %v1932_v58 = vadd.f32 %v1931_v57, %v1658_v56  ;;  %v1662_v59 = vpop.f32.mrf.mxu0 }
 0x215   : > { %v1935_v60 = vpop.f32.mrf.mxu1 }
 0x216   : > { %2035 = vst [vmem:[%s3397_s21 + $0x2d8] sm:$0xff] %v1932_v58  ;;  %v1936_v61 = vadd.f32 %v1935_v60, %v1662_v59  ;;  %v1664_v62 = vpop.f32.mrf.mxu0 }
 0x217   : > { %v1937_v63 = vpop.f32.mrf.mxu1 }
 0x218   : > { %2036 = vst [vmem:[%s3397_s21 + $0x2e0] sm:$0xff] %v1936_v61  ;;  %v1938_v0 = vadd.f32 %v1937_v63, %v1664_v62  ;;  %v1666_v1 = vpop.f32.mrf.mxu0 }
 0x219   : > { %v1939_v2 = vpop.f32.mrf.mxu1 }
 0x21a   : > { %2037 = vst [vmem:[%s3397_s21 + $0x2e8] sm:$0xff] %v1938_v0  ;;  %v1940_v3 = vadd.f32 %v1939_v2, %v1666_v1  ;;  %v1668_v4 = vpop.f32.mrf.mxu0 }
 0x21b   : > { %v1941_v5 = vpop.f32.mrf.mxu1 }
 0x21c   : > { %2038 = vst [vmem:[%s3397_s21 + $0x2f0] sm:$0xff] %v1940_v3  ;;  %v1942_v6 = vadd.f32 %v1941_v5, %v1668_v4 }
 0x21e   : > { %2039 = vst [vmem:[%s3397_s21 + $0x2f8] sm:$0xff] %v1942_v6 }
 0x21f   : > { %2732 = shalt.err (!%p2729_p3)
}
 0x220   : > { %s2733_s16 = scalar_lea.hbm %s3498_s5, 12288  ;;  %s2737_s23 = scalar_lea.hbm %s3548_s2, 24576 }
 0x221   : > { %p2734_p4 = scmp.ne.s32.totalorder %s3498_s5, %s2733_s16  ;;  %p2738_p9 = scmp.lt.s32.totalorder %s3498_s5, %s3548_s2 }
 0x222   : > { %p2739_p10 = scmp.lt.s32.totalorder %s2737_s23, %s2733_s16 }
 0x223   : > { %p2735_p7 = pnand %p2734_p4, %p2839_p5 }
 0x224   : > { %p2740_p11 = por %p2739_p10, %p2738_p9 }
 0x225   : > { %p2736_p8 = pneg %p2735_p7 }
 0x227   : > { %p2741_p12 = pnand %p2740_p11, %p2736_p8 }
 0x229   : > { %2744 = shalt.err (!%p2741_p12)
}
 0x22a   : > { %s2784_s27 = smov 256   ;;  %s2785_s25 = smov 16  }
 0x22b   : > { %2578 = dma.vmem_to_hbm [thread:$0]  (%p2839_p5), %s3501_s30, 12288, %s3498_s5, %s3506_s13, %s2784_s27, %s2784_s27, %s2785_s25  }
 0x22c PF: > { %p2584_p13 = scmp.ge.s32.totalorder %s2779_s12, 2  ;;  %s2070_s28 = sand.u32 1, %s2767_s9  }
 0x22d   : > { %s2071_s21 = scalar_lea.sflag [#allocation3], %s2070_s28 }
 0x22e   : > { %p2581_p0 = pnand %p2584_p13, %p2843_p6 }
 0x230   : > { %p2582_p1 = pneg %p2581_p0 }
 0x232   : > { %2762 = dma.done.wait (%p2582_p1), %s2071_s21, 12288  }
 0x233   : > { %2764 = vsyncadd (%p2582_p1), %s2071_s21, 4294955008  ;;  %p12_p2 = scmp.ge.s32.totalorder %s2826_s15, 4   ;;  %s3551_s9 = smov %s2771_s10 }
 0x234   : > { %s3552_s10 = smov %s2775_s11  ;;  %s3553_s11 = smov %s2837_s18 }
 0x235   : > { %s3554_s12 = smov %s2826_s15  ;;  %14 = sbr.rel (!%p12_p2) target bundleno = 3 (0x3), region = 63 }
 0x23a   :  { %2076 = vsyncpa [#allocation3], 1 }
 0x23b   :  { %2078 = vsyncpa [#allocation3 + $0x1], 1 }

</bundles_post_ra>
